<compile_context>
chip_gen: v5e
topology: v5e:2x2
jax: 0.10.0
libtpu: 0.0.40
codegen_flags: <defaults>
</compile_context>

<pallas_src>
import functools
import numpy as np
import jax
import jax.numpy as jnp
from jax.experimental import pallas as pl
from jax.experimental.pallas import tpu as pltpu

# ----------------------------- configuration -------------------------------
B = 2                     # batch size
N = 16                    # points per cloud (dense analog of sparse coords)
IN_CH = 4                 # input feature channels
UP_IN = [4, 32]           # up_conv_config.in_channels
UP_OUT = [32, 32]         # up_conv_config.out_channels
GLOBAL_CH = 32            # transformer.global_channels
NUM_ATTN_LAYERS = 2       # transformer.num_attn_layers
OUT_CH = 32               # backbone.out_channels == pooling.in == pooling.out
GEM_P = 3.0               # GeM pooling power
GEM_EPS = 1e-6

VMEM = pltpu.MemorySpace.VMEM


def _specs(n):
    return [pl.BlockSpec(memory_space=VMEM) for _ in range(n)]


# --------------------------- fused forward kernel ---------------------------

def _transloc3d_kernel(
    # activations / constants
    x_ref, pool_ref, bcast_ref, nmask_ref,
    # stem (up_conv0, up_conv1): conv+BN folded, ReLU
    w0_ref, b0_ref, w1_ref, b1_ref,
    # SelectiveInceptionBlock, branch convs fused lane-wise / block-diagonal
    wA_ref, bA_ref, wB_ref, bB_ref,
    p0_ref, wCa_ref, wCb_ref, bC_ref,
    wE_ref,
    wT1_ref, bT1_ref, wT2_ref, bT2_ref, wT3_ref, bT3_ref,
    # transformer (fused QKV) + conv_fuse (row-split per concatenated feature)
    wqkv_ref, bqkv_ref, wo_ref, bo_ref,
    wf_ref, bf_ref,
    # output
    o_ref,
    # VMEM scratch
    xg_s, lg_s, qkv_s,
    *, c, n_layers, scale, gem_p, gem_eps,
):
    f32, bf16 = jnp.float32, jnp.bfloat16

    def mm(a, w):
        # bf16 operands on the MXU, f32 accumulation
        return jnp.dot(a.astype(bf16), w, preferred_element_type=f32)

    def relu(v):
        return jnp.maximum(v, 0.0)

    pool = pool_ref[...]        # (B, M)  per-batch mean over points
    bcast = bcast_ref[...]      # (M, B)  per-batch broadcast (0/1)

    # ---------------- stem: up_conv0 + up_conv (+BN, ReLU) ------------------
    h = relu(mm(x_ref[...], w0_ref[...]) + b0_ref[...])           # (M, c)
    h = relu(mm(h, w1_ref[...]) + b1_ref[...])                    # (M, c)

    # -------- SelectiveInceptionBlock: 5 branches as wide fused matmuls -----
    hA = relu(mm(h, wA_ref[...]) + bA_ref[...])                   # (M, 4c)
    h34 = relu(mm(hA, wB_ref[...]) + bB_ref[...])                 # (M, 2c)
    # xcat = [x0 | x1 | x2 | x3 | x4]; identity branch placed via exact f32
    # 0/1 matrix, last convs of the other branches land directly in place.
    xcat = (jnp.dot(h, p0_ref[...], preferred_element_type=f32)
            + mm(hA, wCa_ref[...]) + mm(h34, wCb_ref[...])
            + bC_ref[...])                                        # (M, 5c)

    # fused ECA over all 5 branches: global avg pool -> banded conv -> gate
    m = jnp.dot(pool, xcat, preferred_element_type=f32)           # (B, 5c)
    g = jax.nn.sigmoid(mm(m, wE_ref[...]))                        # (B, 5c)
    xg = xcat * jnp.dot(bcast, g, preferred_element_type=f32)     # (M, 5c)
    xg_s[...] = xg

    # trans layers (block-diag) + pre-summed 2nd layer + trans2 -> logits
    t = relu(mm(xg, wT1_ref[...]) + bT1_ref[...])                 # (M, 5c)
    wsum = mm(t, wT2_ref[...]) + bT2_ref[...]                     # (M, c)
    lg_s[...] = mm(wsum, wT3_ref[...]) + bT3_ref[...]             # (M, 5c)

    # per-channel softmax over the 5 branches + weighted fusion
    ls = [lg_s[:, i * c:(i + 1) * c] for i in range(5)]
    mx = jnp.maximum(jnp.maximum(jnp.maximum(ls[0], ls[1]),
                                 jnp.maximum(ls[2], ls[3])), ls[4])
    es = [jnp.exp(l - mx) for l in ls]
    inv = pl.reciprocal(es[0] + es[1] + es[2] + es[3] + es[4], approx=True)
    acc = es[0] * xg_s[:, 0:c]
    for i in range(1, 5):
        acc = acc + es[i] * xg_s[:, i * c:(i + 1) * c]
    h = acc * inv                                                 # (M, c)

    # ---------- transformer: residual single-head self-attention -----------
    nmask = nmask_ref[...]                                        # (M, M)
    fused = mm(h, wf_ref[0])                                      # conv_fuse partials
    cur = h
    for l in range(n_layers):
        qkv_s[...] = mm(cur, wqkv_ref[l]) + bqkv_ref[l]           # (M, 3c)
        q = qkv_s[:, 0:c]
        k = qkv_s[:, c:2 * c]
        v = qkv_s[:, 2 * c:3 * c]
        s = jnp.einsum('md,nd->mn', q.astype(bf16), k.astype(bf16),
                       preferred_element_type=f32) * scale + nmask
        s = s - jnp.max(s, axis=-1, keepdims=True)
        p = jnp.exp(s)
        p = p * pl.reciprocal(jnp.sum(p, axis=-1, keepdims=True), approx=True)
        ctx = jnp.dot(p.astype(bf16), v.astype(bf16),
                      preferred_element_type=f32)                 # (M, c)
        cur = cur + mm(ctx, wo_ref[l]) + bo_ref[l]
        fused = fused + mm(cur, wf_ref[l + 1])

    f = relu(fused + bf_ref[...])                                 # (M, OUT_CH)

    # ------------------ GeM pooling over the point dimension ---------------
    fc = jnp.maximum(f, gem_eps)
    f3 = fc * fc * fc                                             # p == 3
    pooled = jnp.dot(pool, f3, preferred_element_type=f32)        # (B, OUT_CH)
    o_ref[...] = pooled ** (1.0 / gem_p)


def transloc3d_forward(x, fp):
    bsz, npts, _ = x.shape
    m = bsz * npts
    c = GLOBAL_CH
    xf = x.reshape(m, x.shape[-1])
    kernel = functools.partial(
        _transloc3d_kernel, c=c, n_layers=NUM_ATTN_LAYERS,
        scale=1.0 / float(np.sqrt(c)), gem_p=GEM_P, gem_eps=GEM_EPS)
    args = (xf, fp['pool'], fp['bcast'], fp['nmask'],
            fp['w0'], fp['b0'], fp['w1'], fp['b1'],
            fp['wA'], fp['bA'], fp['wB'], fp['bB'],
            fp['p0'], fp['wCa'], fp['wCb'], fp['bC'],
            fp['wE'],
            fp['wT1'], fp['bT1'], fp['wT2'], fp['bT2'], fp['wT3'], fp['bT3'],
            fp['wqkv'], fp['bqkv'], fp['wo'], fp['bo'],
            fp['wf'], fp['bf'])
    return pl.pallas_call(
        kernel,
        out_shape=jax.ShapeDtypeStruct((bsz, OUT_CH), jnp.float32),
        in_specs=_specs(len(args)),
        out_specs=pl.BlockSpec(memory_space=VMEM),
        scratch_shapes=[pltpu.VMEM((m, 5 * c), jnp.float32),   # gated branches
                        pltpu.VMEM((m, 5 * c), jnp.float32),   # selection logits
                        pltpu.VMEM((m, 3 * c), jnp.float32)],  # fused QKV
    )(*args)


# ------------------------- parameter initialization -------------------------

def _key_iter(key):
    while True:
        key, sub = jax.random.split(key)
        yield sub


def _init_linear(key, cin, cout):
    w = jax.random.normal(key, (cin, cout), jnp.float32) * (0.3 / np.sqrt(cin))
    b = jnp.zeros((cout,), jnp.float32)
    return w, b


def _init_bn(key, ch):
    k1, k2, k3, k4 = jax.random.split(key, 4)
    gamma = 1.0 + 0.1 * jax.random.normal(k1, (ch,), jnp.float32)
    beta = 0.1 * jax.random.normal(k2, (ch,), jnp.float32)
    mean = 0.1 * jax.random.normal(k3, (ch,), jnp.float32)
    var = 1.0 + 0.1 * jnp.abs(jax.random.normal(k4, (ch,), jnp.float32))
    return gamma, beta, mean, var


def _fold_bn(w, b, bn, eps=1e-5):
    gamma, beta, mean, var = bn
    scale = gamma / jnp.sqrt(var + eps)
    return w * scale[None, :], (b - mean) * scale + beta


def conv_bn(keys, cin, cout):
    """(Minkowski)Conv + BatchNorm folded into a single affine (inference)."""
    w, b = _init_linear(next(keys), cin, cout)
    return _fold_bn(w, b, _init_bn(next(keys), cout))


def eca_conv_matrix(key, channels, gamma=2, b=1):
    """Banded (C,C) matrix == Conv1d(1,1,k,padding=(k-1)//2,bias=False)."""
    t = int(abs((np.log2(channels) + b) / gamma))
    k = t if t % 2 else t + 1
    pad = (k - 1) // 2
    w = jax.random.normal(key, (k,), jnp.float32) * 0.5
    jj, cc = np.meshgrid(np.arange(channels), np.arange(channels), indexing='ij')
    idx = jj - cc + pad                     # mat[j, c] = w[j - c + pad]
    valid = (idx >= 0) & (idx < k)
    idx_c = np.clip(idx, 0, k - 1)
    return jnp.where(jnp.asarray(valid), w[jnp.asarray(idx_c)], 0.0)


def init_params(key):
    keys = _key_iter(key)
    c = GLOBAL_CH
    p = {}
    p['up_conv0'] = conv_bn(keys, UP_IN[0], UP_OUT[0])
    p['up_conv1'] = conv_bn(keys, UP_IN[1], UP_OUT[1])
    blk = {}
    # TODO(synk): conv1x1 branch is the identity because the block's in/out
    # channels match (32 -> 32); a cin != cout config needs one extra linear.
    blk['b3'] = [conv_bn(keys, c, c), conv_bn(keys, c, c)]
    blk['b5'] = [conv_bn(keys, c, c), conv_bn(keys, c, c)]
    blk['b7'] = [conv_bn(keys, c, c), conv_bn(keys, c, c), conv_bn(keys, c, c)]
    blk['b9'] = [conv_bn(keys, c, c), conv_bn(keys, c, c), conv_bn(keys, c, c)]
    blk['eca'] = [eca_conv_matrix(next(keys), c) for _ in range(5)]
    blk['trans'] = [[conv_bn(keys, c, c), conv_bn(keys, c, c)] for _ in range(5)]
    blk['trans2'] = conv_bn(keys, c, 5 * c)
    p['block'] = blk
    p['attn'] = []
    for _ in range(NUM_ATTN_LAYERS):
        ws, bs = [], []
        for _ in range(3):                                # q, k, v
            w, bvec = _init_linear(next(keys), c, c)
            ws.append(w)
            bs.append(bvec)
        wo, bo = _init_linear(next(keys), c, c)
        p['attn'].append({'wqkv': jnp.concatenate(ws, axis=1),
                          'bqkv': jnp.concatenate(bs).reshape(1, -1),
                          'wo': wo, 'bo': bo.reshape(1, -1)})
    wf = jax.random.normal(next(keys), (c * (NUM_ATTN_LAYERS + 1), OUT_CH),
                           jnp.float32) * (0.3 / np.sqrt(c * (NUM_ATTN_LAYERS + 1)))
    p['conv_fuse'] = _fold_bn(wf, jnp.zeros((OUT_CH,), jnp.float32),
                              _init_bn(next(keys), OUT_CH))
    return p


def _block_diag(mats):
    rows = sum(m.shape[0] for m in mats)
    cols = sum(m.shape[1] for m in mats)
    out = jnp.zeros((rows, cols), jnp.float32)
    r = c0 = 0
    for m in mats:
        out = out.at[r:r + m.shape[0], c0:c0 + m.shape[1]].set(m)
        r += m.shape[0]
        c0 += m.shape[1]
    return out


def fuse_params(p, bsz, npts):
    """Concatenate / block-diagonalise weights for wide, lane-dense matmuls."""
    c = GLOBAL_CH
    bf16 = jnp.bfloat16
    blk = p['block']

    def cat_w(ws):
        return jnp.concatenate(ws, axis=1)

    def cat_b(bs):
        return jnp.concatenate(bs).reshape(1, -1)

    fp = {}
    fp['w0'] = p['up_conv0'][0].astype(bf16)
    fp['b0'] = p['up_conv0'][1].reshape(1, -1)
    fp['w1'] = p['up_conv1'][0].astype(bf16)
    fp['b1'] = p['up_conv1'][1].reshape(1, -1)

    b3, b5, b7, b9 = blk['b3'], blk['b5'], blk['b7'], blk['b9']
    # first conv of each non-identity branch, lane-concatenated
    fp['wA'] = cat_w([b3[0][0], b5[0][0], b7[0][0], b9[0][0]]).astype(bf16)
    fp['bA'] = cat_b([b3[0][1], b5[0][1], b7[0][1], b9[0][1]])
    # second ReLU conv of the 7x7 / 9x9 branches (zero rows skip 3x3/5x5 lanes)
    wB = jnp.zeros((4 * c, 2 * c), jnp.float32)
    wB = wB.at[2 * c:3 * c, 0:c].set(b7[1][0]).at[3 * c:4 * c, c:2 * c].set(b9[1][0])
    fp['wB'] = wB.astype(bf16)
    fp['bB'] = cat_b([b7[1][1], b9[1][1]])
    # last conv of every branch placed directly into the concatenated 5c layout
    fp['p0'] = jnp.zeros((c, 5 * c), jnp.float32).at[:, 0:c].set(jnp.eye(c))
    wCa = jnp.zeros((4 * c, 5 * c), jnp.float32)
    wCa = wCa.at[0:c, c:2 * c].set(b3[1][0]).at[c:2 * c, 2 * c:3 * c].set(b5[1][0])
    fp['wCa'] = wCa.astype(bf16)
    wCb = jnp.zeros((2 * c, 5 * c), jnp.float32)
    wCb = wCb.at[0:c, 3 * c:4 * c].set(b7[2][0]).at[c:2 * c, 4 * c:5 * c].set(b9[2][0])
    fp['wCb'] = wCb.astype(bf16)
    fp['bC'] = cat_b([jnp.zeros((c,), jnp.float32),
                      b3[1][1], b5[1][1], b7[2][1], b9[2][1]])

    fp['wE'] = _block_diag(blk['eca']).astype(bf16)
    fp['wT1'] = _block_diag([t[0][0] for t in blk['trans']]).astype(bf16)
    fp['bT1'] = cat_b([t[0][1] for t in blk['trans']])
    # second trans conv pre-summed over branches: sum_i t_i @ W_i == t @ vstack(W_i)
    fp['wT2'] = jnp.concatenate([t[1][0] for t in blk['trans']], axis=0).astype(bf16)
    fp['bT2'] = sum(t[1][1] for t in blk['trans']).reshape(1, -1)
    fp['wT3'] = blk['trans2'][0].astype(bf16)
    fp['bT3'] = blk['trans2'][1].reshape(1, -1)

    fp['wqkv'] = jnp.stack([a['wqkv'] for a in p['attn']]).astype(bf16)
    fp['bqkv'] = jnp.stack([a['bqkv'] for a in p['attn']])
    fp['wo'] = jnp.stack([a['wo'] for a in p['attn']]).astype(bf16)
    fp['bo'] = jnp.stack([a['bo'] for a in p['attn']])

    wf, bfv = p['conv_fuse']
    fp['wf'] = jnp.stack(jnp.split(wf, NUM_ATTN_LAYERS + 1, axis=0)).astype(bf16)
    fp['bf'] = bfv.reshape(1, -1)

    # dense-batch constants (N points per cloud)
    eye = np.eye(bsz, dtype=np.float32)
    fp['pool'] = jnp.asarray(np.kron(eye, np.full((1, npts), 1.0 / npts, np.float32)))
    fp['bcast'] = jnp.asarray(np.kron(eye, np.ones((npts, 1), np.float32)))
    block = np.kron(eye, np.ones((npts, npts), np.float32))
    fp['nmask'] = jnp.asarray((block - 1.0) * 1e30)   # 0 in-batch, -1e30 cross-batch
    return fp


# ----------------------------------- main -----------------------------------

if __name__ == "__main__":
    key = jax.random.PRNGKey(0)
    pkey, xkey = jax.random.split(key)
    params = init_params(pkey)
    fused = fuse_params(params, B, N)
    x = jax.random.normal(xkey, (B, N, IN_CH), jnp.float32)

    fwd = jax.jit(functools.partial(transloc3d_forward, fp=fused))
    out = fwd(x)
    jax.block_until_ready(out)
    assert out.shape == (B, OUT_CH), out.shape
    assert bool(jnp.all(jnp.isfinite(out)))
    print("KERNEL_OK")
</pallas_src>

<mosaic_0001>
module attributes {stable_mosaic.version = 11 : i64} {
  func.func @_transloc3d_kernel(%arg0: memref<32x4xf32, #tpu.memory_space<vmem>>, %arg1: memref<2x32xf32, #tpu.memory_space<vmem>>, %arg2: memref<32x2xf32, #tpu.memory_space<vmem>>, %arg3: memref<32x32xf32, #tpu.memory_space<vmem>>, %arg4: memref<4x32xbf16, #tpu.memory_space<vmem>>, %arg5: memref<1x32xf32, #tpu.memory_space<vmem>>, %arg6: memref<32x32xbf16, #tpu.memory_space<vmem>>, %arg7: memref<1x32xf32, #tpu.memory_space<vmem>>, %arg8: memref<32x128xbf16, #tpu.memory_space<vmem>>, %arg9: memref<1x128xf32, #tpu.memory_space<vmem>>, %arg10: memref<128x64xbf16, #tpu.memory_space<vmem>>, %arg11: memref<1x64xf32, #tpu.memory_space<vmem>>, %arg12: memref<32x160xf32, #tpu.memory_space<vmem>>, %arg13: memref<128x160xbf16, #tpu.memory_space<vmem>>, %arg14: memref<64x160xbf16, #tpu.memory_space<vmem>>, %arg15: memref<1x160xf32, #tpu.memory_space<vmem>>, %arg16: memref<160x160xbf16, #tpu.memory_space<vmem>>, %arg17: memref<160x160xbf16, #tpu.memory_space<vmem>>, %arg18: memref<1x160xf32, #tpu.memory_space<vmem>>, %arg19: memref<160x32xbf16, #tpu.memory_space<vmem>>, %arg20: memref<1x32xf32, #tpu.memory_space<vmem>>, %arg21: memref<32x160xbf16, #tpu.memory_space<vmem>>, %arg22: memref<1x160xf32, #tpu.memory_space<vmem>>, %arg23: memref<2x32x96xbf16, #tpu.memory_space<vmem>>, %arg24: memref<2x1x96xf32, #tpu.memory_space<vmem>>, %arg25: memref<2x32x32xbf16, #tpu.memory_space<vmem>>, %arg26: memref<2x1x32xf32, #tpu.memory_space<vmem>>, %arg27: memref<3x32x32xbf16, #tpu.memory_space<vmem>>, %arg28: memref<1x32xf32, #tpu.memory_space<vmem>>, %arg29: memref<2x32xf32, #tpu.memory_space<vmem>>, %arg30: memref<32x160xf32, #tpu.memory_space<vmem>>, %arg31: memref<32x160xf32, #tpu.memory_space<vmem>>, %arg32: memref<32x96xf32, #tpu.memory_space<vmem>>) attributes {dimension_semantics = [], scalar_prefetch = 0 : i64, scratch_operands = 3 : i64, tpu.core_type = #tpu.core_type<tc>} {
    %c0 = arith.constant 0 : index
    %c0_0 = arith.constant 0 : index
    %0 = vector.load %arg1[%c0, %c0_0] : memref<2x32xf32, #tpu.memory_space<vmem>>, vector<2x32xf32>
    %c0_1 = arith.constant 0 : index
    %c0_2 = arith.constant 0 : index
    %1 = vector.load %arg2[%c0_1, %c0_2] : memref<32x2xf32, #tpu.memory_space<vmem>>, vector<32x2xf32>
    %c0_3 = arith.constant 0 : index
    %c0_4 = arith.constant 0 : index
    %2 = vector.load %arg0[%c0_3, %c0_4] : memref<32x4xf32, #tpu.memory_space<vmem>>, vector<32x4xf32>
    %c0_5 = arith.constant 0 : index
    %c0_6 = arith.constant 0 : index
    %3 = vector.load %arg4[%c0_5, %c0_6] : memref<4x32xbf16, #tpu.memory_space<vmem>>, vector<4x32xbf16>
    %4 = arith.truncf %2 : vector<32x4xf32> to vector<32x4xbf16>
    %cst = arith.constant dense<0.000000e+00> : vector<32x32xf32>
    %5 = tpu.matmul %4, %3, %cst {dimension_numbers = #tpu.dot_dimension_numbers<[1], [0], [0], [1], [0, 0, 1, 1], [], []>} : vector<32x4xbf16>, vector<4x32xbf16>, vector<32x32xf32> -> vector<32x32xf32>
    %c0_7 = arith.constant 0 : index
    %c0_8 = arith.constant 0 : index
    %6 = vector.load %arg5[%c0_7, %c0_8] : memref<1x32xf32, #tpu.memory_space<vmem>>, vector<1x32xf32>
    %7 = vector.broadcast %6 : vector<1x32xf32> to vector<32x32xf32>
    %8 = arith.addf %5, %7 : vector<32x32xf32>
    %cst_9 = arith.constant 0.000000e+00 : f32
    %9 = vector.broadcast %cst_9 : f32 to vector<32x32xf32>
    %10 = arith.maximumf %8, %9 : vector<32x32xf32>
    %c0_10 = arith.constant 0 : index
    %c0_11 = arith.constant 0 : index
    %11 = vector.load %arg6[%c0_10, %c0_11] : memref<32x32xbf16, #tpu.memory_space<vmem>>, vector<32x32xbf16>
    %12 = arith.truncf %10 : vector<32x32xf32> to vector<32x32xbf16>
    %cst_12 = arith.constant dense<0.000000e+00> : vector<32x32xf32>
    %13 = tpu.matmul %12, %11, %cst_12 {dimension_numbers = #tpu.dot_dimension_numbers<[1], [0], [0], [1], [0, 0, 1, 1], [], []>} : vector<32x32xbf16>, vector<32x32xbf16>, vector<32x32xf32> -> vector<32x32xf32>
    %c0_13 = arith.constant 0 : index
    %c0_14 = arith.constant 0 : index
    %14 = vector.load %arg7[%c0_13, %c0_14] : memref<1x32xf32, #tpu.memory_space<vmem>>, vector<1x32xf32>
    %15 = vector.broadcast %14 : vector<1x32xf32> to vector<32x32xf32>
    %16 = arith.addf %13, %15 : vector<32x32xf32>
    %cst_15 = arith.constant 0.000000e+00 : f32
    %17 = vector.broadcast %cst_15 : f32 to vector<32x32xf32>
    %18 = arith.maximumf %16, %17 : vector<32x32xf32>
    %c0_16 = arith.constant 0 : index
    %c0_17 = arith.constant 0 : index
    %19 = vector.load %arg8[%c0_16, %c0_17] : memref<32x128xbf16, #tpu.memory_space<vmem>>, vector<32x128xbf16>
    %20 = arith.truncf %18 : vector<32x32xf32> to vector<32x32xbf16>
    %cst_18 = arith.constant dense<0.000000e+00> : vector<32x128xf32>
    %21 = tpu.matmul %20, %19, %cst_18 {dimension_numbers = #tpu.dot_dimension_numbers<[1], [0], [0], [1], [0, 0, 1, 1], [], []>} : vector<32x32xbf16>, vector<32x128xbf16>, vector<32x128xf32> -> vector<32x128xf32>
    %c0_19 = arith.constant 0 : index
    %c0_20 = arith.constant 0 : index
    %22 = vector.load %arg9[%c0_19, %c0_20] : memref<1x128xf32, #tpu.memory_space<vmem>>, vector<1x128xf32>
    %23 = vector.broadcast %22 : vector<1x128xf32> to vector<32x128xf32>
    %24 = arith.addf %21, %23 : vector<32x128xf32>
    %cst_21 = arith.constant 0.000000e+00 : f32
    %25 = vector.broadcast %cst_21 : f32 to vector<32x128xf32>
    %26 = arith.maximumf %24, %25 : vector<32x128xf32>
    %c0_22 = arith.constant 0 : index
    %c0_23 = arith.constant 0 : index
    %27 = vector.load %arg10[%c0_22, %c0_23] : memref<128x64xbf16, #tpu.memory_space<vmem>>, vector<128x64xbf16>
    %28 = arith.truncf %26 : vector<32x128xf32> to vector<32x128xbf16>
    %cst_24 = arith.constant dense<0.000000e+00> : vector<32x64xf32>
    %29 = tpu.matmul %28, %27, %cst_24 {dimension_numbers = #tpu.dot_dimension_numbers<[1], [0], [0], [1], [0, 0, 1, 1], [], []>} : vector<32x128xbf16>, vector<128x64xbf16>, vector<32x64xf32> -> vector<32x64xf32>
    %c0_25 = arith.constant 0 : index
    %c0_26 = arith.constant 0 : index
    %30 = vector.load %arg11[%c0_25, %c0_26] : memref<1x64xf32, #tpu.memory_space<vmem>>, vector<1x64xf32>
    %31 = vector.broadcast %30 : vector<1x64xf32> to vector<32x64xf32>
    %32 = arith.addf %29, %31 : vector<32x64xf32>
    %cst_27 = arith.constant 0.000000e+00 : f32
    %33 = vector.broadcast %cst_27 : f32 to vector<32x64xf32>
    %34 = arith.maximumf %32, %33 : vector<32x64xf32>
    %c0_28 = arith.constant 0 : index
    %c0_29 = arith.constant 0 : index
    %35 = vector.load %arg12[%c0_28, %c0_29] : memref<32x160xf32, #tpu.memory_space<vmem>>, vector<32x160xf32>
    %cst_30 = arith.constant dense<0.000000e+00> : vector<32x160xf32>
    %36 = tpu.matmul %18, %35, %cst_30 {dimension_numbers = #tpu.dot_dimension_numbers<[1], [0], [0], [1], [0, 0, 1, 1], [], []>} : vector<32x32xf32>, vector<32x160xf32>, vector<32x160xf32> -> vector<32x160xf32>
    %c0_31 = arith.constant 0 : index
    %c0_32 = arith.constant 0 : index
    %37 = vector.load %arg13[%c0_31, %c0_32] : memref<128x160xbf16, #tpu.memory_space<vmem>>, vector<128x160xbf16>
    %38 = arith.truncf %26 : vector<32x128xf32> to vector<32x128xbf16>
    %cst_33 = arith.constant dense<0.000000e+00> : vector<32x160xf32>
    %39 = tpu.matmul %38, %37, %cst_33 {dimension_numbers = #tpu.dot_dimension_numbers<[1], [0], [0], [1], [0, 0, 1, 1], [], []>} : vector<32x128xbf16>, vector<128x160xbf16>, vector<32x160xf32> -> vector<32x160xf32>
    %40 = arith.addf %36, %39 : vector<32x160xf32>
    %c0_34 = arith.constant 0 : index
    %c0_35 = arith.constant 0 : index
    %41 = vector.load %arg14[%c0_34, %c0_35] : memref<64x160xbf16, #tpu.memory_space<vmem>>, vector<64x160xbf16>
    %42 = arith.truncf %34 : vector<32x64xf32> to vector<32x64xbf16>
    %cst_36 = arith.constant dense<0.000000e+00> : vector<32x160xf32>
    %43 = tpu.matmul %42, %41, %cst_36 {dimension_numbers = #tpu.dot_dimension_numbers<[1], [0], [0], [1], [0, 0, 1, 1], [], []>} : vector<32x64xbf16>, vector<64x160xbf16>, vector<32x160xf32> -> vector<32x160xf32>
    %44 = arith.addf %40, %43 : vector<32x160xf32>
    %c0_37 = arith.constant 0 : index
    %c0_38 = arith.constant 0 : index
    %45 = vector.load %arg15[%c0_37, %c0_38] : memref<1x160xf32, #tpu.memory_space<vmem>>, vector<1x160xf32>
    %46 = vector.broadcast %45 : vector<1x160xf32> to vector<32x160xf32>
    %47 = arith.addf %44, %46 : vector<32x160xf32>
    %cst_39 = arith.constant dense<0.000000e+00> : vector<2x160xf32>
    %48 = tpu.matmul %0, %47, %cst_39 {dimension_numbers = #tpu.dot_dimension_numbers<[1], [0], [0], [1], [0, 0, 1, 1], [], []>} : vector<2x32xf32>, vector<32x160xf32>, vector<2x160xf32> -> vector<2x160xf32>
    %c0_40 = arith.constant 0 : index
    %c0_41 = arith.constant 0 : index
    %49 = vector.load %arg16[%c0_40, %c0_41] : memref<160x160xbf16, #tpu.memory_space<vmem>>, vector<160x160xbf16>
    %50 = arith.truncf %48 : vector<2x160xf32> to vector<2x160xbf16>
    %cst_42 = arith.constant dense<0.000000e+00> : vector<2x160xf32>
    %51 = tpu.matmul %50, %49, %cst_42 {dimension_numbers = #tpu.dot_dimension_numbers<[1], [0], [0], [1], [0, 0, 1, 1], [], []>} : vector<2x160xbf16>, vector<160x160xbf16>, vector<2x160xf32> -> vector<2x160xf32>
    %52 = arith.negf %51 : vector<2x160xf32>
    %53 = math.exp %52 : vector<2x160xf32>
    %cst_43 = arith.constant 1.000000e+00 : f32
    %54 = vector.broadcast %cst_43 : f32 to vector<2x160xf32>
    %55 = arith.addf %54, %53 : vector<2x160xf32>
    %56 = arith.divf %54, %55 : vector<2x160xf32>
    %cst_44 = arith.constant dense<0.000000e+00> : vector<32x160xf32>
    %57 = tpu.matmul %1, %56, %cst_44 {dimension_numbers = #tpu.dot_dimension_numbers<[1], [0], [0], [1], [0, 0, 1, 1], [], []>} : vector<32x2xf32>, vector<2x160xf32>, vector<32x160xf32> -> vector<32x160xf32>
    %58 = arith.mulf %47, %57 : vector<32x160xf32>
    %c0_45 = arith.constant 0 : index
    %c0_46 = arith.constant 0 : index
    %59 = vector.load %arg30[%c0_45, %c0_46] : memref<32x160xf32, #tpu.memory_space<vmem>>, vector<32x160xf32>
    tpu.vector_store %arg30[%c0_45, %c0_46], %58 {strides = array<i32>} : memref<32x160xf32, #tpu.memory_space<vmem>>, vector<32x160xf32>,
    %c0_47 = arith.constant 0 : index
    %c0_48 = arith.constant 0 : index
    %60 = vector.load %arg17[%c0_47, %c0_48] : memref<160x160xbf16, #tpu.memory_space<vmem>>, vector<160x160xbf16>
    %61 = arith.truncf %58 : vector<32x160xf32> to vector<32x160xbf16>
    %cst_49 = arith.constant dense<0.000000e+00> : vector<32x160xf32>
    %62 = tpu.matmul %61, %60, %cst_49 {dimension_numbers = #tpu.dot_dimension_numbers<[1], [0], [0], [1], [0, 0, 1, 1], [], []>} : vector<32x160xbf16>, vector<160x160xbf16>, vector<32x160xf32> -> vector<32x160xf32>
    %c0_50 = arith.constant 0 : index
    %c0_51 = arith.constant 0 : index
    %63 = vector.load %arg18[%c0_50, %c0_51] : memref<1x160xf32, #tpu.memory_space<vmem>>, vector<1x160xf32>
    %64 = vector.broadcast %63 : vector<1x160xf32> to vector<32x160xf32>
    %65 = arith.addf %62, %64 : vector<32x160xf32>
    %cst_52 = arith.constant 0.000000e+00 : f32
    %66 = vector.broadcast %cst_52 : f32 to vector<32x160xf32>
    %67 = arith.maximumf %65, %66 : vector<32x160xf32>
    %c0_53 = arith.constant 0 : index
    %c0_54 = arith.constant 0 : index
    %68 = vector.load %arg19[%c0_53, %c0_54] : memref<160x32xbf16, #tpu.memory_space<vmem>>, vector<160x32xbf16>
    %69 = arith.truncf %67 : vector<32x160xf32> to vector<32x160xbf16>
    %cst_55 = arith.constant dense<0.000000e+00> : vector<32x32xf32>
    %70 = tpu.matmul %69, %68, %cst_55 {dimension_numbers = #tpu.dot_dimension_numbers<[1], [0], [0], [1], [0, 0, 1, 1], [], []>} : vector<32x160xbf16>, vector<160x32xbf16>, vector<32x32xf32> -> vector<32x32xf32>
    %c0_56 = arith.constant 0 : index
    %c0_57 = arith.constant 0 : index
    %71 = vector.load %arg20[%c0_56, %c0_57] : memref<1x32xf32, #tpu.memory_space<vmem>>, vector<1x32xf32>
    %72 = vector.broadcast %71 : vector<1x32xf32> to vector<32x32xf32>
    %73 = arith.addf %70, %72 : vector<32x32xf32>
    %c0_58 = arith.constant 0 : index
    %c0_59 = arith.constant 0 : index
    %74 = vector.load %arg21[%c0_58, %c0_59] : memref<32x160xbf16, #tpu.memory_space<vmem>>, vector<32x160xbf16>
    %75 = arith.truncf %73 : vector<32x32xf32> to vector<32x32xbf16>
    %cst_60 = arith.constant dense<0.000000e+00> : vector<32x160xf32>
    %76 = tpu.matmul %75, %74, %cst_60 {dimension_numbers = #tpu.dot_dimension_numbers<[1], [0], [0], [1], [0, 0, 1, 1], [], []>} : vector<32x32xbf16>, vector<32x160xbf16>, vector<32x160xf32> -> vector<32x160xf32>
    %c0_61 = arith.constant 0 : index
    %c0_62 = arith.constant 0 : index
    %77 = vector.load %arg22[%c0_61, %c0_62] : memref<1x160xf32, #tpu.memory_space<vmem>>, vector<1x160xf32>
    %78 = vector.broadcast %77 : vector<1x160xf32> to vector<32x160xf32>
    %79 = arith.addf %76, %78 : vector<32x160xf32>
    %c0_63 = arith.constant 0 : index
    %c0_64 = arith.constant 0 : index
    %80 = vector.load %arg31[%c0_63, %c0_64] : memref<32x160xf32, #tpu.memory_space<vmem>>, vector<32x160xf32>
    tpu.vector_store %arg31[%c0_63, %c0_64], %79 {strides = array<i32>} : memref<32x160xf32, #tpu.memory_space<vmem>>, vector<32x160xf32>,
    %c0_65 = arith.constant 0 : index
    %c0_66 = arith.constant 0 : index
    %81 = vector.load %arg31[%c0_65, %c0_66] : memref<32x160xf32, #tpu.memory_space<vmem>>, vector<32x32xf32>
    %c0_67 = arith.constant 0 : index
    %c32 = arith.constant 32 : index
    %82 = vector.load %arg31[%c0_67, %c32] : memref<32x160xf32, #tpu.memory_space<vmem>>, vector<32x32xf32>
    %c0_68 = arith.constant 0 : index
    %c64 = arith.constant 64 : index
    %83 = vector.load %arg31[%c0_68, %c64] : memref<32x160xf32, #tpu.memory_space<vmem>>, vector<32x32xf32>
    %c0_69 = arith.constant 0 : index
    %c96 = arith.constant 96 : index
    %84 = vector.load %arg31[%c0_69, %c96] : memref<32x160xf32, #tpu.memory_space<vmem>>, vector<32x32xf32>
    %c0_70 = arith.constant 0 : index
    %c128 = arith.constant 128 : index
    %85 = vector.load %arg31[%c0_70, %c128] : memref<32x160xf32, #tpu.memory_space<vmem>>, vector<32x32xf32>
    %86 = arith.maximumf %81, %82 : vector<32x32xf32>
    %87 = arith.maximumf %83, %84 : vector<32x32xf32>
    %88 = arith.maximumf %86, %87 : vector<32x32xf32>
    %89 = arith.maximumf %88, %85 : vector<32x32xf32>
    %90 = arith.subf %81, %89 : vector<32x32xf32>
    %91 = math.exp %90 : vector<32x32xf32>
    %92 = arith.subf %82, %89 : vector<32x32xf32>
    %93 = math.exp %92 : vector<32x32xf32>
    %94 = arith.subf %83, %89 : vector<32x32xf32>
    %95 = math.exp %94 : vector<32x32xf32>
    %96 = arith.subf %84, %89 : vector<32x32xf32>
    %97 = math.exp %96 : vector<32x32xf32>
    %98 = arith.subf %85, %89 : vector<32x32xf32>
    %99 = math.exp %98 : vector<32x32xf32>
    %100 = arith.addf %91, %93 : vector<32x32xf32>
    %101 = arith.addf %100, %95 : vector<32x32xf32>
    %102 = arith.addf %101, %97 : vector<32x32xf32>
    %103 = arith.addf %102, %99 : vector<32x32xf32>
    %104 = tpu.reciprocal %103 {approx = true} : vector<32x32xf32> -> vector<32x32xf32>
    %c0_71 = arith.constant 0 : index
    %c0_72 = arith.constant 0 : index
    %105 = vector.load %arg30[%c0_71, %c0_72] : memref<32x160xf32, #tpu.memory_space<vmem>>, vector<32x32xf32>
    %106 = arith.mulf %91, %105 : vector<32x32xf32>
    %c0_73 = arith.constant 0 : index
    %c32_74 = arith.constant 32 : index
    %107 = vector.load %arg30[%c0_73, %c32_74] : memref<32x160xf32, #tpu.memory_space<vmem>>, vector<32x32xf32>
    %108 = arith.mulf %93, %107 : vector<32x32xf32>
    %109 = arith.addf %106, %108 : vector<32x32xf32>
    %c0_75 = arith.constant 0 : index
    %c64_76 = arith.constant 64 : index
    %110 = vector.load %arg30[%c0_75, %c64_76] : memref<32x160xf32, #tpu.memory_space<vmem>>, vector<32x32xf32>
    %111 = arith.mulf %95, %110 : vector<32x32xf32>
    %112 = arith.addf %109, %111 : vector<32x32xf32>
    %c0_77 = arith.constant 0 : index
    %c96_78 = arith.constant 96 : index
    %113 = vector.load %arg30[%c0_77, %c96_78] : memref<32x160xf32, #tpu.memory_space<vmem>>, vector<32x32xf32>
    %114 = arith.mulf %97, %113 : vector<32x32xf32>
    %115 = arith.addf %112, %114 : vector<32x32xf32>
    %c0_79 = arith.constant 0 : index
    %c128_80 = arith.constant 128 : index
    %116 = vector.load %arg30[%c0_79, %c128_80] : memref<32x160xf32, #tpu.memory_space<vmem>>, vector<32x32xf32>
    %117 = arith.mulf %99, %116 : vector<32x32xf32>
    %118 = arith.addf %115, %117 : vector<32x32xf32>
    %119 = arith.mulf %118, %104 : vector<32x32xf32>
    %c0_81 = arith.constant 0 : index
    %c0_82 = arith.constant 0 : index
    %120 = vector.load %arg3[%c0_81, %c0_82] : memref<32x32xf32, #tpu.memory_space<vmem>>, vector<32x32xf32>
    %c0_83 = arith.constant 0 : index
    %c0_84 = arith.constant 0 : index
    %c0_85 = arith.constant 0 : index
    %121 = vector.load %arg27[%c0_83, %c0_84, %c0_85] : memref<3x32x32xbf16, #tpu.memory_space<vmem>>, vector<1x32x32xbf16>
    %122 = vector.shape_cast %121 : vector<1x32x32xbf16> to vector<32x32xbf16>
    %123 = arith.truncf %119 : vector<32x32xf32> to vector<32x32xbf16>
    %cst_86 = arith.constant dense<0.000000e+00> : vector<32x32xf32>
    %124 = tpu.matmul %123, %122, %cst_86 {dimension_numbers = #tpu.dot_dimension_numbers<[1], [0], [0], [1], [0, 0, 1, 1], [], []>} : vector<32x32xbf16>, vector<32x32xbf16>, vector<32x32xf32> -> vector<32x32xf32>
    %c0_87 = arith.constant 0 : index
    %c0_88 = arith.constant 0 : index
    %c0_89 = arith.constant 0 : index
    %125 = vector.load %arg23[%c0_87, %c0_88, %c0_89] : memref<2x32x96xbf16, #tpu.memory_space<vmem>>, vector<1x32x96xbf16>
    %126 = vector.shape_cast %125 : vector<1x32x96xbf16> to vector<32x96xbf16>
    %127 = arith.truncf %119 : vector<32x32xf32> to vector<32x32xbf16>
    %cst_90 = arith.constant dense<0.000000e+00> : vector<32x96xf32>
    %128 = tpu.matmul %127, %126, %cst_90 {dimension_numbers = #tpu.dot_dimension_numbers<[1], [0], [0], [1], [0, 0, 1, 1], [], []>} : vector<32x32xbf16>, vector<32x96xbf16>, vector<32x96xf32> -> vector<32x96xf32>
    %c0_91 = arith.constant 0 : index
    %c0_92 = arith.constant 0 : index
    %c0_93 = arith.constant 0 : index
    %129 = vector.load %arg24[%c0_91, %c0_92, %c0_93] : memref<2x1x96xf32, #tpu.memory_space<vmem>>, vector<1x1x96xf32>
    %130 = vector.shape_cast %129 : vector<1x1x96xf32> to vector<1x96xf32>
    %131 = vector.broadcast %130 : vector<1x96xf32> to vector<32x96xf32>
    %132 = arith.addf %128, %131 : vector<32x96xf32>
    %c0_94 = arith.constant 0 : index
    %c0_95 = arith.constant 0 : index
    %133 = vector.load %arg32[%c0_94, %c0_95] : memref<32x96xf32, #tpu.memory_space<vmem>>, vector<32x96xf32>
    tpu.vector_store %arg32[%c0_94, %c0_95], %132 {strides = array<i32>} : memref<32x96xf32, #tpu.memory_space<vmem>>, vector<32x96xf32>,
    %c0_96 = arith.constant 0 : index
    %c0_97 = arith.constant 0 : index
    %134 = vector.load %arg32[%c0_96, %c0_97] : memref<32x96xf32, #tpu.memory_space<vmem>>, vector<32x32xf32>
    %c0_98 = arith.constant 0 : index
    %c32_99 = arith.constant 32 : index
    %135 = vector.load %arg32[%c0_98, %c32_99] : memref<32x96xf32, #tpu.memory_space<vmem>>, vector<32x32xf32>
    %c0_100 = arith.constant 0 : index
    %c64_101 = arith.constant 64 : index
    %136 = vector.load %arg32[%c0_100, %c64_101] : memref<32x96xf32, #tpu.memory_space<vmem>>, vector<32x32xf32>
    %137 = arith.truncf %134 : vector<32x32xf32> to vector<32x32xbf16>
    %138 = arith.truncf %135 : vector<32x32xf32> to vector<32x32xbf16>
    "tpu.trace_start"() <{level = 10 : i32, message = "md,nd->mn"}> : () -> ()
    %cst_102 = arith.constant dense<0.000000e+00> : vector<32x32xf32>
    %139 = tpu.matmul %137, %138, %cst_102 {dimension_numbers = #tpu.dot_dimension_numbers<[1], [1], [0], [0], [0, 0, 1, 0], [], []>} : vector<32x32xbf16>, vector<32x32xbf16>, vector<32x32xf32> -> vector<32x32xf32>
    "tpu.trace_stop"() : () -> ()
    %cst_103 = arith.constant 0.176776692 : f32
    %140 = vector.broadcast %cst_103 : f32 to vector<32x32xf32>
    %141 = arith.mulf %139, %140 : vector<32x32xf32>
    %142 = arith.addf %141, %120 : vector<32x32xf32>
    %cst_104 = arith.constant dense<0xFF800000> : vector<32xf32>
    %143 = vector.multi_reduction <maximumf>, %142, %cst_104 [1] : vector<32x32xf32> to vector<32xf32>
    %144 = vector.shape_cast %143 : vector<32xf32> to vector<32x1xf32>
    %145 = vector.broadcast %144 : vector<32x1xf32> to vector<32x32xf32>
    %146 = arith.subf %142, %145 : vector<32x32xf32>
    %147 = math.exp %146 : vector<32x32xf32>
    %cst_105 = arith.constant dense<0.000000e+00> : vector<32xf32>
    %148 = vector.multi_reduction <add>, %147, %cst_105 [1] : vector<32x32xf32> to vector<32xf32>
    %149 = vector.shape_cast %148 : vector<32xf32> to vector<32x1xf32>
    %150 = tpu.reciprocal %149 {approx = true} : vector<32x1xf32> -> vector<32x1xf32>
    %151 = vector.broadcast %150 : vector<32x1xf32> to vector<32x32xf32>
    %152 = arith.mulf %147, %151 : vector<32x32xf32>
    %153 = arith.truncf %152 : vector<32x32xf32> to vector<32x32xbf16>
    %154 = arith.truncf %136 : vector<32x32xf32> to vector<32x32xbf16>
    %cst_106 = arith.constant dense<0.000000e+00> : vector<32x32xf32>
    %155 = tpu.matmul %153, %154, %cst_106 {dimension_numbers = #tpu.dot_dimension_numbers<[1], [0], [0], [1], [0, 0, 1, 1], [], []>} : vector<32x32xbf16>, vector<32x32xbf16>, vector<32x32xf32> -> vector<32x32xf32>
    %c0_107 = arith.constant 0 : index
    %c0_108 = arith.constant 0 : index
    %c0_109 = arith.constant 0 : index
    %156 = vector.load %arg25[%c0_107, %c0_108, %c0_109] : memref<2x32x32xbf16, #tpu.memory_space<vmem>>, vector<1x32x32xbf16>
    %157 = vector.shape_cast %156 : vector<1x32x32xbf16> to vector<32x32xbf16>
    %158 = arith.truncf %155 : vector<32x32xf32> to vector<32x32xbf16>
    %cst_110 = arith.constant dense<0.000000e+00> : vector<32x32xf32>
    %159 = tpu.matmul %158, %157, %cst_110 {dimension_numbers = #tpu.dot_dimension_numbers<[1], [0], [0], [1], [0, 0, 1, 1], [], []>} : vector<32x32xbf16>, vector<32x32xbf16>, vector<32x32xf32> -> vector<32x32xf32>
    %160 = arith.addf %119, %159 : vector<32x32xf32>
    %c0_111 = arith.constant 0 : index
    %c0_112 = arith.constant 0 : index
    %c0_113 = arith.constant 0 : index
    %161 = vector.load %arg26[%c0_111, %c0_112, %c0_113] : memref<2x1x32xf32, #tpu.memory_space<vmem>>, vector<1x1x32xf32>
    %162 = vector.shape_cast %161 : vector<1x1x32xf32> to vector<1x32xf32>
    %163 = vector.broadcast %162 : vector<1x32xf32> to vector<32x32xf32>
    %164 = arith.addf %160, %163 : vector<32x32xf32>
    %c1 = arith.constant 1 : index
    %c0_114 = arith.constant 0 : index
    %c0_115 = arith.constant 0 : index
    %165 = vector.load %arg27[%c1, %c0_114, %c0_115] : memref<3x32x32xbf16, #tpu.memory_space<vmem>>, vector<1x32x32xbf16>
    %166 = vector.shape_cast %165 : vector<1x32x32xbf16> to vector<32x32xbf16>
    %167 = arith.truncf %164 : vector<32x32xf32> to vector<32x32xbf16>
    %cst_116 = arith.constant dense<0.000000e+00> : vector<32x32xf32>
    %168 = tpu.matmul %167, %166, %cst_116 {dimension_numbers = #tpu.dot_dimension_numbers<[1], [0], [0], [1], [0, 0, 1, 1], [], []>} : vector<32x32xbf16>, vector<32x32xbf16>, vector<32x32xf32> -> vector<32x32xf32>
    %169 = arith.addf %124, %168 : vector<32x32xf32>
    %c1_117 = arith.constant 1 : index
    %c0_118 = arith.constant 0 : index
    %c0_119 = arith.constant 0 : index
    %170 = vector.load %arg23[%c1_117, %c0_118, %c0_119] : memref<2x32x96xbf16, #tpu.memory_space<vmem>>, vector<1x32x96xbf16>
    %171 = vector.shape_cast %170 : vector<1x32x96xbf16> to vector<32x96xbf16>
    %172 = arith.truncf %164 : vector<32x32xf32> to vector<32x32xbf16>
    %cst_120 = arith.constant dense<0.000000e+00> : vector<32x96xf32>
    %173 = tpu.matmul %172, %171, %cst_120 {dimension_numbers = #tpu.dot_dimension_numbers<[1], [0], [0], [1], [0, 0, 1, 1], [], []>} : vector<32x32xbf16>, vector<32x96xbf16>, vector<32x96xf32> -> vector<32x96xf32>
    %c1_121 = arith.constant 1 : index
    %c0_122 = arith.constant 0 : index
    %c0_123 = arith.constant 0 : index
    %174 = vector.load %arg24[%c1_121, %c0_122, %c0_123] : memref<2x1x96xf32, #tpu.memory_space<vmem>>, vector<1x1x96xf32>
    %175 = vector.shape_cast %174 : vector<1x1x96xf32> to vector<1x96xf32>
    %176 = vector.broadcast %175 : vector<1x96xf32> to vector<32x96xf32>
    %177 = arith.addf %173, %176 : vector<32x96xf32>
    %c0_124 = arith.constant 0 : index
    %c0_125 = arith.constant 0 : index
    %178 = vector.load %arg32[%c0_124, %c0_125] : memref<32x96xf32, #tpu.memory_space<vmem>>, vector<32x96xf32>
    tpu.vector_store %arg32[%c0_124, %c0_125], %177 {strides = array<i32>} : memref<32x96xf32, #tpu.memory_space<vmem>>, vector<32x96xf32>,
    %c0_126 = arith.constant 0 : index
    %c0_127 = arith.constant 0 : index
    %179 = vector.load %arg32[%c0_126, %c0_127] : memref<32x96xf32, #tpu.memory_space<vmem>>, vector<32x32xf32>
    %c0_128 = arith.constant 0 : index
    %c32_129 = arith.constant 32 : index
    %180 = vector.load %arg32[%c0_128, %c32_129] : memref<32x96xf32, #tpu.memory_space<vmem>>, vector<32x32xf32>
    %c0_130 = arith.constant 0 : index
    %c64_131 = arith.constant 64 : index
    %181 = vector.load %arg32[%c0_130, %c64_131] : memref<32x96xf32, #tpu.memory_space<vmem>>, vector<32x32xf32>
    %182 = arith.truncf %179 : vector<32x32xf32> to vector<32x32xbf16>
    %183 = arith.truncf %180 : vector<32x32xf32> to vector<32x32xbf16>
    "tpu.trace_start"() <{level = 10 : i32, message = "md,nd->mn"}> : () -> ()
    %cst_132 = arith.constant dense<0.000000e+00> : vector<32x32xf32>
    %184 = tpu.matmul %182, %183, %cst_132 {dimension_numbers = #tpu.dot_dimension_numbers<[1], [1], [0], [0], [0, 0, 1, 0], [], []>} : vector<32x32xbf16>, vector<32x32xbf16>, vector<32x32xf32> -> vector<32x32xf32>
    "tpu.trace_stop"() : () -> ()
    %cst_133 = arith.constant 0.176776692 : f32
    %185 = vector.broadcast %cst_133 : f32 to vector<32x32xf32>
    %186 = arith.mulf %184, %185 : vector<32x32xf32>
    %187 = arith.addf %186, %120 : vector<32x32xf32>
    %cst_134 = arith.constant dense<0xFF800000> : vector<32xf32>
    %188 = vector.multi_reduction <maximumf>, %187, %cst_134 [1] : vector<32x32xf32> to vector<32xf32>
    %189 = vector.shape_cast %188 : vector<32xf32> to vector<32x1xf32>
    %190 = vector.broadcast %189 : vector<32x1xf32> to vector<32x32xf32>
    %191 = arith.subf %187, %190 : vector<32x32xf32>
    %192 = math.exp %191 : vector<32x32xf32>
    %cst_135 = arith.constant dense<0.000000e+00> : vector<32xf32>
    %193 = vector.multi_reduction <add>, %192, %cst_135 [1] : vector<32x32xf32> to vector<32xf32>
    %194 = vector.shape_cast %193 : vector<32xf32> to vector<32x1xf32>
    %195 = tpu.reciprocal %194 {approx = true} : vector<32x1xf32> -> vector<32x1xf32>
    %196 = vector.broadcast %195 : vector<32x1xf32> to vector<32x32xf32>
    %197 = arith.mulf %192, %196 : vector<32x32xf32>
    %198 = arith.truncf %197 : vector<32x32xf32> to vector<32x32xbf16>
    %199 = arith.truncf %181 : vector<32x32xf32> to vector<32x32xbf16>
    %cst_136 = arith.constant dense<0.000000e+00> : vector<32x32xf32>
    %200 = tpu.matmul %198, %199, %cst_136 {dimension_numbers = #tpu.dot_dimension_numbers<[1], [0], [0], [1], [0, 0, 1, 1], [], []>} : vector<32x32xbf16>, vector<32x32xbf16>, vector<32x32xf32> -> vector<32x32xf32>
    %c1_137 = arith.constant 1 : index
    %c0_138 = arith.constant 0 : index
    %c0_139 = arith.constant 0 : index
    %201 = vector.load %arg25[%c1_137, %c0_138, %c0_139] : memref<2x32x32xbf16, #tpu.memory_space<vmem>>, vector<1x32x32xbf16>
    %202 = vector.shape_cast %201 : vector<1x32x32xbf16> to vector<32x32xbf16>
    %203 = arith.truncf %200 : vector<32x32xf32> to vector<32x32xbf16>
    %cst_140 = arith.constant dense<0.000000e+00> : vector<32x32xf32>
    %204 = tpu.matmul %203, %202, %cst_140 {dimension_numbers = #tpu.dot_dimension_numbers<[1], [0], [0], [1], [0, 0, 1, 1], [], []>} : vector<32x32xbf16>, vector<32x32xbf16>, vector<32x32xf32> -> vector<32x32xf32>
    %205 = arith.addf %164, %204 : vector<32x32xf32>
    %c1_141 = arith.constant 1 : index
    %c0_142 = arith.constant 0 : index
    %c0_143 = arith.constant 0 : index
    %206 = vector.load %arg26[%c1_141, %c0_142, %c0_143] : memref<2x1x32xf32, #tpu.memory_space<vmem>>, vector<1x1x32xf32>
    %207 = vector.shape_cast %206 : vector<1x1x32xf32> to vector<1x32xf32>
    %208 = vector.broadcast %207 : vector<1x32xf32> to vector<32x32xf32>
    %209 = arith.addf %205, %208 : vector<32x32xf32>
    %c2 = arith.constant 2 : index
    %c0_144 = arith.constant 0 : index
    %c0_145 = arith.constant 0 : index
    %210 = vector.load %arg27[%c2, %c0_144, %c0_145] : memref<3x32x32xbf16, #tpu.memory_space<vmem>>, vector<1x32x32xbf16>
    %211 = vector.shape_cast %210 : vector<1x32x32xbf16> to vector<32x32xbf16>
    %212 = arith.truncf %209 : vector<32x32xf32> to vector<32x32xbf16>
    %cst_146 = arith.constant dense<0.000000e+00> : vector<32x32xf32>
    %213 = tpu.matmul %212, %211, %cst_146 {dimension_numbers = #tpu.dot_dimension_numbers<[1], [0], [0], [1], [0, 0, 1, 1], [], []>} : vector<32x32xbf16>, vector<32x32xbf16>, vector<32x32xf32> -> vector<32x32xf32>
    %214 = arith.addf %169, %213 : vector<32x32xf32>
    %c0_147 = arith.constant 0 : index
    %c0_148 = arith.constant 0 : index
    %215 = vector.load %arg28[%c0_147, %c0_148] : memref<1x32xf32, #tpu.memory_space<vmem>>, vector<1x32xf32>
    %216 = vector.broadcast %215 : vector<1x32xf32> to vector<32x32xf32>
    %217 = arith.addf %214, %216 : vector<32x32xf32>
    %cst_149 = arith.constant 0.000000e+00 : f32
    %218 = vector.broadcast %cst_149 : f32 to vector<32x32xf32>
    %219 = arith.maximumf %217, %218 : vector<32x32xf32>
    %cst_150 = arith.constant 9.99999997E-7 : f32
    %220 = vector.broadcast %cst_150 : f32 to vector<32x32xf32>
    %221 = arith.maximumf %219, %220 : vector<32x32xf32>
    %222 = arith.mulf %221, %221 : vector<32x32xf32>
    %223 = arith.mulf %222, %221 : vector<32x32xf32>
    %cst_151 = arith.constant dense<0.000000e+00> : vector<2x32xf32>
    %224 = tpu.matmul %0, %223, %cst_151 {dimension_numbers = #tpu.dot_dimension_numbers<[1], [0], [0], [1], [0, 0, 1, 1], [], []>} : vector<2x32xf32>, vector<32x32xf32>, vector<2x32xf32> -> vector<2x32xf32>
    %cst_152 = arith.constant 0.333333343 : f32
    %225 = vector.broadcast %cst_152 : f32 to vector<2x32xf32>
    %226 = math.powf %224, %225 : vector<2x32xf32>
    %c0_153 = arith.constant 0 : index
    %c0_154 = arith.constant 0 : index
    %227 = vector.load %arg29[%c0_153, %c0_154] : memref<2x32xf32, #tpu.memory_space<vmem>>, vector<2x32xf32>
    tpu.vector_store %arg29[%c0_153, %c0_154], %226 {strides = array<i32>} : memref<2x32xf32, #tpu.memory_space<vmem>>, vector<2x32xf32>,
    return
  }
}

</mosaic_0001>

<bundles_post_ra>
// kernel: transloc3d_forward.1
= control target key start
LH: loop header
LB: loop body
LE: loop exit
PB: predicated region body
PF: predicated region fallthrough
CT: control target
= control target key end

     0   :  { %s4108_s6 = smov 1   ;;  %s4109_s10 = smov 2   ;;  %s4895_s0 = inlined_call_operand.smem [shape: u32[30], index: -1, kind: input, shape index: {}] }
   0x1   :  { %s4174_s5 = sld [smem:[%s4895_s0]]   ;;  %s4110_s14 = smov 3  }
   0x2   :  { %s4179_s9 = sld [smem:[%s4895_s0 + %s4108_s6]]   ;;  %s4111_s18 = smov 4  }
   0x3   :  { %s4184_s13 = sld [smem:[%s4895_s0 + %s4109_s10]]   ;;  %s4112_s22 = smov 5  }
   0x4   :  { %s4189_s17 = sld [smem:[%s4895_s0 + %s4110_s14]]   ;;  %s4113_s26 = smov 6  }
   0x5   :  { %s4194_s21 = sld [smem:[%s4895_s0 + %s4111_s18]]   ;;  %s4114_s30 = smov 7  }
   0x6   :  { %s4199_s25 = sld [smem:[%s4895_s0 + %s4112_s22]]   ;;  %s4115_s4 = smov 8  }
   0x7   :  { %4905 = sst [smem:[#allocation50_spill]] %s4174_s5  ;;  %s4116_s10 = smov 9  }
   0x8   :  { %s4204_s29 = sld [smem:[%s4895_s0 + %s4113_s26]]   ;;  %s4117_s15 = smov 10  }
   0x9   :  { %s4209_s3 = sld [smem:[%s4895_s0 + %s4114_s30]]   ;;  %s4118_s20 = smov 11  }
   0xa   :  { %s4214_s8 = sld [smem:[%s4895_s0 + %s4115_s4]]   ;;  %s4119_s26 = smov 12  }
   0xb   :  { %s4219_s14 = sld [smem:[%s4895_s0 + %s4116_s10]]   ;;  %s4120_s1 = smov 13  }
   0xc   :  { %s4224_s19 = sld [smem:[%s4895_s0 + %s4117_s15]]   ;;  %s4121_s7 = smov 14  }
   0xd   :  { %s4229_s24 = sld [smem:[%s4895_s0 + %s4118_s20]]   ;;  %s4122_s15 = smov 15  }
   0xe   :  { %s4234_s30 = sld [smem:[%s4895_s0 + %s4119_s26]]   ;;  %s4123_s22 = smov 16  }
   0xf   :  { %s4239_s6 = sld [smem:[%s4895_s0 + %s4120_s1]]   ;;  %s4124_s28 = smov 17  }
  0x10   :  { %4906 = sst [smem:[#allocation51_spill]] %s4214_s8 }
  0x11   :  { %s4244_s12 = sld [smem:[%s4895_s0 + %s4121_s7]]   ;;  %s4125_s7 = smov 18  }
  0x12   :  { %s4249_s20 = sld [smem:[%s4895_s0 + %s4122_s15]]   ;;  %s4126_s15 = smov 19  }
  0x13   :  { %s4254_s27 = sld [smem:[%s4895_s0 + %s4123_s22]]   ;;  %s4127_s22 = smov 20  }
  0x14   :  { %4907 = sst [smem:[#allocation52_spill]] %s4234_s30 }
  0x15   :  { %s4259_s4 = sld [smem:[%s4895_s0 + %s4124_s28]]   ;;  %s4128_s28 = smov 21  }
  0x16   :  { %s4264_s8 = sld [smem:[%s4895_s0 + %s4125_s7]]   ;;  %s4129_s7 = smov 22  }
  0x17   :  { %4908 = sst [smem:[#allocation53_spill]] %s4244_s12 }
  0x18   :  { %4909 = sst [smem:[#allocation54_spill]] %s4249_s20 }
  0x19   :  { %s4269_s20 = sld [smem:[%s4895_s0 + %s4126_s15]]   ;;  %s4130_s15 = smov 23  }
  0x1a   :  { %s4274_s5 = sld [smem:[%s4895_s0 + %s4127_s22]]   ;;  %s4131_s22 = smov 24  }
  0x1b   :  { %4910 = sst [smem:[#allocation55_spill]] %s4259_s4 }
  0x1c   :  { %4911 = sst [smem:[#allocation56_spill]] %s4264_s8 }
  0x1d   :  { %s4279_s4 = sld [smem:[%s4895_s0 + %s4128_s28]]   ;;  %s4132_s28 = smov 25  }
  0x1e   :  { %s4284_s8 = sld [smem:[%s4895_s0 + %s4129_s7]]   ;;  %s4133_s7 = smov 26  }
  0x1f   :  { %s4289_s12 = sld [smem:[%s4895_s0 + %s4130_s15]]   ;;  %s4134_s15 = smov 27  }
  0x20   :  { %4912 = sst [smem:[#allocation57_spill]] %s4274_s5 }
  0x21   :  { %s4294_s5 = sld [smem:[%s4895_s0 + %s4131_s22]]   ;;  %s4135_s22 = smov 28  }
  0x22   :  { %s4299_s30 = sld [smem:[%s4895_s0 + %s4132_s28]]   ;;  %s4136_s28 = smov 29  }
  0x24   :  { %4913 = sst [smem:[#allocation58_spill]] %s4284_s8 }
  0x25   :  { %4914 = sst [smem:[#allocation59_spill]] %s4289_s12 }
  0x26   :  { %s4304_s8 = sld [smem:[%s4895_s0 + %s4133_s7]]  }
  0x27   :  { %4915 = sst [smem:[#allocation60_spill]] %s4294_s5 }
  0x28   :  { %4916 = sst [smem:[#allocation61_spill]] %s4299_s30 }
  0x29   :  { %s4309_s12 = sld [smem:[%s4895_s0 + %s4134_s15]]  }
  0x2a   :  { %s4314_s5 = sld [smem:[%s4895_s0 + %s4135_s22]]  }
  0x2b   :  { %s4319_s30 = sld [smem:[%s4895_s0 + %s4136_s28]]  }
  0x2c   :  { %64 = vsyncpa [#allocation6], 0 }
  0x2d   :  { %65 = vsyncpa [#allocation9], 0 }
  0x2e   :  { %66 = vsyncpa [#allocation12], 0 }
  0x2f   :  { %67 = vsyncpa [#allocation15], 0 }
  0x30   :  { %68 = vsyncpa [#allocation18], 0 }
  0x31   :  { %69 = vsyncpa [#allocation21], 0 }
  0x32   :  { %70 = vsyncpa [#allocation24], 0 }
  0x33   :  { %71 = vsyncpa [#allocation27], 0 }
  0x34   :  { %72 = vsyncpa [#allocation30], 0 }
  0x35   :  { %73 = vsyncpa [#allocation33], 0 }
  0x36   :  { %74 = vsyncpa [#allocation36], 0  ;;  %s93_s7 = sshll.u32 %s4184_s13, 4  ;;  %s94_s7 = int_to_ptr.hbm [resolvable:$true] %s93_s7 }
  0x37   :  { %75 = vsyncpa [#allocation7], 0  ;;  %s4137_s0 = smov [#allocation8]   ;;  %s120_s11 = sshll.u32 %s4194_s21, 4  ;;  %s121_s11 = int_to_ptr.hbm [resolvable:$true] %s120_s11 }
  0x38   :  { %s95_s10 = sshll.u32 %s4137_s0, 4  ;;  %s3580_s15 = sshra.s32 %s94_s7, 4  ;;  %s96_s10 = int_to_ptr.vmem [resolvable:$true] %s95_s10  ;;  %s3581_s15 = int_to_ptr.hbm [resolvable:$true] %s3580_s15 }
  0x39   :  { %s3582_s16 = scalar_lea.hbm %s3581_s15, 32  ;;  %s3584_s18 = scalar_lea.hbm %s4184_s13, 32 }
  0x3a   :  { %p3583_p0 = scmp.ne.s32.totalorder %s3581_s15, %s3582_s16  ;;  %p3585_p1 = scmp.lt.s32.totalorder %s3581_s15, %s4184_s13 }
  0x3b   :  { %p3586_p2 = scmp.lt.s32.totalorder %s3584_s18, %s3582_s16 }
  0x3d   :  { %p3587_p3 = por %p3586_p2, %p3585_p1 }
  0x3f   :  { %p3588_p4 = pnand %p3587_p3, %p3583_p0 }
  0x41   :  { %3591 = shalt.err (!%p3588_p4)
}
  0x42   :  { %s4138_s22 = smov 128   ;;  %s4139_s23 = smov 8  }
  0x43   :  { %101 = dma.hbm_to_vmem [thread:$0]  %s94_s7, 512, %s96_s10, [#allocation9], %s4138_s22, %s4138_s22, %s4139_s23  }
  0x44   :  { %s4140_s26 = smov [#allocation11]   ;;  %s141_s1 = sshll.u32 %s4204_s29, 4  ;;  %s4329_s1 = int_to_ptr.hbm [resolvable:$true] %s141_s1 }
  0x45   :  { %s122_s28 = sshll.u32 %s4140_s26, 4  ;;  %s3604_s13 = sshra.s32 %s121_s11, 4  ;;  %s123_s28 = int_to_ptr.vmem [resolvable:$true] %s122_s28  ;;  %s3605_s13 = int_to_ptr.hbm [resolvable:$true] %s3604_s13 }
  0x46   :  { %s3606_s2 = scalar_lea.hbm %s3605_s13, 2  ;;  %s3608_s0 = scalar_lea.hbm %s4194_s21, 2 }
  0x47   :  { %p3607_p5 = scmp.ne.s32.totalorder %s3605_s13, %s3606_s2  ;;  %p3609_p6 = scmp.lt.s32.totalorder %s3605_s13, %s4194_s21 }
  0x48   :  { %p3610_p7 = scmp.lt.s32.totalorder %s3608_s0, %s3606_s2 }
  0x4a   :  { %p3611_p8 = por %p3610_p7, %p3609_p6 }
  0x4c   :  { %p3612_p9 = pnand %p3611_p8, %p3607_p5 }
  0x4e   :  { %3615 = shalt.err (!%p3612_p9)
}
  0x4f   :  { %125 = dma.hbm_to_vmem [thread:$0]  %s121_s11, 32, %s123_s28, [#allocation12]  }
  0x50   :  { %s4141_s7 = smov [#allocation14]   ;;  %s168_s15 = sshll.u32 %s4219_s14, 4  ;;  %s169_s15 = int_to_ptr.hbm [resolvable:$true] %s168_s15 }
  0x51   :  { %s143_s10 = sshll.u32 %s4141_s7, 4  ;;  %s3628_s16 = sshra.s32 %s4329_s1, 4  ;;  %s144_s10 = int_to_ptr.vmem [resolvable:$true] %s143_s10  ;;  %s3629_s16 = int_to_ptr.hbm [resolvable:$true] %s3628_s16 }
  0x52   :  { %s3630_s18 = scalar_lea.hbm %s3629_s16, 16  ;;  %s3632_s26 = scalar_lea.hbm %s4204_s29, 16 }
  0x53   :  { %p3631_p10 = scmp.ne.s32.totalorder %s3629_s16, %s3630_s18  ;;  %p3633_p11 = scmp.lt.s32.totalorder %s3629_s16, %s4204_s29 }
  0x54   :  { %p3634_p12 = scmp.lt.s32.totalorder %s3632_s26, %s3630_s18 }
  0x56   :  { %p3635_p13 = por %p3634_p12, %p3633_p11 }
  0x58   :  { %p3636_p0 = pnand %p3635_p13, %p3631_p10 }
  0x5a   :  { %3639 = shalt.err (!%p3636_p0)
}
  0x5b   :  { %s4142_s21 = smov 64   ;;  %s4143_s11 = smov 4  }
  0x5c   :  { %149 = dma.hbm_to_vmem [thread:$0]  %s4329_s1, 256, %s144_s10, [#allocation15], %s4142_s21, %s4142_s21, %s4143_s11  }
  0x5d   :  { %s4144_s28 = smov [#allocation17]   ;;  %s192_s2 = sshll.u32 %s4229_s24, 4  ;;  %s193_s2 = int_to_ptr.hbm [resolvable:$true] %s192_s2 }
  0x5e   :  { %s170_s13 = sshll.u32 %s4144_s28, 4  ;;  %s3652_s29 = sshra.s32 %s169_s15, 4  ;;  %s171_s13 = int_to_ptr.vmem [resolvable:$true] %s170_s13  ;;  %s3653_s29 = int_to_ptr.hbm [resolvable:$true] %s3652_s29 }
  0x5f   :  { %s3654_s0 = scalar_lea.hbm %s3653_s29, 1  ;;  %s3656_s7 = scalar_lea.hbm %s4219_s14, 1 }
  0x60   :  { %p3655_p1 = scmp.ne.s32.totalorder %s3653_s29, %s3654_s0  ;;  %p3657_p2 = scmp.lt.s32.totalorder %s3653_s29, %s4219_s14 }
  0x61   :  { %p3658_p3 = scmp.lt.s32.totalorder %s3656_s7, %s3654_s0 }
  0x63   :  { %p3659_p4 = por %p3658_p3, %p3657_p2 }
  0x65   :  { %p3660_p5 = pnand %p3659_p4, %p3655_p1 }
  0x67   :  { %3663 = shalt.err (!%p3660_p5)
}
  0x68   :  { %173 = dma.hbm_to_vmem [thread:$0]  %s169_s15, 16, %s171_s13, [#allocation18]  }
  0x69   :  { %s215_s1 = sshll.u32 %s4239_s6, 4  ;;  %s4145_s10 = smov [#allocation20]   ;;  %s4345_s1 = int_to_ptr.hbm [resolvable:$true] %s215_s1 }
  0x6a   :  { %s194_s16 = sshll.u32 %s4145_s10, 4  ;;  %s3676_s18 = sshra.s32 %s193_s2, 4  ;;  %s195_s16 = int_to_ptr.vmem [resolvable:$true] %s194_s16  ;;  %s3677_s18 = int_to_ptr.hbm [resolvable:$true] %s3676_s18 }
  0x6b   :  { %s3678_s26 = scalar_lea.hbm %s3677_s18, 1  ;;  %s3680_s28 = scalar_lea.hbm %s4229_s24, 1 }
  0x6c   :  { %p3679_p6 = scmp.ne.s32.totalorder %s3677_s18, %s3678_s26  ;;  %p3681_p7 = scmp.lt.s32.totalorder %s3677_s18, %s4229_s24 }
  0x6d   :  { %p3682_p8 = scmp.lt.s32.totalorder %s3680_s28, %s3678_s26 }
  0x6f   :  { %p3683_p9 = por %p3682_p8, %p3681_p7 }
  0x71   :  { %p3684_p10 = pnand %p3683_p9, %p3679_p6 }
  0x73   :  { %3687 = shalt.err (!%p3684_p10)
}
  0x74   :  { %197 = dma.hbm_to_vmem [thread:$0]  %s193_s2, 16, %s195_s16, [#allocation21]  }
  0x75   :  { %s4146_s14 = smov [#allocation23]   ;;  %s243_s13 = sshll.u32 %s4254_s27, 4  ;;  %s4350_s13 = int_to_ptr.hbm [resolvable:$true] %s243_s13 }
  0x76   :  { %s217_s15 = sshll.u32 %s4146_s14, 4  ;;  %s3700_s29 = sshra.s32 %s4345_s1, 4  ;;  %s218_s15 = int_to_ptr.vmem [resolvable:$true] %s217_s15  ;;  %s3701_s29 = int_to_ptr.hbm [resolvable:$true] %s3700_s29 }
  0x77   :  { %s3702_s0 = scalar_lea.hbm %s3701_s29, 128  ;;  %s3704_s24 = scalar_lea.hbm %s4239_s6, 128 }
  0x78   :  { %p3703_p11 = scmp.ne.s32.totalorder %s3701_s29, %s3702_s0  ;;  %p3705_p12 = scmp.lt.s32.totalorder %s3701_s29, %s4239_s6 }
  0x79   :  { %p3706_p13 = scmp.lt.s32.totalorder %s3704_s24, %s3702_s0 }
  0x7b   :  { %p3707_p0 = por %p3706_p13, %p3705_p12 }
  0x7d   :  { %p3708_p1 = pnand %p3707_p0, %p3703_p11 }
  0x7f   :  { %3711 = shalt.err (!%p3708_p1)
}
  0x80   :  { %223 = dma.hbm_to_vmem [thread:$0]  %s4345_s1, 2048, %s218_s15, [#allocation24], %s4138_s22, %s4138_s22, %s4139_s23  }
  0x81   :  { %s271_s2 = sshll.u32 %s4269_s20, 4  ;;  %s4147_s7 = smov [#allocation26]   ;;  %s4360_s2 = int_to_ptr.hbm [resolvable:$true] %s271_s2 }
  0x82   :  { %s245_s10 = sshll.u32 %s4147_s7, 4  ;;  %s3724_s6 = sshra.s32 %s4350_s13, 4  ;;  %s246_s10 = int_to_ptr.vmem [resolvable:$true] %s245_s10  ;;  %s3725_s6 = int_to_ptr.hbm [resolvable:$true] %s3724_s6 }
  0x83   :  { %s3726_s16 = scalar_lea.hbm %s3725_s6, 160  ;;  %s3728_s18 = scalar_lea.hbm %s4254_s27, 160 }
  0x84   :  { %p3727_p2 = scmp.ne.s32.totalorder %s3725_s6, %s3726_s16  ;;  %p3729_p3 = scmp.lt.s32.totalorder %s3725_s6, %s4254_s27 }
  0x85   :  { %p3730_p4 = scmp.lt.s32.totalorder %s3728_s18, %s3726_s16 }
  0x87   :  { %p3731_p5 = por %p3730_p4, %p3729_p3 }
  0x89   :  { %p3732_p6 = pnand %p3731_p5, %p3727_p2 }
  0x8b   :  { %3735 = shalt.err (!%p3732_p6)
}
  0x8c   :  { %251 = dma.hbm_to_vmem [thread:$0]  %s4350_s13, 2560, %s246_s10, [#allocation27], %s4138_s22, %s4138_s22, %s4139_s23  }
  0x8d   :  { %s4148_s1 = smov [#allocation29]   ;;  %s295_s28 = sshll.u32 %s4279_s4, 4  ;;  %s4370_s28 = int_to_ptr.hbm [resolvable:$true] %s295_s28 }
  0x8e   :  { %s273_s26 = sshll.u32 %s4148_s1, 4  ;;  %s3748_s27 = sshra.s32 %s4360_s2, 4  ;;  %s274_s26 = int_to_ptr.vmem [resolvable:$true] %s273_s26  ;;  %s3749_s27 = int_to_ptr.hbm [resolvable:$true] %s3748_s27 }
  0x8f   :  { %s3750_s14 = scalar_lea.hbm %s3749_s27, 80  ;;  %s3752_s15 = scalar_lea.hbm %s4269_s20, 80 }
  0x90   :  { %p3751_p7 = scmp.ne.s32.totalorder %s3749_s27, %s3750_s14  ;;  %p3753_p8 = scmp.lt.s32.totalorder %s3749_s27, %s4269_s20 }
  0x91   :  { %p3754_p9 = scmp.lt.s32.totalorder %s3752_s15, %s3750_s14 }
  0x93   :  { %p3755_p10 = por %p3754_p9, %p3753_p8 }
  0x95   :  { %p3756_p11 = pnand %p3755_p10, %p3751_p7 }
  0x97   :  { %3759 = shalt.err (!%p3756_p11)
}
  0x98   :  { %279 = dma.hbm_to_vmem [thread:$0]  %s4360_s2, 1280, %s274_s26, [#allocation30], %s4142_s21, %s4142_s21, %s4143_s11  }
  0x99   :  { %s83_s13 = sshll.u32 %s4179_s9, 4  ;;  %s4149_s29 = smov [#allocation32]   ;;  %s84_s13 = int_to_ptr.hbm [resolvable:$true] %s83_s13 }
  0x9a   :  { %s297_s0 = sshll.u32 %s4149_s29, 4  ;;  %s3772_s24 = sshra.s32 %s4370_s28, 4  ;;  %s298_s0 = int_to_ptr.vmem [resolvable:$true] %s297_s0  ;;  %s3773_s24 = int_to_ptr.hbm [resolvable:$true] %s3772_s24 }
  0x9b   :  { %s3774_s20 = scalar_lea.hbm %s3773_s24, 32  ;;  %s3776_s7 = scalar_lea.hbm %s4279_s4, 32 }
  0x9c   :  { %p3775_p12 = scmp.ne.s32.totalorder %s3773_s24, %s3774_s20  ;;  %p3777_p13 = scmp.lt.s32.totalorder %s3773_s24, %s4279_s4 }
  0x9d   :  { %p3778_p0 = scmp.lt.s32.totalorder %s3776_s7, %s3774_s20 }
  0x9f   :  { %p3779_p1 = por %p3778_p0, %p3777_p13 }
  0xa1   :  { %p3780_p2 = pnand %p3779_p1, %p3775_p12 }
  0xa3   :  { %3783 = shalt.err (!%p3780_p2)
}
  0xa4   :  { %303 = dma.hbm_to_vmem [thread:$0]  %s4370_s28, 512, %s298_s0, [#allocation33], %s4138_s22, %s4138_s22, %s4139_s23  }
  0xa5   :  { %s4150_s2 = smov [#allocation5]   ;;  %s106_s6 = sshll.u32 %s4189_s17, 4  ;;  %s4388_s6 = int_to_ptr.hbm [resolvable:$true] %s106_s6 }
  0xa6   :  { %s85_s10 = sshll.u32 %s4150_s2, 4  ;;  %s3796_s16 = sshra.s32 %s84_s13, 4  ;;  %s86_s10 = int_to_ptr.vmem [resolvable:$true] %s85_s10  ;;  %s3797_s16 = int_to_ptr.hbm [resolvable:$true] %s3796_s16 }
  0xa7   :  { %s3798_s4 = scalar_lea.hbm %s3797_s16, 2  ;;  %s3800_s18 = scalar_lea.hbm %s4179_s9, 2 }
  0xa8   :  { %p3799_p3 = scmp.ne.s32.totalorder %s3797_s16, %s3798_s4  ;;  %p3801_p4 = scmp.lt.s32.totalorder %s3797_s16, %s4179_s9 }
  0xa9   :  { %p3802_p5 = scmp.lt.s32.totalorder %s3800_s18, %s3798_s4 }
  0xab   :  { %p3803_p6 = por %p3802_p5, %p3801_p4 }
  0xad   :  { %p3804_p7 = pnand %p3803_p6, %p3799_p3 }
  0xaf   :  { %3807 = shalt.err (!%p3804_p7)
}
  0xb0   :  { %88 = dma.hbm_to_vmem [thread:$0]  %s84_s13, 32, %s86_s10, [#allocation6]  }
  0xb1   :  { %s131_s1 = sshll.u32 %s4199_s25, 4  ;;  %s4151_s26 = smov [#allocation10]   ;;  %s132_s1 = int_to_ptr.hbm [resolvable:$true] %s131_s1 }
  0xb2   :  { %s108_s28 = sshll.u32 %s4151_s26, 4  ;;  %s3820_s27 = sshra.s32 %s4388_s6, 4  ;;  %s109_s28 = int_to_ptr.vmem [resolvable:$true] %s108_s28  ;;  %s3821_s27 = int_to_ptr.hbm [resolvable:$true] %s3820_s27 }
  0xb3   :  { %s3822_s14 = scalar_lea.hbm %s3821_s27, 32  ;;  %s3824_s15 = scalar_lea.hbm %s4189_s17, 32 }
  0xb4   :  { %p3823_p8 = scmp.ne.s32.totalorder %s3821_s27, %s3822_s14  ;;  %p3825_p9 = scmp.lt.s32.totalorder %s3821_s27, %s4189_s17 }
  0xb5   :  { %p3826_p10 = scmp.lt.s32.totalorder %s3824_s15, %s3822_s14 }
  0xb7   :  { %p3827_p11 = por %p3826_p10, %p3825_p9 }
  0xb9   :  { %p3828_p12 = pnand %p3827_p11, %p3823_p8 }
  0xbb   :  { %3831 = shalt.err (!%p3828_p12)
}
  0xbc   :  { %114 = dma.hbm_to_vmem [thread:$0]  %s4388_s6, 512, %s109_s28, [#allocation9], %s4138_s22, %s4138_s22, %s4139_s23  }
  0xbd   :  { %s4152_s9 = smov [#allocation13]   ;;  %s155_s29 = sshll.u32 %s4209_s3, 4  ;;  %s156_s29 = int_to_ptr.hbm [resolvable:$true] %s155_s29 }
  0xbe   :  { %s133_s13 = sshll.u32 %s4152_s9, 4  ;;  %s3844_s0 = sshra.s32 %s132_s1, 4  ;;  %s134_s13 = int_to_ptr.vmem [resolvable:$true] %s133_s13  ;;  %s3845_s0 = int_to_ptr.hbm [resolvable:$true] %s3844_s0 }
  0xbf   :  { %s3846_s17 = scalar_lea.hbm %s3845_s0, 1  ;;  %s3848_s24 = scalar_lea.hbm %s4199_s25, 1 }
  0xc0   :  { %p3847_p13 = scmp.ne.s32.totalorder %s3845_s0, %s3846_s17  ;;  %p3849_p0 = scmp.lt.s32.totalorder %s3845_s0, %s4199_s25 }
  0xc1   :  { %p3850_p1 = scmp.lt.s32.totalorder %s3848_s24, %s3846_s17 }
  0xc3   :  { %p3851_p2 = por %p3850_p1, %p3849_p0 }
  0xc5   :  { %p3852_p3 = pnand %p3851_p2, %p3847_p13 }
  0xc7   :  { %3855 = shalt.err (!%p3852_p3)
}
  0xc8   :  { %136 = dma.hbm_to_vmem [thread:$0]  %s132_s1, 16, %s134_s13, [#allocation12]  }
  0xc9   :  { %s178_s20 = sshll.u32 %s4224_s19, 4  ;;  %s4153_s7 = smov [#allocation16]   ;;  %s4404_s20 = int_to_ptr.hbm [resolvable:$true] %s178_s20 }
  0xca   :  { %s157_s2 = sshll.u32 %s4153_s7, 4  ;;  %s3868_s10 = sshra.s32 %s156_s29, 4  ;;  %s158_s2 = int_to_ptr.vmem [resolvable:$true] %s157_s2  ;;  %s3869_s10 = int_to_ptr.hbm [resolvable:$true] %s3868_s10 }
  0xcb   :  { %s3870_s6 = scalar_lea.hbm %s3869_s10, 1  ;;  %s3872_s16 = scalar_lea.hbm %s4209_s3, 1 }
  0xcc   :  { %p3871_p4 = scmp.ne.s32.totalorder %s3869_s10, %s3870_s6  ;;  %p3873_p5 = scmp.lt.s32.totalorder %s3869_s10, %s4209_s3 }
  0xcd   :  { %p3874_p6 = scmp.lt.s32.totalorder %s3872_s16, %s3870_s6 }
  0xcf   :  { %p3875_p7 = por %p3874_p6, %p3873_p5 }
  0xd1   :  { %p3876_p8 = pnand %p3875_p7, %p3871_p4 }
  0xd3   :  { %3879 = shalt.err (!%p3876_p8)
}
  0xd4   :  { %160 = dma.hbm_to_vmem [thread:$0]  %s156_s29, 16, %s158_s2, [#allocation15]  }
  0xd5   :  { %s4917_s25 = sld [smem:[#allocation52_spill]]  ;;  %s4154_s4 = smov [#allocation19]  }
  0xd6   :  { %s180_s18 = sshll.u32 %s4154_s4, 4  ;;  %s3892_s26 = sshra.s32 %s4404_s20, 4  ;;  %s181_s18 = int_to_ptr.vmem [resolvable:$true] %s180_s18  ;;  %s3893_s26 = int_to_ptr.hbm [resolvable:$true] %s3892_s26 }
  0xd7   :  { %s3894_s28 = scalar_lea.hbm %s3893_s26, 64  ;;  %s3896_s3 = scalar_lea.hbm %s4224_s19, 64 }
  0xd8   :  { %p3895_p9 = scmp.ne.s32.totalorder %s3893_s26, %s3894_s28  ;;  %p3897_p10 = scmp.lt.s32.totalorder %s3893_s26, %s4224_s19 }
  0xd9   :  { %p3898_p11 = scmp.lt.s32.totalorder %s3896_s3, %s3894_s28 }
  0xdb   :  { %s202_s1 = sshll.u32 %s4917_s25, 4  ;;  %p3899_p12 = por %p3898_p11, %p3897_p10  ;;  %s4409_s1 = int_to_ptr.hbm [resolvable:$true] %s202_s1 }
  0xdd   :  { %p3900_p13 = pnand %p3899_p12, %p3895_p9 }
  0xdf   :  { %3903 = shalt.err (!%p3900_p13)
}
  0xe0   :  { %s4918_s27 = sld [smem:[#allocation53_spill]]  ;;  %s4155_s14 = smov [#allocation22]  }
  0xe1   :  { %186 = dma.hbm_to_vmem [thread:$0]  %s4404_s20, 1024, %s181_s18, [#allocation18], %s4142_s21, %s4142_s21, %s4143_s11  }
  0xe2   :  { %s204_s15 = sshll.u32 %s4155_s14, 4  ;;  %s3916_s13 = sshra.s32 %s4409_s1, 4  ;;  %s205_s15 = int_to_ptr.vmem [resolvable:$true] %s204_s15  ;;  %s3917_s13 = int_to_ptr.hbm [resolvable:$true] %s3916_s13 }
  0xe3   :  { %s3918_s19 = scalar_lea.hbm %s3917_s13, 64  ;;  %s3920_s29 = scalar_lea.hbm %s4917_s25, 64 }
  0xe4   :  { %p3919_p0 = scmp.ne.s32.totalorder %s3917_s13, %s3918_s19  ;;  %p3921_p1 = scmp.lt.s32.totalorder %s3917_s13, %s4917_s25 }
  0xe5   :  { %p3922_p2 = scmp.lt.s32.totalorder %s3920_s29, %s3918_s19 }
  0xe6   :  { %s228_s9 = sshll.u32 %s4918_s27, 4  ;;  %s229_s9 = int_to_ptr.hbm [resolvable:$true] %s228_s9 }
  0xe7   :  { %p3923_p3 = por %p3922_p2, %p3921_p1 }
  0xe9   :  { %p3924_p4 = pnand %p3923_p3, %p3919_p0 }
  0xeb   :  { %3927 = shalt.err (!%p3924_p4)
}
  0xec   :  { %s4156_s0 = smov 256   ;;  %s4919_s17 = sld [smem:[#allocation55_spill]] }
  0xed   :  { %s4157_s24 = smov 16   ;;  %s4158_s20 = smov [#allocation25]  }
  0xee   :  { %210 = dma.hbm_to_vmem [thread:$0]  %s4409_s1, 1024, %s205_s15, [#allocation21], %s4156_s0, %s4156_s0, %s4157_s24  }
  0xef   :  { %s230_s7 = sshll.u32 %s4158_s20, 4  ;;  %s3940_s10 = sshra.s32 %s229_s9, 4  ;;  %s231_s7 = int_to_ptr.vmem [resolvable:$true] %s230_s7  ;;  %s3941_s10 = int_to_ptr.hbm [resolvable:$true] %s3940_s10 }
  0xf0   :  { %s3942_s6 = scalar_lea.hbm %s3941_s10, 64  ;;  %s3944_s16 = scalar_lea.hbm %s4918_s27, 64 }
  0xf1   :  { %p3943_p5 = scmp.ne.s32.totalorder %s3941_s10, %s3942_s6  ;;  %p3945_p6 = scmp.lt.s32.totalorder %s3941_s10, %s4918_s27 }
  0xf2   :  { %s256_s2 = sshll.u32 %s4919_s17, 4  ;;  %p3946_p7 = scmp.lt.s32.totalorder %s3944_s16, %s3942_s6  ;;  %s4424_s2 = int_to_ptr.hbm [resolvable:$true] %s256_s2 }
  0xf4   :  { %p3947_p8 = por %p3946_p7, %p3945_p6 }
  0xf6   :  { %p3948_p9 = pnand %p3947_p8, %p3943_p5 }
  0xf8   :  { %3951 = shalt.err (!%p3948_p9)
}
  0xf9   :  { %s4920_s25 = sld [smem:[#allocation57_spill]]  ;;  %s4159_s18 = smov [#allocation28]  }
  0xfa   :  { %236 = dma.hbm_to_vmem [thread:$0]  %s229_s9, 1024, %s231_s7, [#allocation24], %s4138_s22, %s4138_s22, %s4139_s23  }
  0xfb   :  { %s258_s1 = sshll.u32 %s4159_s18, 4  ;;  %s3964_s26 = sshra.s32 %s4424_s2, 4  ;;  %s259_s1 = int_to_ptr.vmem [resolvable:$true] %s258_s1  ;;  %s3965_s26 = int_to_ptr.hbm [resolvable:$true] %s3964_s26 }
  0xfc   :  { %s3966_s28 = scalar_lea.hbm %s3965_s26, 160  ;;  %s3968_s3 = scalar_lea.hbm %s4919_s17, 160 }
  0xfd   :  { %p3967_p10 = scmp.ne.s32.totalorder %s3965_s26, %s3966_s28  ;;  %p3969_p11 = scmp.lt.s32.totalorder %s3965_s26, %s4919_s17 }
  0xfe   :  { %p3970_p12 = scmp.lt.s32.totalorder %s3968_s3, %s3966_s28 }
  0xff   :  { %s285_s4 = sshll.u32 %s4920_s25, 4  ;;  %s286_s4 = int_to_ptr.hbm [resolvable:$true] %s285_s4 }
 0x100   :  { %p3971_p13 = por %p3970_p12, %p3969_p11 }
 0x102   :  { %p3972_p0 = pnand %p3971_p13, %p3967_p10 }
 0x104   :  { %3975 = shalt.err (!%p3972_p0)
}
 0x105   :  { %s4921_s27 = sld [smem:[#allocation59_spill]]  ;;  %s4160_s14 = smov [#allocation31]  }
 0x106   :  { %264 = dma.hbm_to_vmem [thread:$0]  %s4424_s2, 2560, %s259_s1, [#allocation27], %s4138_s22, %s4138_s22, %s4139_s23  }
 0x107   :  { %s287_s15 = sshll.u32 %s4160_s14, 4  ;;  %s3988_s13 = sshra.s32 %s286_s4, 4  ;;  %s288_s15 = int_to_ptr.vmem [resolvable:$true] %s287_s15  ;;  %s3989_s13 = int_to_ptr.hbm [resolvable:$true] %s3988_s13 }
 0x108   :  { %s3990_s19 = scalar_lea.hbm %s3989_s13, 1  ;;  %s3992_s29 = scalar_lea.hbm %s4920_s25, 1 }
 0x109   :  { %p3991_p1 = scmp.ne.s32.totalorder %s3989_s13, %s3990_s19  ;;  %p3993_p2 = scmp.lt.s32.totalorder %s3989_s13, %s4920_s25 }
 0x10a   :  { %p3994_p3 = scmp.lt.s32.totalorder %s3992_s29, %s3990_s19 }
 0x10b   :  { %s310_s9 = sshll.u32 %s4921_s27, 4  ;;  %s4440_s9 = int_to_ptr.hbm [resolvable:$true] %s310_s9 }
 0x10c   :  { %p3995_p4 = por %p3994_p3, %p3993_p2 }
 0x10e   :  { %p3996_p5 = pnand %p3995_p4, %p3991_p1 }
 0x110   :  { %3999 = shalt.err (!%p3996_p5)
}
 0x111   :  { %290 = dma.hbm_to_vmem [thread:$0]  %s286_s4, 16, %s288_s15, [#allocation30]  }
 0x112   :  { %s4922_s0 = sld [smem:[#allocation61_spill]]  ;;  %s4161_s23 = smov [#allocation34]  }
 0x113   :  { %s312_s17 = sshll.u32 %s4161_s23, 4  ;;  %s4012_s24 = sshra.s32 %s4440_s9, 4  ;;  %s313_s17 = int_to_ptr.vmem [resolvable:$true] %s312_s17  ;;  %s4013_s24 = int_to_ptr.hbm [resolvable:$true] %s4012_s24 }
 0x114   :  { %s4014_s20 = scalar_lea.hbm %s4013_s24, 32  ;;  %s4016_s7 = scalar_lea.hbm %s4921_s27, 32 }
 0x115   :  { %p4015_p6 = scmp.ne.s32.totalorder %s4013_s24, %s4014_s20  ;;  %p4017_p7 = scmp.lt.s32.totalorder %s4013_s24, %s4921_s27 }
 0x116   :  { %p4018_p8 = scmp.lt.s32.totalorder %s4016_s7, %s4014_s20 }
 0x118   :  { %s325_s22 = sshll.u32 %s4922_s0, 4  ;;  %p4019_p9 = por %p4018_p8, %p4017_p7  ;;  %s4445_s22 = int_to_ptr.hbm [resolvable:$true] %s325_s22 }
 0x11a   :  { %p4020_p10 = pnand %p4019_p9, %p4015_p6 }
 0x11c   :  { %4023 = shalt.err (!%p4020_p10)
}
 0x11d   :  { %318 = dma.hbm_to_vmem [thread:$0]  %s4440_s9, 512, %s313_s17, [#allocation33], %s4142_s21, %s4142_s21, %s4143_s11  }
 0x11e   :  { %s4162_s2 = smov [#allocation35]   ;;  %s4036_s6 = sshra.s32 %s4445_s22, 4  ;;  %s4037_s6 = int_to_ptr.hbm [resolvable:$true] %s4036_s6 }
 0x11f   :  { %s327_s10 = sshll.u32 %s4162_s2, 4  ;;  %s4038_s16 = scalar_lea.hbm %s4037_s6, 32  ;;  %s328_s10 = int_to_ptr.vmem [resolvable:$true] %s327_s10 }
 0x120   :  { %p4039_p11 = scmp.ne.s32.totalorder %s4037_s6, %s4038_s16  ;;  %s4040_s25 = scalar_lea.hbm %s4922_s0, 32 }
 0x121   :  { %p4041_p12 = scmp.lt.s32.totalorder %s4037_s6, %s4922_s0  ;;  %p4042_p13 = scmp.lt.s32.totalorder %s4040_s25, %s4038_s16 }
 0x123   :  { %p4043_p0 = por %p4042_p13, %p4041_p12 }
 0x125   :  { %p4044_p1 = pnand %p4043_p0, %p4039_p11 }
 0x127   :  { %4047 = shalt.err (!%p4044_p1)
}
 0x128   :  { %333 = dma.hbm_to_vmem [thread:$0]  %s4445_s22, 512, %s328_s10, [#allocation36], %s4142_s21, %s4142_s21, %s4143_s11  }
 0x129   :  { %4084 = dma.done.wait [#allocation6], 32  }
 0x12a   :  { %4085 = vsyncadd [#allocation6], 4294967264 }
 0x12b   :  { %4086 = dma.done.wait [#allocation9], 1024  }
 0x12c   :  { %4087 = vsyncadd [#allocation9], 4294966272 }
 0x12d   :  { %4088 = dma.done.wait [#allocation12], 48  }
 0x12e   :  { %4089 = vsyncadd [#allocation12], 4294967248 }
 0x12f   :  { %4090 = dma.done.wait [#allocation15], 272  }
 0x130   :  { %4091 = vsyncadd [#allocation15], 4294967024 }
 0x131   :  { %4092 = dma.done.wait [#allocation18], 1040  }
 0x132   :  { %4093 = vsyncadd [#allocation18], 4294966256 }
 0x133   :  { %4094 = dma.done.wait [#allocation21], 1040  }
 0x134   :  { %4095 = vsyncadd [#allocation21], 4294966256 }
 0x135   :  { %4096 = dma.done.wait [#allocation24], 3072  }
 0x136   :  { %4097 = vsyncadd [#allocation24], 4294964224 }
 0x137   :  { %4098 = dma.done.wait [#allocation27], 5120  }
 0x138   :  { %4099 = vsyncadd [#allocation27], 4294962176 }
 0x139   :  { %4100 = dma.done.wait [#allocation30], 1296  }
 0x13a   :  { %4101 = vsyncadd [#allocation30], 4294966000 }
 0x13b   :  { %4102 = dma.done.wait [#allocation33], 1024  }
 0x13c   :  { %4103 = vsyncadd [#allocation33], 4294966272 }
 0x13d   :  { %4104 = dma.done.wait [#allocation36], 512  }
 0x13e   :  { %4105 = vsyncadd [#allocation36], 4294966784  ;;  %s4923_s11 = sld [smem:[#allocation50_spill]]  ;;  %vm444_vm0 = vcmask 1041408   ;;  %v430_v0 = vld [vmem:[#allocation11] sm:$0x3] }
 0x13f   :  { %v446_v3 = vsel %vm444_vm0, %v430_v0, 0  ;;  %vm437_vm1 = vcmask 31744   ;;  %v3292_v8 = vld [vmem:[#allocation14 + $0x8] sm:$0xff]  ;;  %v3291_v9 = vld [vmem:[#allocation14] sm:$0xff]  ;;  %v3477_v11 = vld [vmem:[#allocation13] ss:$0 sm:$0xff] }
 0x140   :  { %455 = vmatpush.bf16.msra.mxu3 %v446_v3  ;;  %506 = vmatpush.bf16.msra.mxu1 %v3292_v8  ;;  %s4924_s4 = sld [smem:[#allocation51_spill]]  ;;  %vm493_vm2 = vcmask 261120   ;;  %v673_v27 = vld [vmem:[#allocation22 + $0x30] sm:$0xff]  ;;  %v671_v28 = vld [vmem:[#allocation22 + $0x20] sm:$0xff]  ;;  %v3478_v31 = vld [vmem:[#allocation16] ss:$0 sm:$0xff] }
 0x141   :  { %v669_v30 = vld [vmem:[#allocation22 + $0x10] sm:$0xff]  ;;  %v667_v32 = vld [vmem:[#allocation22] sm:$0xff]  ;;  %v3318_v48 = vld [vmem:[#allocation23 + $0x74] sm:$0xf0]  ;;  %vm929_vm3 = vcmask 523264   ;;  %s4925_s18 = sld [smem:[#allocation54_spill]] }
 0x142   :  { %v3302_v46 = vld [vmem:[#allocation19 + $0x38] sm:$0xff]  ;;  %v2910_v47 = vld [vmem:[#allocation23 + $0x70] sm:$0xf]  ;;  %v2902_v54 = vld [vmem:[#allocation23 + $0x60] sm:$0xf]  ;;  %vm1254_vm8 = vcmask 15360  }
 0x143   :  { %v2911_v49 = vor.u32 %v3318_v48, %v2910_v47  ;;  %v3317_v50 = vld [vmem:[#allocation23 + $0x74] sm:$0xf]  ;;  %v2912_v51 = vld [vmem:[#allocation23 + $0x78] sm:$0xf0]  ;;  %v3316_v55 = vld [vmem:[#allocation23 + $0x64] sm:$0xf0] }
 0x144   :  { %v426_v1 = vld [vmem:[%s4923_s11] sm:$0xff]  ;;  %v427_v2 = vld [vmem:[%s4923_s11 + $0x8] sm:$0xff]  ;;  %v428_v5 = vld [vmem:[%s4923_s11 + $0x10] sm:$0xff]  ;;  %507 = vmatpush.bf16.msra.mxu1 %v3291_v9  ;;  %644 = vmatpush.bf16.msrb.mxu3 %v3302_v46  ;;  %v2915_v53 = vor.u32 %v3317_v50, %v2912_v51  ;;  %v2903_v57 = vor.u32 %v3316_v55, %v2902_v54  ;;  %s4926_s1 = sld [smem:[#allocation56_spill]]  ;;  %s4163_s28 = smov 96   ;;  %vm2154_vm13 = vcmask 785408  }
 0x145   :  { %v431_v4 = vpack.c.bf16 %v427_v2, %v426_v1  ;;  %v429_v6 = vld [vmem:[%s4923_s11 + $0x18] sm:$0xff]  ;;  %v3301_v52 = vld [vmem:[#allocation19 + $0x30] sm:$0xff]  ;;  %v3315_v56 = vld [vmem:[#allocation23 + $0x64] sm:$0xf]  ;;  %771 = vmatpush.bf16.msra.mxu0 %v2911_v49  ;;  %s4927_s26 = sld [smem:[#allocation58_spill]]  ;;  %s4164_s3 = smov 32  }
 0x146   :  { %v432_v7 = vpack.c.bf16 %v429_v6, %v428_v5  ;;  %v3294_v25 = vld [vmem:[%s4924_s4 + $0x8] sm:$0xff]  ;;  %v3293_v26 = vld [vmem:[%s4924_s4] sm:$0xff]  ;;  %v3314_v61 = vld [vmem:[#allocation23 + $0x54] sm:$0xf0]  ;;  %s4928_s27 = sld [smem:[#allocation60_spill]]  ;;  %s4076_s15 = scalar_lea.hbm %s4319_s30, 2 }
 0x147   :  { %2798 = vmatmul.msk.bf16.vlgmr.msra.gmra.mxu3 %vm437_vm1, %v431_v4  ;;  %557 = vmatpush.bf16.msra.mxu2 %v3294_v25  ;;  %v2904_v58 = vld [vmem:[#allocation23 + $0x68] sm:$0xf0]  ;;  %v2894_v60 = vld [vmem:[#allocation23 + $0x50] sm:$0xf]  ;;  %v3313_v62 = vld [vmem:[#allocation23 + $0x54] sm:$0xf] }
 0x148   :  { %790 = vmatpush.bf16.msrb.mxu1 %v2915_v53  ;;  %v2907_v59 = vor.u32 %v3315_v56, %v2904_v58  ;;  %v2896_v63 = vld [vmem:[#allocation23 + $0x58] sm:$0xf0]  ;;  %645 = vmatpush.bf16.msrb.mxu3 %v3301_v52  ;;  %v3300_v0 = vld [vmem:[#allocation19 + $0x28] sm:$0xff]  ;;  %v2895_v1 = vor.u32 %v3314_v61, %v2894_v60  ;;  %v2886_v3 = vld [vmem:[#allocation23 + $0x40] sm:$0xf] }
 0x149   :  { %772 = vmatpush.bf16.msra.mxu0 %v2903_v57  ;;  %v2899_v2 = vor.u32 %v3313_v62, %v2896_v63  ;;  %v3312_v4 = vld [vmem:[#allocation23 + $0x44] sm:$0xf0]  ;;  %v3311_v5 = vld [vmem:[#allocation23 + $0x44] sm:$0xf]  ;;  %v2888_v6 = vld [vmem:[#allocation23 + $0x48] sm:$0xf0] }
 0x14a   :  { %v2887_v8 = vor.u32 %v3312_v4, %v2886_v3  ;;  %v2891_v9 = vor.u32 %v3311_v5, %v2888_v6  ;;  %v3306_v25 = vld [vmem:[#allocation23 + $0x14] sm:$0xf0]  ;;  %v672_v47 = vld [vmem:[#allocation22 + $0x28] sm:$0xff]  ;;  %v2950_v61 = vld [vmem:[#allocation25 + $0x30] sm:$0xf] }
 0x14b   :  { %558 = vmatpush.bf16.msra.mxu2 %v3293_v26  ;;  %v3305_v26 = vld [vmem:[#allocation23 + $0x14] sm:$0xf]  ;;  %v674_v46 = vld [vmem:[#allocation22 + $0x38] sm:$0xff]  ;;  %v668_v53 = vld [vmem:[#allocation22 + $0x8] sm:$0xff] }
 0x14c   :  { %791 = vmatpush.bf16.msrb.mxu1 %v2907_v59  ;;  %646 = vmatpush.bf16.msrb.mxu3 %v3300_v0  ;;  %v670_v49 = vld [vmem:[#allocation22 + $0x18] sm:$0xff]  ;;  %v3325_v63 = vld [vmem:[#allocation25 + $0x34] sm:$0xf]  ;;  %v2942_v3 = vld [vmem:[#allocation25 + $0x20] sm:$0xf] }
 0x14d   :  { %773 = vmatpush.bf16.msra.mxu0 %v2895_v1  ;;  %v3326_v62 = vld [vmem:[#allocation25 + $0x34] sm:$0xf0]  ;;  %v2952_v1 = vld [vmem:[#allocation25 + $0x38] sm:$0xf0]  ;;  %v3324_v4 = vld [vmem:[#allocation25 + $0x24] sm:$0xf0] }
 0x14e   :  { %v2951_v0 = vor.u32 %v3326_v62, %v2950_v61  ;;  %v2943_v5 = vor.u32 %v3324_v4, %v2942_v3  ;;  %v2944_v6 = vld [vmem:[#allocation25 + $0x28] sm:$0xf0]  ;;  %v3006_v3 = vld [vmem:[#allocation26 + $0x58] sm:$0xf0] }
 0x14f   :  { %833 = vmatpush.msrb.mxu2 %v673_v27  ;;  %v3296_v27 = vld [vmem:[#allocation19 + $0x8] sm:$0xff] }
 0x150   :  { %792 = vmatpush.bf16.msrb.mxu1 %v2899_v2  ;;  %v2955_v2 = vor.u32 %v3325_v63, %v2952_v1  ;;  %v3338_v1 = vld [vmem:[#allocation26 + $0x54] sm:$0xf0] }
 0x151   :  { %834 = vmatpush.msrb.mxu2 %v671_v28  ;;  %774 = vmatpush.bf16.msra.mxu0 %v2887_v8  ;;  %v3321_v8 = vld [vmem:[#allocation25 + $0x14] sm:$0xf] }
 0x153   :  { %835 = vmatpush.msrb.mxu2 %v669_v30 }
 0x154   :  { %793 = vmatpush.bf16.msrb.mxu1 %v2891_v9  ;;  %v2936_v9 = vld [vmem:[#allocation25 + $0x18] sm:$0xf0] }
 0x155   :  { %836 = vmatpush.msrb.mxu2 %v667_v32  ;;  %v3304_v32 = vld [vmem:[#allocation23 + $0x4] sm:$0xf0] }
 0x157   :  { %2799 = vmatmul.msk.bf16.gmra.mxu3 %vm437_vm1, %v432_v7  ;;  %v3299_v7 = vld [vmem:[#allocation19 + $0x20] sm:$0xff] }
 0x158   :  { %647 = vmatpush.bf16.msrb.mxu3 %v3299_v7  ;;  %v3322_v7 = vld [vmem:[#allocation25 + $0x14] sm:$0xf0] }
 0x1ca   :  { %v457_v10 = vpop.f32.mrf.mxu3 }
 0x1cb   :  { %v458_v12 = vadd.f32 %v3477_v11, %v457_v10  ;;  %v2878_v10 = vld [vmem:[#allocation23 + $0x30] sm:$0xf] }
 0x1cd   :  { %v467_v15 = vmax.f32 %v458_v12, 0.0  ;;  %v3309_v12 = vld [vmem:[#allocation23 + $0x34] sm:$0xf] }
 0x1d2   :  { %v459_v13 = vpop.f32.mrf.mxu3 }
 0x1d3   :  { %v460_v14 = vadd.f32 %v3477_v11, %v459_v13  ;;  %v3298_v13 = vld [vmem:[#allocation19 + $0x18] sm:$0xff] }
 0x1d4   :  { %648 = vmatpush.bf16.msrb.mxu3 %v3298_v13  ;;  %v3319_v13 = vld [vmem:[#allocation25 + $0x4] sm:$0xf] }
 0x1d5   :  { %v468_v16 = vmax.f32 %v460_v14, 0.0 }
 0x1d7   :  { %v475_v17 = vpack.c.bf16 %v468_v16, %v467_v15  ;;  %v2880_v15 = vld [vmem:[#allocation23 + $0x38] sm:$0xf0] }
 0x1d8   :  { %v2883_v16 = vor.u32 %v3309_v12, %v2880_v15  ;;  %v3320_v12 = vld [vmem:[#allocation25 + $0x4] sm:$0xf0]  ;;  %v2928_v15 = vld [vmem:[#allocation25 + $0x8] sm:$0xf0] }
 0x1d9   :  { %2808 = vmatmul.msk.bf16.vlgmr.msra.gmra.mxu1 %vm493_vm2, %v475_v17  ;;  %v2870_v17 = vld [vmem:[#allocation23 + $0x20] sm:$0xf] }
 0x1da   :  { %v462_v18 = vpop.f32.mrf.mxu3  ;;  %794 = vmatpush.bf16.msrb.mxu1 %v2883_v16  ;;  %v2931_v16 = vor.u32 %v3319_v13, %v2928_v15  ;;  %v3334_v13 = vld [vmem:[#allocation26 + $0x34] sm:$0xf0]  ;;  %v2990_v15 = vld [vmem:[#allocation26 + $0x38] sm:$0xf0] }
 0x1db   :  { %v463_v19 = vadd.f32 %v3477_v11, %v462_v18  ;;  %v3308_v18 = vld [vmem:[#allocation23 + $0x24] sm:$0xf0] }
 0x1dd   :  { %v469_v22 = vmax.f32 %v463_v19, 0.0  ;;  %v3307_v19 = vld [vmem:[#allocation23 + $0x24] sm:$0xf] }
 0x1e2   :  { %v464_v20 = vpop.f32.mrf.mxu3 }
 0x1e3   :  { %v465_v21 = vadd.f32 %v3477_v11, %v464_v20  ;;  %v3310_v11 = vld [vmem:[#allocation23 + $0x34] sm:$0xf0]  ;;  %v3297_v20 = vld [vmem:[#allocation19 + $0x10] sm:$0xff] }
 0x1e4   :  { %v2879_v14 = vor.u32 %v3310_v11, %v2878_v10  ;;  %649 = vmatpush.bf16.msrb.mxu3 %v3297_v20  ;;  %v2939_v10 = vor.u32 %v3321_v8, %v2936_v9  ;;  %v2926_v11 = vld [vmem:[#allocation25] sm:$0xf]  ;;  %v2998_v8 = vld [vmem:[#allocation26 + $0x48] sm:$0xf0] }
 0x1e5   :  { %v470_v23 = vmax.f32 %v465_v21, 0.0  ;;  %v2871_v21 = vor.u32 %v3308_v18, %v2870_v17  ;;  %v3480_v18 = vld [vmem:[#allocation20] ss:$0 sm:$0xff] }
 0x1e6   :  { %775 = vmatpush.bf16.msra.mxu0 %v2879_v14  ;;  %v2927_v14 = vor.u32 %v3320_v12, %v2926_v11  ;;  %v2988_v12 = vld [vmem:[#allocation26 + $0x30] sm:$0xf] }
 0x1e7   :  { %v476_v24 = vpack.c.bf16 %v470_v23, %v469_v22  ;;  %v2872_v22 = vld [vmem:[#allocation23 + $0x28] sm:$0xf0] }
 0x1e8   :  { %v2875_v23 = vor.u32 %v3307_v19, %v2872_v22  ;;  %650 = vmatpush.bf16.msrb.mxu3 %v3296_v27 }
 0x1e9   :  { %2809 = vmatmul.msk.bf16.gmra.mxu1 %vm493_vm2, %v476_v24  ;;  %v2862_v24 = vld [vmem:[#allocation23 + $0x10] sm:$0xf] }
 0x1ea   :  { %776 = vmatpush.bf16.msra.mxu0 %v2871_v21  ;;  %795 = vmatpush.bf16.msrb.mxu1 %v2875_v23  ;;  %v2863_v28 = vor.u32 %v3306_v25, %v2862_v24 }
 0x1ee   :  { %777 = vmatpush.bf16.msra.mxu0 %v2863_v28 }
 0x256   :  { %v509_v29 = vpop.f32.mrf.mxu1 }
 0x257   :  { %v510_v33 = vadd.f32 %v3478_v31, %v509_v29  ;;  %v2864_v29 = vld [vmem:[#allocation23 + $0x18] sm:$0xf0] }
 0x258   :  { %v2867_v30 = vor.u32 %v3305_v26, %v2864_v29 }
 0x259   :  { %v4470_v36 = vmax.f32 %v510_v33, 0.0  ;;  %v3303_v33 = vld [vmem:[#allocation23 + $0x4] sm:$0xf] }
 0x25a   :  { %796 = vmatpush.bf16.msrb.mxu1 %v2867_v30 }
 0x25e   :  { %v511_v34 = vpop.f32.mrf.mxu1 }
 0x25f   :  { %v512_v35 = vadd.f32 %v3478_v31, %v511_v34  ;;  %v3295_v34 = vld [vmem:[#allocation19] sm:$0xff] }
 0x260   :  { %651 = vmatpush.bf16.msrb.mxu3 %v3295_v34 }
 0x261   :  { %v4472_v37 = vmax.f32 %v512_v35, 0.0 }
 0x263   :  { %v527_v38 = vpack.c.bf16 %v4472_v37, %v4470_v36 }
 0x264   :  { %862 = vmatpush.msra.mxu3 %v674_v46 }
 0x265   :  { %2818 = vmatmul.msk.bf16.vlgmr.msra.gmra.mxu2 %vm493_vm2, %v527_v38  ;;  %v2856_v38 = vld [vmem:[#allocation23 + $0x8] sm:$0xf0] }
 0x266   :  { %v514_v39 = vpop.f32.mrf.mxu1  ;;  %863 = vmatpush.msra.mxu3 %v672_v47 }
 0x267   :  { %v515_v40 = vadd.f32 %v3478_v31, %v514_v39  ;;  %v2859_v39 = vor.u32 %v3303_v33, %v2856_v38 }
 0x268   :  { %864 = vmatpush.msra.mxu3 %v670_v49 }
 0x269   :  { %v4477_v43 = vmax.f32 %v515_v40, 0.0  ;;  %797 = vmatpush.bf16.msrb.mxu1 %v2859_v39 }
 0x26a   :  { %865 = vmatpush.msra.mxu3 %v668_v53 }
 0x26d   :  { %959 = vmatpush.bf16.msra.mxu1 %v2955_v2  ;;  %v3337_v2 = vld [vmem:[#allocation26 + $0x54] sm:$0xf] }
 0x26e   :  { %v516_v41 = vpop.f32.mrf.mxu1 }
 0x26f   :  { %v517_v42 = vadd.f32 %v3478_v31, %v516_v41  ;;  %v2854_v31 = vld [vmem:[#allocation23] sm:$0xf]  ;;  %v3479_v41 = vld [vmem:[#allocation17] ss:$0 sm:$0xff] }
 0x270   :  { %v2855_v35 = vor.u32 %v3304_v32, %v2854_v31 }
 0x271   :  { %v4479_v44 = vmax.f32 %v517_v42, 0.0 }
 0x272   :  { %778 = vmatpush.bf16.msra.mxu0 %v2855_v35 }
 0x273   :  { %v528_v45 = vpack.c.bf16 %v4479_v44, %v4477_v43 }
 0x275   :  { %2819 = vmatmul.msk.bf16.gmra.mxu2 %vm493_vm2, %v528_v45 }
 0x276   :  { %940 = vmatpush.bf16.msrb.mxu0 %v2951_v0  ;;  %v3004_v0 = vld [vmem:[#allocation26 + $0x50] sm:$0xf] }
 0x27a   :  { %941 = vmatpush.bf16.msrb.mxu0 %v2943_v5 }
 0x285   :  { %2916 = vmatmul.msk.f32.vlgmr.msrb.gmra.mxu2 %vm493_vm2, %v4470_v36 }
 0x28d   :  { %2917 = vmatmul.msk.f32.gmra.mxu2 %vm493_vm2, %v4472_v37 }
 0x295   :  { %2918 = vmatmul.msk.f32.gmra.mxu2 %vm493_vm2, %v4477_v43 }
 0x29d   :  { %2919 = vmatmul.msk.f32.gmra.mxu2 %vm493_vm2, %v4479_v44 }
 0x2e8   :  { %v560_v40 = vpop.f32.mrf.mxu2 }
 0x2e9   :  { %v561_v42 = vadd.f32 %v3479_v41, %v560_v40 }
 0x2eb   :  { %v570_v50 = vmax.f32 %v561_v42, 0.0 }
 0x2f0   :  { %v562_v45 = vpop.f32.mrf.mxu2 }
 0x2f1   :  { %v563_v48 = vadd.f32 %v3479_v41, %v562_v45 }
 0x2f3   :  { %v571_v51 = vmax.f32 %v563_v48, 0.0 }
 0x2f5   :  { %v590_v52 = vpack.c.bf16 %v571_v51, %v570_v50  ;;  %v3020_v50 = vld [vmem:[#allocation26 + $0x70] sm:$0xf]  ;;  %v3342_v51 = vld [vmem:[#allocation26 + $0x74] sm:$0xf0] }
 0x2f6   :  { %v3021_v53 = vor.u32 %v3342_v51, %v3020_v50 }
 0x2f7   :  { %652 = vmatmul.bf16.vlgmr.msrb.gmra.mxu3 %v590_v52  ;;  %779 = vmatmul.bf16.vlgmr.msra.gmra.mxu0 %v590_v52 }
 0x2f8   :  { %798 = vmatmul.bf16.vlgmr.msrb.gmra.mxu1 %v590_v52  ;;  %v565_v54 = vpop.f32.mrf.mxu2  ;;  %v3341_v52 = vld [vmem:[#allocation26 + $0x74] sm:$0xf]  ;;  %1164 = vmatpush.bf16.msrb.mxu3 %v3021_v53 }
 0x2f9   :  { %v566_v55 = vadd.f32 %v3479_v41, %v565_v54  ;;  %v3022_v54 = vld [vmem:[#allocation26 + $0x78] sm:$0xf0] }
 0x2fb   :  { %v572_v58 = vmax.f32 %v566_v55, 0.0  ;;  %v3012_v55 = vld [vmem:[#allocation26 + $0x60] sm:$0xf] }
 0x300   :  { %v567_v56 = vpop.f32.mrf.mxu2 }
 0x301   :  { %v568_v57 = vadd.f32 %v3479_v41, %v567_v56  ;;  %v3340_v56 = vld [vmem:[#allocation26 + $0x64] sm:$0xf0] }
 0x303   :  { %v573_v59 = vmax.f32 %v568_v57, 0.0  ;;  %v3025_v57 = vor.u32 %v3341_v52, %v3022_v54 }
 0x305   :  { %v591_v60 = vpack.c.bf16 %v573_v59, %v572_v58  ;;  %v3339_v58 = vld [vmem:[#allocation26 + $0x64] sm:$0xf]  ;;  %v3014_v59 = vld [vmem:[#allocation26 + $0x68] sm:$0xf0] }
 0x306   :  { %v3017_v63 = vor.u32 %v3339_v58, %v3014_v59 }
 0x307   :  { %657 = vmatmul.bf16.gmra.mxu3 %v591_v60  ;;  %784 = vmatmul.bf16.gmra.mxu0 %v591_v60 }
 0x308   :  { %803 = vmatmul.bf16.gmra.mxu1 %v591_v60  ;;  %v4512_v41 = vpop.f32.mrf.mxu2  ;;  %v3013_v60 = vor.u32 %v3340_v56, %v3012_v55  ;;  %v2972_v55 = vld [vmem:[#allocation26 + $0x10] sm:$0xf] }
 0x30a   :  { %1165 = vmatpush.bf16.msrb.mxu3 %v3013_v60 }
 0x310   :  { %v841_v49 = vpop.f32.mrf.mxu2 }
 0x317   :  { %2920 = vmatmul.msk.f32.vlgmr.msra.gmra.mxu3 %vm493_vm2, %v4470_v36  ;;  %v3323_v36 = vld [vmem:[#allocation25 + $0x24] sm:$0xf] }
 0x318   :  { %v844_v5 = vpop.f32.mrf.mxu2 }
 0x31f   :  { %2921 = vmatmul.msk.f32.gmra.mxu3 %vm493_vm2, %v4472_v37  ;;  %v2947_v37 = vor.u32 %v3323_v36, %v2944_v6  ;;  %v3005_v36 = vor.u32 %v3338_v1, %v3004_v0  ;;  %v3009_v6 = vor.u32 %v3337_v2, %v3006_v3  ;;  %v3328_v3 = vld [vmem:[#allocation26 + $0x4] sm:$0xf0] }
 0x321   :  { %960 = vmatpush.bf16.msra.mxu1 %v2947_v37  ;;  %v2996_v37 = vld [vmem:[#allocation26 + $0x40] sm:$0xf]  ;;  %1166 = vmatpush.bf16.msrb.mxu3 %v3005_v36 }
 0x325   :  { %961 = vmatpush.bf16.msra.mxu1 %v2939_v10 }
 0x327   :  { %2922 = vmatmul.msk.f32.gmra.mxu3 %vm493_vm2, %v4477_v43  ;;  %v2934_v43 = vld [vmem:[#allocation25 + $0x10] sm:$0xf] }
 0x329   :  { %962 = vmatpush.bf16.msra.mxu1 %v2931_v16  ;;  %v2989_v16 = vor.u32 %v3334_v13, %v2988_v12  ;;  %v3343_v12 = vld [vmem:[#allocation26 + $0x84] sm:$0xf] }
 0x32f   :  { %2923 = vmatmul.msk.f32.gmra.mxu3 %vm493_vm2, %v4479_v44  ;;  %v2935_v44 = vor.u32 %v3322_v7, %v2934_v43  ;;  %v3336_v43 = vld [vmem:[#allocation26 + $0x44] sm:$0xf0]  ;;  %v3335_v7 = vld [vmem:[#allocation26 + $0x44] sm:$0xf] }
 0x330   :  { %v3001_v11 = vor.u32 %v3335_v7, %v2998_v8  ;;  %v3345_v7 = vld [vmem:[#allocation26 + $0x94] sm:$0xf] }
 0x331   :  { %942 = vmatpush.bf16.msrb.mxu0 %v2935_v44  ;;  %v2997_v44 = vor.u32 %v3336_v43, %v2996_v37  ;;  %v3036_v37 = vld [vmem:[#allocation26 + $0x90] sm:$0xf]  ;;  %v3346_v43 = vld [vmem:[#allocation26 + $0x94] sm:$0xf0] }
 0x332   :  { %v3037_v8 = vor.u32 %v3346_v43, %v3036_v37 }
 0x333   :  { %1167 = vmatpush.bf16.msrb.mxu3 %v2997_v44  ;;  %v3038_v44 = vld [vmem:[#allocation26 + $0x98] sm:$0xf0] }
 0x335   :  { %943 = vmatpush.bf16.msrb.mxu0 %v2927_v14  ;;  %v3333_v14 = vld [vmem:[#allocation26 + $0x34] sm:$0xf] }
 0x337   :  { %1168 = vmatpush.bf16.msrb.mxu3 %v2989_v16 }
 0x339   :  { %1190 = vmatpush.bf16.msra.mxu0 %v3025_v57 }
 0x33d   :  { %1191 = vmatpush.bf16.msra.mxu0 %v3017_v63 }
 0x341   :  { %1192 = vmatpush.bf16.msra.mxu0 %v3009_v6 }
 0x345   :  { %1193 = vmatpush.bf16.msra.mxu0 %v3001_v11  ;;  %v3344_v11 = vld [vmem:[#allocation26 + $0x84] sm:$0xf0] }
 0x374   :  { %v4500_v32 = vpop.f32.mrf.mxu0 }
 0x375   :  { %v4502_v33 = vpop.f32.mrf.mxu1 }
 0x37a   :  { %v653_v17 = vpop.f32.mrf.mxu3 }
 0x37b   :  { %v654_v19 = vadd.f32 %v3480_v18, %v653_v17 }
 0x37c   :  { %v4504_v34 = vpop.f32.mrf.mxu0 }
 0x37d   :  { %v663_v22 = vmax.f32 %v654_v19, 0.0  ;;  %v4506_v35 = vpop.f32.mrf.mxu1  ;;  %v2980_v19 = vld [vmem:[#allocation26 + $0x20] sm:$0xf] }
 0x382   :  { %v655_v20 = vpop.f32.mrf.mxu3 }
 0x383   :  { %v656_v21 = vadd.f32 %v3480_v18, %v655_v20  ;;  %v3332_v20 = vld [vmem:[#allocation26 + $0x24] sm:$0xf0] }
 0x384   :  { %v785_v38 = vpop.f32.mrf.mxu0 }
 0x385   :  { %v664_v23 = vmax.f32 %v656_v21, 0.0  ;;  %v4508_v39 = vpop.f32.mrf.mxu1  ;;  %v982_v21 = vld [vmem:[%s4925_s18] sm:$0x3] }
 0x386   :  { %v984_v50 = vperm.slane %v982_v21, 0  ;;  %v985_v51 = vperm.slane %v982_v21, 1 }
 0x387   :  { %v887_v24 = vpack.c.bf16 %v664_v23, %v663_v22  ;;  %v3331_v22 = vld [vmem:[#allocation26 + $0x24] sm:$0xf]  ;;  %v2982_v23 = vld [vmem:[#allocation26 + $0x28] sm:$0xf0] }
 0x388   :  { %v2985_v54 = vor.u32 %v3331_v22, %v2982_v23 }
 0x389   :  { %2956 = vmatmul.msk.bf16.vlgmr.msrb.gmra.mxu0 %vm929_vm3, %v887_v24  ;;  %2958 = vmatmul.msk.bf16.vlgmr.msra.gmra.mxu1 %vm929_vm3, %v887_v24  ;;  %v847_v24 = vpop.f32.mrf.mxu2 }
 0x38a   :  { %v658_v25 = vpop.f32.mrf.mxu3 }
 0x38b   :  { %v659_v26 = vadd.f32 %v3480_v18, %v658_v25  ;;  %v842_v25 = vadd.f32 %v841_v49, %v4504_v34  ;;  %v2974_v49 = vld [vmem:[#allocation26 + $0x18] sm:$0xf0] }
 0x38c   :  { %v787_v42 = vpop.f32.mrf.mxu0 }
 0x38d   :  { %v665_v29 = vmax.f32 %v659_v26, 0.0  ;;  %v806_v45 = vpop.f32.mrf.mxu1  ;;  %v845_v26 = vadd.f32 %v844_v5, %v785_v38  ;;  %v3330_v38 = vld [vmem:[#allocation26 + $0x14] sm:$0xf0]  ;;  %v2966_v5 = vld [vmem:[#allocation26 + $0x8] sm:$0xf0] }
 0x38e   :  { %v2973_v0 = vor.u32 %v3330_v38, %v2972_v55 }
 0x392   :  { %v660_v27 = vpop.f32.mrf.mxu3 }
 0x393   :  { %v661_v28 = vadd.f32 %v3480_v18, %v660_v27  ;;  %v2993_v18 = vor.u32 %v3333_v14, %v2990_v15  ;;  %v848_v27 = vadd.f32 %v847_v24, %v787_v42  ;;  %v3329_v42 = vld [vmem:[#allocation26 + $0x14] sm:$0xf]  ;;  %v3030_v14 = vld [vmem:[#allocation26 + $0x88] sm:$0xf0] }
 0x394   :  { %v2977_v1 = vor.u32 %v3329_v42, %v2974_v49  ;;  %v3033_v15 = vor.u32 %v3343_v12, %v3030_v14  ;;  %v3359_v12 = vld [vmem:[#allocation28 + $0x64] sm:$0xf]  ;;  %v423_v14 = vld [vmem:[#allocation8 + $0x8] sm:$0xff] }
 0x395   :  { %v666_v30 = vmax.f32 %v661_v28, 0.0  ;;  %1194 = vmatpush.bf16.msra.mxu0 %v2993_v18 }
 0x397   :  { %v888_v31 = vpack.c.bf16 %v666_v30, %v665_v29  ;;  %v2981_v30 = vor.u32 %v3332_v20, %v2980_v19 }
 0x399   :  { %2957 = vmatmul.msk.bf16.gmra.mxu0 %vm929_vm3, %v888_v31  ;;  %2959 = vmatmul.msk.bf16.gmra.mxu1 %vm929_vm3, %v888_v31 }
 0x39a   :  { %v4510_v40 = vpop.f32.mrf.mxu3  ;;  %1169 = vmatpush.bf16.msrb.mxu3 %v2981_v30  ;;  %1195 = vmatpush.bf16.msra.mxu0 %v2985_v54 }
 0x39e   :  { %1170 = vmatpush.bf16.msrb.mxu3 %v2973_v0  ;;  %1196 = vmatpush.bf16.msra.mxu0 %v2977_v1  ;;  %v3114_v1 = vld [vmem:[#allocation28 + $0x70] sm:$0xf] }
 0x3a2   :  { %v870_v46 = vpop.f32.mrf.mxu3 }
 0x3a3   :  { %v871_v31 = vadd.f32 %v870_v46, %v4506_v35  ;;  %v868_v35 = vadd.f32 %v4510_v40, %v4502_v33 }
 0x3aa   :  { %v873_v4 = vpop.f32.mrf.mxu3 }
 0x3ab   :  { %v874_v28 = vadd.f32 %v873_v4, %v4508_v39  ;;  %v839_v39 = vadd.f32 %v4512_v41, %v4500_v32  ;;  %v3327_v4 = vld [vmem:[#allocation26 + $0x4] sm:$0xf] }
 0x3ac   :  { %v2969_v6 = vor.u32 %v3327_v4, %v2966_v5  ;;  %v3106_v4 = vld [vmem:[#allocation28 + $0x60] sm:$0xf]  ;;  %v3361_v5 = vld [vmem:[#allocation28 + $0x74] sm:$0xf] }
 0x3ae   :  { %1197 = vmatpush.bf16.msra.mxu0 %v2969_v6  ;;  %v3116_v6 = vld [vmem:[#allocation28 + $0x78] sm:$0xf0] }
 0x3b2   :  { %v876_v17 = vpop.f32.mrf.mxu3 }
 0x3b3   :  { %v877_v29 = vadd.f32 %v876_v17, %v806_v45 }
 0x406   :  { %v4514_v47 = vpop.f32.mrf.mxu0  ;;  %v4516_v48 = vpop.f32.mrf.mxu1 }
 0x407   :  { %v974_v63 = vadd.f32 %v4514_v47, %v839_v39  ;;  %v975_v2 = vadd.f32 %v4516_v48, %v868_v35 }
 0x409   :  { %v4550_v47 = vadd.f32 %v984_v50, %v974_v63  ;;  %v4552_v48 = vadd.f32 %v985_v51, %v975_v2  ;;  %v3362_v2 = vld [vmem:[#allocation28 + $0x74] sm:$0xf0] }
 0x40e   :  { %v4518_v61 = vpop.f32.mrf.mxu0  ;;  %v4520_v62 = vpop.f32.mrf.mxu1 }
 0x40f   :  { %v976_v45 = vadd.f32 %v4518_v61, %v842_v25  ;;  %v977_v46 = vadd.f32 %v4520_v62, %v871_v31  ;;  %v421_v61 = vld [vmem:[#allocation5] sm:$0x3]  ;;  %v2964_v62 = vld [vmem:[#allocation26] sm:$0xf] }
 0x410   :  { %v2965_v36 = vor.u32 %v3328_v3, %v2964_v62  ;;  %v3115_v3 = vor.u32 %v3362_v2, %v3114_v1  ;;  %v3066_v2 = vld [vmem:[#allocation28 + $0x10] sm:$0xf] }
 0x411   :  { %v4544_v33 = vadd.f32 %v984_v50, %v976_v45  ;;  %v4546_v40 = vadd.f32 %v985_v51, %v977_v46  ;;  %v422_v46 = vld [vmem:[#allocation8] sm:$0xff] }
 0x412   :  { %1171 = vmatpush.bf16.msrb.mxu3 %v2965_v36  ;;  %v3360_v36 = vld [vmem:[#allocation28 + $0x64] sm:$0xf0]  ;;  %1483 = vmatpush.bf16.msrb.mxu0 %v3115_v3 }
 0x413   :  { %v3107_v43 = vor.u32 %v3360_v36, %v3106_v4  ;;  %v3068_v4 = vld [vmem:[#allocation28 + $0x18] sm:$0xf0] }
 0x416   :  { %v950_v9 = vpop.f32.mrf.mxu0  ;;  %v969_v10 = vpop.f32.mrf.mxu1  ;;  %1484 = vmatpush.bf16.msrb.mxu0 %v3107_v43 }
 0x417   :  { %v978_v56 = vadd.f32 %v950_v9, %v845_v26  ;;  %v979_v57 = vadd.f32 %v969_v10, %v874_v28  ;;  %v3041_v9 = vor.u32 %v3345_v7, %v3038_v44  ;;  %v3028_v10 = vld [vmem:[#allocation26 + $0x80] sm:$0xf]  ;;  %v3358_v44 = vld [vmem:[#allocation28 + $0x54] sm:$0xf0] }
 0x418   :  { %v3029_v13 = vor.u32 %v3344_v11, %v3028_v10  ;;  %v3119_v10 = vor.u32 %v3361_v5, %v3116_v6  ;;  %v3058_v5 = vld [vmem:[#allocation28] sm:$0xf]  ;;  %v3348_v6 = vld [vmem:[#allocation28 + $0x4] sm:$0xf0] }
 0x419   :  { %v4538_v32 = vadd.f32 %v984_v50, %v978_v56  ;;  %v4540_v41 = vadd.f32 %v985_v51, %v979_v57  ;;  %v3059_v43 = vor.u32 %v3348_v6, %v3058_v5 }
 0x41e   :  { %v952_v52 = vpop.f32.mrf.mxu0  ;;  %v971_v53 = vpop.f32.mrf.mxu1 }
 0x41f   :  { %v980_v58 = vadd.f32 %v952_v52, %v848_v27  ;;  %v981_v34 = vadd.f32 %v971_v53, %v877_v29 }
 0x421   :  { %v4532_v59 = vadd.f32 %v984_v50, %v980_v58  ;;  %v4534_v60 = vadd.f32 %v985_v51, %v981_v34 }
 0x423   :  { %1011 = vmatpush.msrb.mxu1 %v4532_v59  ;;  %1031 = vmatpush.msra.mxu2 %v4534_v60 }
 0x425   :  { %1012 = vmatpush.msrb.mxu1 %v4538_v32  ;;  %1032 = vmatpush.msra.mxu2 %v4540_v41 }
 0x427   :  { %1013 = vmatpush.msrb.mxu1 %v4544_v33  ;;  %1033 = vmatpush.msra.mxu2 %v4546_v40 }
 0x429   :  { %1014 = vmatpush.msrb.mxu1 %v4550_v47  ;;  %1034 = vmatpush.msra.mxu2 %v4552_v48 }
 0x42a   :  { %2960 = vmatmul.msk.f32.vlgmr.msrb.gmra.mxu1 %vm493_vm2, %v421_v61  ;;  %2961 = vmatmul.msk.f32.vlgmr.msra.gmra.mxu2 %vm493_vm2, %v421_v61 }
 0x42b   :  { %1183 = vmatpush.bf16.msrb.mxu2 %v3037_v8  ;;  %1209 = vmatpush.bf16.msra.mxu1 %v3041_v9  ;;  %v3098_v8 = vld [vmem:[#allocation28 + $0x50] sm:$0xf] }
 0x42f   :  { %1184 = vmatpush.bf16.msrb.mxu2 %v3029_v13  ;;  %1210 = vmatpush.bf16.msra.mxu1 %v3033_v15  ;;  %v3108_v13 = vld [vmem:[#allocation28 + $0x68] sm:$0xf0]  ;;  %v3099_v15 = vor.u32 %v3358_v44, %v3098_v8 }
 0x431   :  { %1485 = vmatpush.bf16.msrb.mxu0 %v3099_v15 }
 0x4a7   :  { %v1016_v16 = vpop.f32.mrf.mxu1 }
 0x4a8   :  { %v1059_v17 = vpack.c.bf16 %v1016_v16, %v1016_v16  ;;  %v3111_v16 = vor.u32 %v3359_v12, %v3108_v13 }
 0x4aa   :  { %1172 = vmatmul.bf16.vlgmr.msrb.gmra.mxu3 %v1059_v17  ;;  %1198 = vmatmul.bf16.vlgmr.msra.gmra.mxu0 %v1059_v17  ;;  %v3357_v17 = vld [vmem:[#allocation28 + $0x54] sm:$0xf] }
 0x4ad   :  { %v1036_v18 = vpop.f32.mrf.mxu2 }
 0x4ae   :  { %v1060_v19 = vpack.c.bf16 %v1036_v18, %v1036_v18  ;;  %v3100_v18 = vld [vmem:[#allocation28 + $0x58] sm:$0xf0] }
 0x4b0   :  { %3042 = vmatmul.msk.bf16.vlgmr.msrb.gmra.mxu2 %vm493_vm2, %v1060_v19  ;;  %3043 = vmatmul.msk.bf16.vlgmr.msra.gmra.mxu1 %vm493_vm2, %v1060_v19  ;;  %v3103_v19 = vor.u32 %v3357_v17, %v3100_v18 }
 0x527   :  { %v1199_v20 = vpop.f32.mrf.mxu0 }
 0x52d   :  { %v1173_v21 = vpop.f32.mrf.mxu3  ;;  %v1212_v22 = vpop.f32.mrf.mxu1 }
 0x52e   :  { %v1213_v23 = vadd.f32 %v1212_v22, %v1199_v20  ;;  %v424_v20 = vld [vmem:[#allocation8 + $0x10] sm:$0xff]  ;;  %v3090_v22 = vld [vmem:[#allocation28 + $0x40] sm:$0xf] }
 0x52f   :  { %v1201_v24 = vpop.f32.mrf.mxu0 }
 0x530   :  { %v3045_v25 = vmul.f32 -1.442695, %v1213_v23  ;;  %v3356_v23 = vld [vmem:[#allocation28 + $0x44] sm:$0xf0]  ;;  %v3355_v24 = vld [vmem:[#allocation28 + $0x44] sm:$0xf] }
 0x532   :  { %3487 = vpow2.f32 %v3045_v25  ;;  %v3091_v25 = vor.u32 %v3356_v23, %v3090_v22 }
 0x533   :  { %v1186_v26 = vpop.f32.mrf.mxu2 }
 0x534   :  { %v1187_v27 = vadd.f32 %v1186_v26, %v1173_v21  ;;  %v425_v21 = vld [vmem:[#allocation8 + $0x18] sm:$0xff]  ;;  %v3092_v26 = vld [vmem:[#allocation28 + $0x48] sm:$0xf0]  ;;  %1486 = vmatpush.bf16.msrb.mxu0 %v3091_v25 }
 0x535   :  { %v1175_v28 = vpop.f32.mrf.mxu3  ;;  %v1214_v29 = vpop.f32.mrf.mxu1  ;;  %v3370_v25 = vld [vmem:[#allocation29 + $0x18] sm:$0xff] }
 0x536   :  { %v3044_v30 = vmul.f32 -1.442695, %v1187_v27  ;;  %v3095_v27 = vor.u32 %v3355_v24, %v3092_v26  ;;  %v3082_v28 = vld [vmem:[#allocation28 + $0x30] sm:$0xf]  ;;  %v3354_v29 = vld [vmem:[#allocation28 + $0x34] sm:$0xf0] }
 0x537   :  { %v3369_v26 = vld [vmem:[#allocation29 + $0x10] sm:$0xff] }
 0x538   :  { %v3488_v31 = vpop.eup %3487  ;;  %3489 = vpow2.f32 %v3044_v30  ;;  %v3353_v30 = vld [vmem:[#allocation28 + $0x34] sm:$0xf] }
 0x539   :  { %v1223_v50 = vadd.f32 1.0, %v3488_v31  ;;  %v3083_v31 = vor.u32 %v3354_v29, %v3082_v28  ;;  %v3367_v28 = vld [vmem:[#allocation29] sm:$0xff] }
 0x53a   :  { %v3375_v29 = vld [vmem:[#allocation29 + $0x40] sm:$0xff] }
 0x53b   :  { %3491 = vrcp.f32 %v1223_v50  ;;  %v1188_v51 = vpop.f32.mrf.mxu2  ;;  %v1250_v57 = vand.u32 2147483648, %v1223_v50  ;;  %v1248_v34 = vand.u32 2147483647, %v1223_v50  ;;  %vm1244_vm5 = vweird.f32 %v1223_v50  ;;  %1487 = vmatpush.bf16.msrb.mxu0 %v3083_v31  ;;  %v1371_v31 = vld [vmem:[%s4926_s1] sm:$0x3] }
 0x53d   :  { %v1251_v39 = vor.u32 1.1754944e-38, %v1250_v57  ;;  %vm1249_vm7 = vcmp.eq.f32.partialorder %v1248_v34, 8.507059e+37  ;;  %v3352_v34 = vld [vmem:[#allocation28 + $0x24] sm:$0xf0] }
 0x53e   :  { %v3490_v52 = vpop.eup %3489 }
 0x53f   :  { %v1222_v53 = vadd.f32 1.0, %v3490_v52  ;;  %v3130_v52 = vld [vmem:[#allocation28 + $0x90] sm:$0xf] }
 0x541   :  { %v3492_v54 = vpop.eup %3491  ;;  %3493 = vrcp.f32 %v1222_v53  ;;  %v1235_v0 = vand.u32 2147483648, %v1222_v53  ;;  %v1233_v62 = vand.u32 2147483647, %v1222_v53  ;;  %vm1229_vm10 = vweird.f32 %v1222_v53 }
 0x542   :  { %v1240_v55 = vmul.f32 %v3492_v54, %v1223_v50  ;;  %vm1245_vm4 = vweird.f32 %v3492_v54  ;;  %v3084_v50 = vld [vmem:[#allocation28 + $0x38] sm:$0xf0] }
 0x543   :  { %vm1246_vm6 = vmor %vm1244_vm5, %vm1245_vm4  ;;  %v1236_v7 = vor.u32 1.1754944e-38, %v1235_v0  ;;  %vm1234_vm12 = vcmp.eq.f32.partialorder %v1233_v62, 8.507059e+37  ;;  %v3087_v51 = vor.u32 %v3353_v30, %v3084_v50  ;;  %v3124_v0 = vld [vmem:[#allocation28 + $0x88] sm:$0xf0]  ;;  %v3349_v62 = vld [vmem:[#allocation28 + $0x14] sm:$0xf] }
 0x544   :  { %v1241_v56 = vsub.f32 1.0, %v1240_v55  ;;  %v3071_v36 = vor.u32 %v3349_v62, %v3068_v4 }
 0x546   :  { %v1242_v58 = vmul.f32 %v3492_v54, %v1241_v56  ;;  %v3132_v56 = vld [vmem:[#allocation28 + $0x98] sm:$0xf0] }
 0x547   :  { %v3494_v38 = vpop.eup %3493 }
 0x548   :  { %v1225_v42 = vmul.f32 %v3494_v38, %v1222_v53  ;;  %v1243_v49 = vadd.f32 %v3492_v54, %v1242_v58  ;;  %vm1230_vm9 = vweird.f32 %v3494_v38  ;;  %v3366_v53 = vld [vmem:[#allocation28 + $0x94] sm:$0xf0]  ;;  %v3074_v58 = vld [vmem:[#allocation28 + $0x20] sm:$0xf] }
 0x549   :  { %vm1231_vm11 = vmor %vm1229_vm10, %vm1230_vm9  ;;  %v3131_v55 = vor.u32 %v3366_v53, %v3130_v52 }
 0x54a   :  { %v1226_v35 = vsub.f32 1.0, %v1225_v42  ;;  %v1247_v45 = vsel %vm1246_vm6, %v3492_v54, %v1243_v49  ;;  %v3365_v54 = vld [vmem:[#allocation28 + $0x94] sm:$0xf]  ;;  %v3075_v42 = vor.u32 %v3352_v34, %v3074_v58  ;;  %v3076_v49 = vld [vmem:[#allocation28 + $0x28] sm:$0xf0] }
 0x54b   :  { %v1252_v63 = vsel %vm1249_vm7, %v1251_v39, %v1247_v45  ;;  %v3135_v57 = vor.u32 %v3365_v54, %v3132_v56  ;;  %1508 = vmatpush.bf16.msrb.mxu1 %v3131_v55  ;;  %v3364_v45 = vld [vmem:[#allocation28 + $0x84] sm:$0xf0]  ;;  %v1374_v56 = vperm.slane %v1371_v31, 1 }
 0x54c   :  { %3051 = vmatpush.msk.msra.mxu3 %vm444_vm0, %v1252_v63  ;;  %v1227_v61 = vmul.f32 %v3494_v38, %v1226_v35  ;;  %v3122_v35 = vld [vmem:[#allocation28 + $0x80] sm:$0xf]  ;;  %1488 = vmatpush.bf16.msrb.mxu0 %v3075_v42 }
 0x54d   :  { %3052 = vmatmul.msk.f32.vlgmr.msra.gmra.mxu3 %vm1254_vm8, %v422_v46  ;;  %v3123_v63 = vor.u32 %v3364_v45, %v3122_v35 }
 0x54e   :  { %v1228_v37 = vadd.f32 %v3494_v38, %v1227_v61  ;;  %1546 = vmatpush.bf16.msrb.mxu3 %v3135_v57  ;;  %v3350_v61 = vld [vmem:[#allocation28 + $0x14] sm:$0xf0] }
 0x54f   :  { %1509 = vmatpush.bf16.msrb.mxu1 %v3123_v63  ;;  %v3067_v3 = vor.u32 %v3350_v61, %v3066_v2 }
 0x550   :  { %v1232_v9 = vsel %vm1231_vm11, %v3494_v38, %v1228_v37  ;;  %v3351_v38 = vld [vmem:[#allocation28 + $0x24] sm:$0xf] }
 0x551   :  { %v1237_v11 = vsel %vm1234_vm12, %v1236_v7, %v1232_v9  ;;  %v3079_v39 = vor.u32 %v3351_v38, %v3076_v49  ;;  %1489 = vmatpush.bf16.msrb.mxu0 %v3067_v3  ;;  %v3347_v37 = vld [vmem:[#allocation28 + $0x4] sm:$0xf]  ;;  %v3060_v7 = vld [vmem:[#allocation28 + $0x8] sm:$0xf0] }
 0x552   :  { %3046 = vmatpush.msk.msra.mxu2 %vm444_vm0, %v1237_v11  ;;  %v3063_v8 = vor.u32 %v3347_v37, %v3060_v7  ;;  %v3373_v11 = vld [vmem:[#allocation29 + $0x30] sm:$0xff] }
 0x553   :  { %3047 = vmatmul.msk.f32.vlgmr.msra.gmra.mxu2 %vm1254_vm8, %v422_v46  ;;  %v3363_v46 = vld [vmem:[#allocation28 + $0x84] sm:$0xf] }
 0x554   :  { %1521 = vmatpush.bf16.msrb.mxu2 %v3119_v10  ;;  %v3127_v1 = vor.u32 %v3363_v46, %v3124_v0  ;;  %v3374_v10 = vld [vmem:[#allocation29 + $0x38] sm:$0xff] }
 0x555   :  { %3053 = vmatmul.msk.f32.gmra.mxu3 %vm1254_vm8, %v423_v14  ;;  %1490 = vmatpush.bf16.msrb.mxu0 %v3059_v43 }
 0x556   :  { %1547 = vmatpush.bf16.msrb.mxu3 %v3127_v1  ;;  %1661 = vmatpush.bf16.msra.mxu1 %v3374_v10 }
 0x558   :  { %1522 = vmatpush.bf16.msrb.mxu2 %v3111_v16 }
 0x55a   :  { %1662 = vmatpush.bf16.msra.mxu1 %v3373_v11 }
 0x55b   :  { %3048 = vmatmul.msk.f32.gmra.mxu2 %vm1254_vm8, %v423_v14 }
 0x55c   :  { %1523 = vmatpush.bf16.msrb.mxu2 %v3103_v19 }
 0x55d   :  { %3054 = vmatmul.msk.f32.gmra.mxu3 %vm1254_vm8, %v424_v20 }
 0x560   :  { %1524 = vmatpush.bf16.msrb.mxu2 %v3095_v27  ;;  %v3368_v27 = vld [vmem:[#allocation29 + $0x8] sm:$0xff] }
 0x563   :  { %3049 = vmatmul.msk.f32.gmra.mxu2 %vm1254_vm8, %v424_v20 }
 0x564   :  { %1525 = vmatpush.bf16.msrb.mxu2 %v3087_v51  ;;  %v1373_v51 = vperm.slane %v1371_v31, 0 }
 0x565   :  { %3055 = vmatmul.msk.f32.gmra.mxu3 %vm1254_vm8, %v425_v21 }
 0x568   :  { %1526 = vmatpush.bf16.msrb.mxu2 %v3079_v39 }
 0x56b   :  { %3050 = vmatmul.msk.f32.gmra.mxu2 %vm1254_vm8, %v425_v21 }
 0x56c   :  { %1527 = vmatpush.bf16.msrb.mxu2 %v3071_v36 }
 0x570   :  { %1528 = vmatpush.bf16.msrb.mxu2 %v3063_v8 }
 0x5d0   :  { %v1319_v44 = vpop.f32.mrf.mxu3 }
 0x5d1   :  { %v1332_v9 = vmul.f32 %v1319_v44, %v4552_v48 }
 0x5d3   :  { %1340 = vst.msk [vmem:[#allocation2 + $0x8] sm:$0xff] %vm493_vm2, %v1332_v9 }
 0x5d6   :  { %v1290_v12 = vpop.f32.mrf.mxu2 }
 0x5d7   :  { %v4575_v13 = vmul.f32 %v1290_v12, %v4550_v47 }
 0x5d8   :  { %v1322_v14 = vpop.f32.mrf.mxu3 }
 0x5d9   :  { %v1334_v15 = vmul.f32 %v1322_v14, %v4546_v40 }
 0x5db   :  { %1342 = vst.msk [vmem:[#allocation2 + $0x18] sm:$0xff] %vm493_vm2, %v1334_v15  ;;  %v1368_v16 = vpack.c.bf16 %v1334_v15, %v1332_v9 }
 0x5dd   :  { %3136 = vmatmul.msk.bf16.vlgmr.msrb.gmra.mxu1 %vm493_vm2, %v1368_v16  ;;  %3138 = vmatmul.msk.bf16.vlgmr.msrb.gmra.mxu3 %vm493_vm2, %v1368_v16 }
 0x5de   :  { %v1293_v48 = vpop.f32.mrf.mxu2 }
 0x5df   :  { %v4582_v17 = vmul.f32 %v1293_v48, %v4544_v33 }
 0x5e0   :  { %v1325_v18 = vpop.f32.mrf.mxu3 }
 0x5e1   :  { %v1367_v47 = vpack.c.bf16 %v4582_v17, %v4575_v13  ;;  %v1336_v19 = vmul.f32 %v1325_v18, %v4540_v41 }
 0x5e3   :  { %1344 = vst.msk [vmem:[#allocation2 + $0x28] sm:$0xff] %vm493_vm2, %v1336_v19  ;;  %1491 = vmatmul.bf16.vlgmr.msrb.gmra.mxu0 %v1367_v47  ;;  %1529 = vmatmul.bf16.vlgmr.msrb.gmra.mxu2 %v1367_v47 }
 0x5e6   :  { %v1296_v40 = vpop.f32.mrf.mxu2 }
 0x5e7   :  { %v4589_v20 = vmul.f32 %v1296_v40, %v4538_v32  ;;  %v3372_v32 = vld [vmem:[#allocation29 + $0x28] sm:$0xff] }
 0x5e8   :  { %v1328_v21 = vpop.f32.mrf.mxu3  ;;  %1663 = vmatpush.bf16.msra.mxu1 %v3372_v32 }
 0x5e9   :  { %v1338_v22 = vmul.f32 %v1328_v21, %v4534_v60  ;;  %v3371_v60 = vld [vmem:[#allocation29 + $0x20] sm:$0xff] }
 0x5ea   :  { %v3192_v21 = vld [vmem:[#allocation32 + $0x10] sm:$0xf] }
 0x5eb   :  { %1346 = vst.msk [vmem:[#allocation2 + $0x38] sm:$0xff] %vm493_vm2, %v1338_v22  ;;  %v1370_v33 = vpack.c.bf16 %v1338_v22, %v1336_v19  ;;  %v3380_v22 = vld [vmem:[#allocation32 + $0x14] sm:$0xf0] }
 0x5ec   :  { %1664 = vmatpush.bf16.msra.mxu1 %v3371_v60  ;;  %v3184_v60 = vld [vmem:[#allocation32] sm:$0xf] }
 0x5ed   :  { %3137 = vmatmul.msk.bf16.gmra.mxu1 %vm493_vm2, %v1370_v33  ;;  %3139 = vmatmul.msk.bf16.gmra.mxu3 %vm493_vm2, %v1370_v33  ;;  %v3379_v33 = vld [vmem:[#allocation32 + $0x14] sm:$0xf] }
 0x5ee   :  { %v1299_v23 = vpop.f32.mrf.mxu2 }
 0x5ef   :  { %v4596_v41 = vmul.f32 %v1299_v23, %v4532_v59  ;;  %v3376_v59 = vld [vmem:[#allocation29 + $0x48] sm:$0xff]  ;;  %v3193_v23 = vor.u32 %v3380_v22, %v3192_v21 }
 0x5f0   :  { %1665 = vmatpush.bf16.msra.mxu1 %v3370_v25  ;;  %1686 = vmatpush.bf16.msra.mxu0 %v3376_v59  ;;  %v3378_v25 = vld [vmem:[#allocation32 + $0x4] sm:$0xf0] }
 0x5f1   :  { %v1369_v24 = vpack.c.bf16 %v4596_v41, %v4589_v20  ;;  %1743 = vmatpush.bf16.msra.mxu2 %v3193_v23 }
 0x5f3   :  { %1496 = vmatmul.bf16.gmra.mxu0 %v1369_v24  ;;  %1534 = vmatmul.bf16.gmra.mxu2 %v1369_v24  ;;  %v3194_v24 = vld [vmem:[#allocation32 + $0x18] sm:$0xf0] }
 0x5f4   :  { %1666 = vmatpush.bf16.msra.mxu1 %v3369_v26  ;;  %1687 = vmatpush.bf16.msra.mxu0 %v3375_v29  ;;  %v3197_v32 = vor.u32 %v3379_v33, %v3194_v24  ;;  %v3377_v26 = vld [vmem:[#allocation32 + $0x4] sm:$0xf] }
 0x5f6   :  { %1762 = vmatpush.bf16.msra.mxu3 %v3197_v32 }
 0x5f8   :  { %1667 = vmatpush.bf16.msra.mxu1 %v3368_v27  ;;  %v3185_v27 = vor.u32 %v3378_v25, %v3184_v60 }
 0x5fa   :  { %1744 = vmatpush.bf16.msra.mxu2 %v3185_v27 }
 0x5fc   :  { %1668 = vmatpush.bf16.msra.mxu1 %v3367_v28  ;;  %v3186_v28 = vld [vmem:[#allocation32 + $0x8] sm:$0xf0] }
 0x5fd   :  { %v3189_v59 = vor.u32 %v3377_v26, %v3186_v28 }
 0x5ff   :  { %1763 = vmatpush.bf16.msra.mxu3 %v3189_v59 }
 0x65a   :  { %v1511_v30 = vpop.f32.mrf.mxu1 }
 0x660   :  { %v1492_v50 = vpop.f32.mrf.mxu0  ;;  %v1549_v52 = vpop.f32.mrf.mxu3 }
 0x661   :  { %v1493_v53 = vadd.f32 %v1492_v50, %v1373_v51  ;;  %v3481_v50 = vld [vmem:[#allocation31] ss:$0 sm:$0xff] }
 0x662   :  { %v1513_v54 = vpop.f32.mrf.mxu1 }
 0x663   :  { %v1512_v58 = vadd.f32 %v1511_v30, %v1493_v53 }
 0x665   :  { %v1559_v39 = vmax.f32 %v1512_v58, 0.0 }
 0x666   :  { %v1530_v55 = vpop.f32.mrf.mxu2 }
 0x667   :  { %v1531_v38 = vadd.f32 %v1530_v55, %v1374_v56 }
 0x668   :  { %v1494_v57 = vpop.f32.mrf.mxu0  ;;  %v1551_v49 = vpop.f32.mrf.mxu3 }
 0x669   :  { %v1495_v34 = vadd.f32 %v1494_v57, %v1373_v51  ;;  %v1550_v46 = vadd.f32 %v1549_v52, %v1531_v38 }
 0x66a   :  { %v1516_v1 = vpop.f32.mrf.mxu1 }
 0x66b   :  { %v1514_v42 = vadd.f32 %v1513_v54, %v1495_v34  ;;  %v1560_v62 = vmax.f32 %v1550_v46, 0.0  ;;  %v1705_v46 = vld [vmem:[%s4927_s26] sm:$0x3] }
 0x66d   :  { %v1561_v35 = vmax.f32 %v1514_v42, 0.0 }
 0x66e   :  { %v1532_v45 = vpop.f32.mrf.mxu2 }
 0x66f   :  { %v1587_v63 = vpack.c.bf16 %v1561_v35, %v1559_v39  ;;  %v1533_v0 = vadd.f32 %v1532_v45, %v1374_v56 }
 0x670   :  { %v1497_v2 = vpop.f32.mrf.mxu0  ;;  %v1554_v5 = vpop.f32.mrf.mxu3 }
 0x671   :  { %v1552_v61 = vadd.f32 %v1551_v49, %v1533_v0  ;;  %1669 = vmatmul.bf16.vlgmr.msra.gmra.mxu1 %v1587_v63  ;;  %v1498_v36 = vadd.f32 %v1497_v2, %v1373_v51  ;;  %v1707_v63 = vperm.slane %v1705_v46, 0  ;;  %v1708_v0 = vperm.slane %v1705_v46, 1 }
 0x672   :  { %v1518_v8 = vpop.f32.mrf.mxu1 }
 0x673   :  { %v1562_v3 = vmax.f32 %v1552_v61, 0.0  ;;  %v1517_v43 = vadd.f32 %v1516_v1, %v1498_v36 }
 0x675   :  { %v1588_v4 = vpack.c.bf16 %v1562_v3, %v1560_v62  ;;  %v1563_v10 = vmax.f32 %v1517_v43, 0.0 }
 0x676   :  { %v1535_v6 = vpop.f32.mrf.mxu2 }
 0x677   :  { %3180 = vmatmul.msk.bf16.vlgmr.msra.gmra.mxu0 %vm493_vm2, %v1588_v4  ;;  %v1536_v44 = vadd.f32 %v1535_v6, %v1374_v56 }
 0x678   :  { %v1499_v37 = vpop.f32.mrf.mxu0  ;;  %v1556_v48 = vpop.f32.mrf.mxu3 }
 0x679   :  { %v1500_v7 = vadd.f32 %v1499_v37, %v1373_v51  ;;  %v1555_v14 = vadd.f32 %v1554_v5, %v1536_v44 }
 0x67b   :  { %v1519_v9 = vadd.f32 %v1518_v8, %v1500_v7  ;;  %v1564_v47 = vmax.f32 %v1555_v14, 0.0 }
 0x67d   :  { %v1565_v11 = vmax.f32 %v1519_v9, 0.0 }
 0x67e   :  { %v1537_v12 = vpop.f32.mrf.mxu2 }
 0x67f   :  { %v1538_v15 = vadd.f32 %v1537_v12, %v1374_v56  ;;  %v1589_v16 = vpack.c.bf16 %v1565_v11, %v1563_v10 }
 0x681   :  { %v1557_v18 = vadd.f32 %v1556_v48, %v1538_v15  ;;  %1674 = vmatmul.bf16.gmra.mxu1 %v1589_v16 }
 0x683   :  { %v1566_v19 = vmax.f32 %v1557_v18, 0.0 }
 0x685   :  { %v1590_v40 = vpack.c.bf16 %v1566_v19, %v1564_v47 }
 0x687   :  { %3181 = vmatmul.msk.bf16.gmra.mxu0 %vm493_vm2, %v1590_v40 }
 0x6ee   :  { %v1670_v29 = vpop.f32.mrf.mxu1 }
 0x6ef   :  { %v1671_v51 = vadd.f32 %v3481_v50, %v1670_v29 }
 0x6f4   :  { %v1689_v30 = vpop.f32.mrf.mxu0 }
 0x6f5   :  { %v1690_v54 = vadd.f32 %v1689_v30, %v1671_v51 }
 0x6f6   :  { %v1672_v31 = vpop.f32.mrf.mxu1 }
 0x6f7   :  { %v1673_v52 = vadd.f32 %v3481_v50, %v1672_v31 }
 0x6fc   :  { %v1691_v53 = vpop.f32.mrf.mxu0 }
 0x6fd   :  { %v1692_v55 = vadd.f32 %v1691_v53, %v1673_v52 }
 0x6fe   :  { %v1675_v56 = vpop.f32.mrf.mxu1 }
 0x6ff   :  { %v1703_v57 = vpack.c.bf16 %v1692_v55, %v1690_v54  ;;  %v1676_v38 = vadd.f32 %v3481_v50, %v1675_v56 }
 0x701   :  { %3198 = vmatmul.msk.bf16.vlgmr.msra.gmra.mxu2 %vm493_vm2, %v1703_v57  ;;  %3200 = vmatmul.msk.bf16.vlgmr.msra.gmra.mxu3 %vm493_vm2, %v1703_v57 }
 0x704   :  { %v1694_v58 = vpop.f32.mrf.mxu0 }
 0x705   :  { %v1695_v39 = vadd.f32 %v1694_v58, %v1676_v38 }
 0x706   :  { %v1677_v34 = vpop.f32.mrf.mxu1 }
 0x707   :  { %v1678_v42 = vadd.f32 %v3481_v50, %v1677_v34 }
 0x70c   :  { %v1696_v49 = vpop.f32.mrf.mxu0 }
 0x70d   :  { %v1697_v35 = vadd.f32 %v1696_v49, %v1678_v42 }
 0x70f   :  { %v1704_v45 = vpack.c.bf16 %v1697_v35, %v1695_v39 }
 0x711   :  { %3199 = vmatmul.msk.bf16.gmra.mxu2 %vm493_vm2, %v1704_v45  ;;  %3201 = vmatmul.msk.bf16.gmra.mxu3 %vm493_vm2, %v1704_v45 }
 0x784   :  { %v1746_v1 = vpop.f32.mrf.mxu2  ;;  %v1765_v2 = vpop.f32.mrf.mxu3 }
 0x785   :  { %v4608_v61 = vadd.f32 %v1746_v1, %v1707_v63  ;;  %v1766_v62 = vadd.f32 %v1765_v2, %v1708_v0 }
 0x787   :  { %1795 = vrot.lane.b32.xlu0 %v4608_v61, %s4163_s28  ;;  %1776 = vst.msk [vmem:[#allocation3 + $0x8] sm:$0xff] %vm493_vm2, %v1766_v62 }
 0x78c   :  { %v1748_v3 = vpop.f32.mrf.mxu2  ;;  %v1767_v4 = vpop.f32.mrf.mxu3 }
 0x78d   :  { %v4613_v36 = vadd.f32 %v1748_v3, %v1707_v63  ;;  %v1768_v5 = vadd.f32 %v1767_v4, %v1708_v0 }
 0x78e   :  { %v4636_v21 = vld [vmem:[#allocation3 + $0x8] sm:$0xff] }
 0x78f   :  { %1797 = vrot.lane.b32.xlu0 %v4613_v36, %s4163_s28  ;;  %1778 = vst.msk [vmem:[#allocation3 + $0x18] sm:$0xff] %vm493_vm2, %v1768_v5 }
 0x794   :  { %v1751_v6 = vpop.f32.mrf.mxu2  ;;  %v1770_v37 = vpop.f32.mrf.mxu3 }
 0x795   :  { %v4618_v43 = vadd.f32 %v1751_v6, %v1707_v63  ;;  %v1771_v7 = vadd.f32 %v1770_v37, %v1708_v0 }
 0x796   :  { %v4649_v32 = vld [vmem:[#allocation3 + $0x18] sm:$0xff] }
 0x797   :  { %1799 = vrot.lane.b32.xlu1 %v4618_v43, %s4163_s28  ;;  %1780 = vst.msk [vmem:[#allocation3 + $0x28] sm:$0xff] %vm493_vm2, %v1771_v7 }
 0x79c   :  { %v1753_v8 = vpop.f32.mrf.mxu2  ;;  %v1772_v44 = vpop.f32.mrf.mxu3 }
 0x79d   :  { %v4623_v9 = vadd.f32 %v1753_v8, %v1707_v63  ;;  %v1773_v10 = vadd.f32 %v1772_v44, %v1708_v0 }
 0x79e   :  { %v4662_v28 = vld [vmem:[#allocation3 + $0x28] sm:$0xff] }
 0x79f   :  { %1801 = vrot.lane.b32.xlu1 %v4623_v9, %s4163_s28  ;;  %1782 = vst.msk [vmem:[#allocation3 + $0x38] sm:$0xff] %vm493_vm2, %v1773_v10 }
 0x7a6   :  { %v4675_v50 = vld [vmem:[#allocation3 + $0x38] sm:$0xff] }
 0x7f9   :  { %v1796_v11 = vpop.permute.xlu0 %1795 }
 0x7fa   :  { %v1807_v12 = vmax.f32 %v4608_v61, %v1796_v11 }
 0x7fc   :  { %1815 = vrot.lane.b32.xlu2 %v1807_v12, %s4142_s21 }
 0x801   :  { %v1798_v14 = vpop.permute.xlu0 %1797 }
 0x802   :  { %v1808_v15 = vmax.f32 %v4613_v36, %v1798_v14 }
 0x804   :  { %1817 = vrot.lane.b32.xlu2 %v1808_v15, %s4142_s21 }
 0x809   :  { %v1800_v16 = vpop.permute.xlu1 %1799 }
 0x80a   :  { %v1809_v48 = vmax.f32 %v4618_v43, %v1800_v16 }
 0x80c   :  { %1819 = vrot.lane.b32.xlu0 %v1809_v48, %s4142_s21 }
 0x811   :  { %v1802_v18 = vpop.permute.xlu1 %1801 }
 0x812   :  { %v1810_v47 = vmax.f32 %v4623_v9, %v1802_v18 }
 0x814   :  { %1821 = vrot.lane.b32.xlu1 %v1810_v47, %s4142_s21 }
 0x856   :  { %v1816_v19 = vpop.permute.xlu2 %1815 }
 0x857   :  { %v1827_v40 = vmax.f32 %v1807_v12, %v1816_v19 }
 0x859   :  { %v4639_v22 = vmax.f32 %v1827_v40, %v4636_v21 }
 0x85b   :  { %v1923_v33 = vsub.f32 %v4636_v21, %v4639_v22  ;;  %1851 = vrot.lane.b32.xlu2 %v4639_v22, %s4164_s3  ;;  %1899 = vrot.lane.b32.xlu0 %v4639_v22, %s4163_s28 }
 0x85c   :  { %1875 = vrot.lane.b32.xlu1 %v4639_v22, %s4142_s21 }
 0x85e   :  { %v1818_v23 = vpop.permute.xlu2 %1817 }
 0x85f   :  { %v1828_v24 = vmax.f32 %v1808_v15, %v1818_v23 }
 0x861   :  { %v4652_v60 = vmax.f32 %v1828_v24, %v4649_v32 }
 0x863   :  { %v1924_v25 = vsub.f32 %v4649_v32, %v4652_v60  ;;  %1877 = vrot.lane.b32.xlu2 %v4652_v60, %s4142_s21  ;;  %1853 = vrot.lane.b32.xlu0 %v4652_v60, %s4164_s3 }
 0x864   :  { %1901 = vrot.lane.b32.xlu1 %v4652_v60, %s4163_s28 }
 0x87e   :  { %v1820_v26 = vpop.permute.xlu0 %1819 }
 0x87f   :  { %v1829_v27 = vmax.f32 %v1809_v48, %v1820_v26 }
 0x881   :  { %v4665_v59 = vmax.f32 %v1829_v27, %v4662_v28 }
 0x883   :  { %v1925_v29 = vsub.f32 %v4662_v28, %v4665_v59  ;;  %1903 = vrot.lane.b32.xlu0 %v4665_v59, %s4163_s28  ;;  %1855 = vrot.lane.b32.xlu2 %v4665_v59, %s4164_s3 }
 0x884   :  { %1879 = vrot.lane.b32.xlu1 %v4665_v59, %s4142_s21 }
 0x886   :  { %v1822_v30 = vpop.permute.xlu1 %1821 }
 0x887   :  { %v1830_v31 = vmax.f32 %v1810_v47, %v1822_v30 }
 0x889   :  { %v4678_v51 = vmax.f32 %v1830_v31, %v4675_v50 }
 0x88b   :  { %v1926_v52 = vsub.f32 %v4675_v50, %v4678_v51  ;;  %1881 = vrot.lane.b32.xlu2 %v4678_v51, %s4142_s21  ;;  %1857 = vrot.lane.b32.xlu0 %v4678_v51, %s4164_s3 }
 0x88c   :  { %1905 = vrot.lane.b32.xlu1 %v4678_v51, %s4163_s28 }
 0x8b5   :  { %v1852_v53 = vpop.permute.xlu2 %1851 }
 0x8b6   :  { %v1863_v54 = vsub.f32 %v4608_v61, %v1852_v53 }
 0x8b8   :  { %v1867_v55 = vmul.f32 1.442695, %v1863_v54 }
 0x8ba   :  { %3495 = vpow2.f32 %v1867_v55 }
 0x8bd   :  { %v1878_v56 = vpop.permute.xlu2 %1877 }
 0x8be   :  { %v1888_v58 = vsub.f32 %v4613_v36, %v1878_v56 }
 0x8c0   :  { %v3496_v57 = vpop.eup %3495  ;;  %v1893_v34 = vmul.f32 1.442695, %v1888_v58 }
 0x8c1   :  { %1939 = vrot.lane.b32.xlu2 %v3496_v57, %s4163_s28  ;;  %v2011_v38 = vmul.f32 %v3496_v57, %v4575_v13 }
 0x8c2   :  { %3497 = vpow2.f32 %v1893_v34 }
 0x8c8   :  { %v3498_v45 = vpop.eup %3497 }
 0x8c9   :  { %2019 = vrot.lane.b32.xlu2 %v2011_v38, %s4163_s28  ;;  %v2036_v1 = vmul.f32 %v3498_v45, %v4582_v17 }
 0x8cd   :  { %v1900_v42 = vpop.permute.xlu0 %1899 }
 0x8ce   :  { %v1911_v49 = vsub.f32 %v4608_v61, %v1900_v42  ;;  %v1876_v39 = vpop.permute.xlu1 %1875 }
 0x8cf   :  { %v1887_v35 = vsub.f32 %v4608_v61, %v1876_v39 }
 0x8d0   :  { %v1915_v46 = vmul.f32 1.442695, %v1911_v49 }
 0x8d1   :  { %v1891_v63 = vmul.f32 1.442695, %v1887_v35  ;;  %1961 = vrot.lane.b32.xlu2 %v3498_v45, %s4142_s21 }
 0x8d2   :  { %3499 = vpow2.f32 %v1915_v46 }
 0x8d3   :  { %3501 = vpow2.f32 %v1891_v63 }
 0x8d5   :  { %v1854_v0 = vpop.permute.xlu0 %1853 }
 0x8d6   :  { %v1902_v62 = vpop.permute.xlu1 %1901  ;;  %v1864_v4 = vsub.f32 %v4613_v36, %v1854_v0 }
 0x8d7   :  { %v1912_v5 = vsub.f32 %v4613_v36, %v1902_v62  ;;  %v1927_v62 = vmul.f32 1.442695, %v1923_v33 }
 0x8d8   :  { %v3500_v2 = vpop.eup %3499  ;;  %v1869_v6 = vmul.f32 1.442695, %v1864_v4  ;;  %v3384_v4 = vld [vmem:[#allocation34 + $0x8] sm:$0xff] }
 0x8d9   :  { %v3502_v3 = vpop.eup %3501  ;;  %2045 = vrot.lane.b32.xlu2 %v2036_v1, %s4142_s21  ;;  %1979 = vrot.lane.b32.xlu0 %v3500_v2, %s4164_s3  ;;  %v1917_v8 = vmul.f32 1.442695, %v1912_v5  ;;  %v2059_v44 = vmul.f32 %v3500_v2, %v4575_v13  ;;  %v1835_v1 = vsub.f32 %v4608_v61, %v4639_v22 }
 0x8da   :  { %1959 = vrot.lane.b32.xlu1 %v3502_v3, %s4142_s21  ;;  %v2035_v11 = vmul.f32 %v3502_v3, %v4575_v13  ;;  %3503 = vpow2.f32 %v1869_v6  ;;  %2141 = vmatpush.bf16.msrb.mxu1 %v3384_v4 }
 0x8db   :  { %v1839_v2 = vmul.f32 1.442695, %v1835_v1  ;;  %v1838_v1 = vsub.f32 %v4623_v9, %v4678_v51 }
 0x8dd   :  { %v1856_v37 = vpop.permute.xlu2 %1855 }
 0x8de   :  { %v1865_v7 = vsub.f32 %v4618_v43, %v1856_v37 }
 0x8e0   :  { %v1871_v10 = vmul.f32 1.442695, %v1865_v7  ;;  %v3504_v12 = vpop.eup %3503 }
 0x8e1   :  { %2067 = vrot.lane.b32.xlu0 %v2059_v44, %s4164_s3  ;;  %v2012_v19 = vmul.f32 %v3504_v12, %v4582_v17 }
 0x8e2   :  { %3505 = vpow2.f32 %v1871_v10  ;;  %2043 = vrot.lane.b32.xlu1 %v2035_v11, %s4142_s21  ;;  %v1836_v10 = vsub.f32 %v4613_v36, %v4652_v60 }
 0x8e3   :  { %3507 = vpow2.f32 %v1917_v8  ;;  %v3383_v8 = vld [vmem:[#allocation34] sm:$0xff] }
 0x8e4   :  { %2142 = vmatpush.bf16.msrb.mxu1 %v3383_v8  ;;  %v1841_v33 = vmul.f32 1.442695, %v1836_v10  ;;  %v1933_v8 = vmul.f32 1.442695, %v1926_v52  ;;  %v2085_v52 = vld [vmem:[#allocation2 + $0x28] sm:$0xff] }
 0x8e5   :  { %v1882_v14 = vpop.permute.xlu2 %1881 }
 0x8e6   :  { %v1890_v48 = vsub.f32 %v4623_v9, %v1882_v14 }
 0x8e8   :  { %v3506_v15 = vpop.eup %3505  ;;  %v1897_v18 = vmul.f32 1.442695, %v1890_v48 }
 0x8e9   :  { %v3508_v16 = vpop.eup %3507  ;;  %1943 = vrot.lane.b32.xlu2 %v3506_v15, %s4163_s28  ;;  %1941 = vrot.lane.b32.xlu0 %v3504_v12, %s4163_s28  ;;  %v2013_v47 = vmul.f32 %v3506_v15, %v4589_v20 }
 0x8ea   :  { %1981 = vrot.lane.b32.xlu1 %v3508_v16, %s4164_s3  ;;  %v2060_v40 = vmul.f32 %v3508_v16, %v4582_v17  ;;  %3509 = vpow2.f32 %v1897_v18  ;;  %v2083_v18 = vld [vmem:[#allocation2 + $0x8] sm:$0xff] }
 0x8f0   :  { %v3510_v30 = vpop.eup %3509 }
 0x8f1   :  { %2023 = vrot.lane.b32.xlu2 %v2013_v47, %s4163_s28  ;;  %2021 = vrot.lane.b32.xlu0 %v2012_v19, %s4163_s28  ;;  %v2038_v56 = vmul.f32 %v3510_v30, %v4596_v41  ;;  %v1929_v47 = vmul.f32 1.442695, %v1924_v25  ;;  %v1837_v25 = vsub.f32 %v4618_v43, %v4665_v59 }
 0x8f2   :  { %2069 = vrot.lane.b32.xlu1 %v2060_v40, %s4164_s3 }
 0x8f5   :  { %v1904_v23 = vpop.permute.xlu0 %1903 }
 0x8f6   :  { %v1913_v24 = vsub.f32 %v4618_v43, %v1904_v23  ;;  %v1880_v26 = vpop.permute.xlu1 %1879 }
 0x8f7   :  { %v1889_v27 = vsub.f32 %v4618_v43, %v1880_v26 }
 0x8f8   :  { %v1919_v31 = vmul.f32 1.442695, %v1913_v24 }
 0x8f9   :  { %v1895_v53 = vmul.f32 1.442695, %v1889_v27  ;;  %1965 = vrot.lane.b32.xlu2 %v3510_v30, %s4142_s21 }
 0x8fa   :  { %3511 = vpow2.f32 %v1919_v31 }
 0x8fb   :  { %3513 = vpow2.f32 %v1895_v53 }
 0x8fd   :  { %v1858_v54 = vpop.permute.xlu0 %1857 }
 0x8fe   :  { %v1866_v55 = vsub.f32 %v4623_v9, %v1858_v54  ;;  %v1906_v34 = vpop.permute.xlu1 %1905 }
 0x8ff   :  { %v1914_v42 = vsub.f32 %v4623_v9, %v1906_v34 }
 0x900   :  { %v3512_v57 = vpop.eup %3511  ;;  %v1873_v58 = vmul.f32 1.442695, %v1866_v55 }
 0x901   :  { %v3514_v38 = vpop.eup %3513  ;;  %2049 = vrot.lane.b32.xlu2 %v2038_v56, %s4142_s21  ;;  %1983 = vrot.lane.b32.xlu0 %v3512_v57, %s4164_s3  ;;  %v1921_v49 = vmul.f32 1.442695, %v1914_v42  ;;  %v2061_v63 = vmul.f32 %v3512_v57, %v4589_v20 }
 0x902   :  { %3515 = vpow2.f32 %v1873_v58  ;;  %1963 = vrot.lane.b32.xlu1 %v3514_v38, %s4142_s21  ;;  %v2037_v35 = vmul.f32 %v3514_v38, %v4589_v20  ;;  %v2084_v38 = vld [vmem:[#allocation2 + $0x18] sm:$0xff] }
 0x903   :  { %3517 = vpow2.f32 %v1921_v49  ;;  %v1843_v49 = vmul.f32 1.442695, %v1837_v25 }
 0x904   :  { %3519 = vpow2.f32 %v1839_v2 }
 0x905   :  { %3521 = vpow2.f32 %v1927_v62 }
 0x908   :  { %v3516_v39 = vpop.eup %3515 }
 0x909   :  { %1945 = vrot.lane.b32.xlu0 %v3516_v39, %s4163_s28  ;;  %v2014_v45 = vmul.f32 %v3516_v39, %v4596_v41  ;;  %v3518_v46 = vpop.eup %3517 }
 0x90a   :  { %2047 = vrot.lane.b32.xlu1 %v2037_v35, %s4142_s21  ;;  %v2062_v0 = vmul.f32 %v3518_v46, %v4596_v41  ;;  %v3520_v5 = vpop.eup %3519 }
 0x90b   :  { %v3522_v11 = vpop.eup %3521  ;;  %v2007_v21 = vmul.f32 %v3520_v5, %v4575_v13 }
 0x90c   :  { %v2087_v36 = vmul.f32 %v3522_v11, %v2083_v18 }
 0x911   :  { %2025 = vrot.lane.b32.xlu0 %v2014_v45, %s4163_s28 }
 0x912   :  { %1985 = vrot.lane.b32.xlu1 %v3518_v46, %s4164_s3 }
 0x919   :  { %2071 = vrot.lane.b32.xlu0 %v2061_v63, %s4164_s3 }
 0x91a   :  { %2073 = vrot.lane.b32.xlu1 %v2062_v0, %s4164_s3 }
 0x91b   :  { %v1940_v3 = vpop.permute.xlu2 %1939 }
 0x91c   :  { %v1951_v6 = vadd.f32 %v3520_v5, %v1940_v3  ;;  %v1845_v5 = vmul.f32 1.442695, %v1838_v1 }
 0x923   :  { %v2020_v12 = vpop.permute.xlu2 %2019 }
 0x924   :  { %v2031_v14 = vadd.f32 %v2020_v12, %v2007_v21 }
 0x92b   :  { %v1962_v24 = vpop.permute.xlu2 %1961 }
 0x933   :  { %v2046_v60 = vpop.permute.xlu2 %2045 }
 0x943   :  { %v1944_v63 = vpop.permute.xlu2 %1943 }
 0x94b   :  { %v1980_v37 = vpop.permute.xlu0 %1979 }
 0x94c   :  { %v1960_v7 = vpop.permute.xlu1 %1959 }
 0x94d   :  { %v1971_v44 = vadd.f32 %v1960_v7, %v1951_v6 }
 0x94f   :  { %v1991_v61 = vadd.f32 %v1980_v37, %v1971_v44  ;;  %v2024_v37 = vpop.permute.xlu2 %2023 }
 0x951   :  { %v1995_v22 = vadd.f32 %v3522_v11, %v1991_v61 }
 0x953   :  { %3523 = vrcp.f32 %v1995_v22  ;;  %v2068_v15 = vpop.permute.xlu0 %2067 }
 0x954   :  { %v2044_v16 = vpop.permute.xlu1 %2043  ;;  %3525 = vpow2.f32 %v1841_v33 }
 0x955   :  { %v2055_v48 = vadd.f32 %v2044_v16, %v2031_v14  ;;  %3527 = vpow2.f32 %v1929_v47 }
 0x957   :  { %v2079_v19 = vadd.f32 %v2068_v15, %v2055_v48  ;;  %v1966_v61 = vpop.permute.xlu2 %1965 }
 0x959   :  { %v3524_v40 = vpop.eup %3523  ;;  %v2091_v23 = vadd.f32 %v2087_v36, %v2079_v19 }
 0x95a   :  { %v3526_v26 = vpop.eup %3525 }
 0x95b   :  { %v4747_v13 = vmul.f32 %v3524_v40, %v2091_v23  ;;  %v1942_v27 = vpop.permute.xlu0 %1941  ;;  %v3528_v55 = vpop.eup %3527  ;;  %v2008_v57 = vmul.f32 %v3526_v26, %v4582_v17  ;;  %v1931_v17 = vmul.f32 1.442695, %v1925_v29 }
 0x95c   :  { %v1952_v30 = vadd.f32 %v3526_v26, %v1942_v27  ;;  %v1982_v31 = vpop.permute.xlu1 %1981  ;;  %v2088_v39 = vmul.f32 %v3528_v55, %v2084_v38 }
 0x95e   :  { %v1972_v53 = vadd.f32 %v1962_v24, %v1952_v30  ;;  %v2086_v24 = vld [vmem:[#allocation2 + $0x38] sm:$0xff] }
 0x95f   :  { %v2050_v50 = vpop.permute.xlu2 %2049 }
 0x960   :  { %v1992_v54 = vadd.f32 %v1982_v31, %v1972_v53 }
 0x962   :  { %v1996_v56 = vadd.f32 %v3528_v55, %v1992_v54 }
 0x963   :  { %v2022_v32 = vpop.permute.xlu0 %2021 }
 0x964   :  { %3529 = vrcp.f32 %v1996_v56  ;;  %v2032_v58 = vadd.f32 %v2022_v32, %v2008_v57  ;;  %v2070_v42 = vpop.permute.xlu1 %2069  ;;  %v3482_v56 = vld [vmem:[%s4928_s27] ss:$0 sm:$0xff] }
 0x965   :  { %3531 = vpow2.f32 %v1843_v49 }
 0x966   :  { %v2056_v34 = vadd.f32 %v2046_v60, %v2032_v58  ;;  %3533 = vpow2.f32 %v1931_v17 }
 0x967   :  { %3535 = vpow2.f32 %v1845_v5 }
 0x968   :  { %v2080_v35 = vadd.f32 %v2070_v42, %v2056_v34  ;;  %3537 = vpow2.f32 %v1933_v8 }
 0x96a   :  { %v3530_v45 = vpop.eup %3529  ;;  %v2092_v46 = vadd.f32 %v2088_v39, %v2080_v35 }
 0x96b   :  { %v3532_v2 = vpop.eup %3531 }
 0x96c   :  { %v4752_v0 = vmul.f32 %v3530_v45, %v2092_v46  ;;  %v1953_v62 = vadd.f32 %v3532_v2, %v1944_v63  ;;  %v3534_v59 = vpop.eup %3533  ;;  %v2009_v15 = vmul.f32 %v3532_v2, %v4589_v20 }
 0x96d   :  { %v3536_v10 = vpop.eup %3535  ;;  %v2089_v19 = vmul.f32 %v3534_v59, %v2085_v52 }
 0x96e   :  { %v4759_v43 = vpack.c.bf16 %v4752_v0, %v4747_v13  ;;  %v2010_v22 = vmul.f32 %v3536_v10, %v4596_v41  ;;  %v3538_v14 = vpop.eup %3537  ;;  %v2033_v18 = vadd.f32 %v2024_v37, %v2009_v15 }
 0x96f   :  { %v2090_v26 = vmul.f32 %v3538_v14, %v2086_v24 }
 0x970   :  { %3210 = vmatmul.msk.bf16.vlgmr.msrb.gmra.mxu1 %vm493_vm2, %v4759_v43 }
 0x973   :  { %v1984_v3 = vpop.permute.xlu0 %1983 }
 0x974   :  { %v1964_v4 = vpop.permute.xlu1 %1963 }
 0x975   :  { %v1973_v6 = vadd.f32 %v1964_v4, %v1953_v62  ;;  %v3382_v62 = vld [vmem:[%s4309_s12 + $0x8] sm:$0xff]  ;;  %v3381_v4 = vld [vmem:[%s4309_s12] sm:$0xff] }
 0x977   :  { %v1993_v28 = vadd.f32 %v1984_v3, %v1973_v6  ;;  %v4797_v6 = vld [vmem:[#allocation10] sm:$0xff] }
 0x979   :  { %v1997_v29 = vadd.f32 %v3534_v59, %v1993_v28 }
 0x97b   :  { %v1946_v7 = vpop.permute.xlu0 %1945  ;;  %3539 = vrcp.f32 %v1997_v29 }
 0x97c   :  { %v2048_v44 = vpop.permute.xlu1 %2047  ;;  %v1954_v9 = vadd.f32 %v3536_v10, %v1946_v7  ;;  %v4801_v7 = vld [vmem:[#allocation10 + $0x8] sm:$0xff] }
 0x97d   :  { %v2057_v51 = vadd.f32 %v2048_v44, %v2033_v18 }
 0x97e   :  { %v1974_v12 = vadd.f32 %v1966_v61, %v1954_v9  ;;  %v4805_v9 = vld [vmem:[#allocation10 + $0x10] sm:$0xff] }
 0x981   :  { %v3540_v27 = vpop.eup %3539 }
 0x983   :  { %v2026_v11 = vpop.permute.xlu0 %2025 }
 0x984   :  { %v1986_v21 = vpop.permute.xlu1 %1985  ;;  %v2034_v16 = vadd.f32 %v2026_v11, %v2010_v22  ;;  %v4809_v22 = vld [vmem:[#allocation10 + $0x18] sm:$0xff] }
 0x985   :  { %v1994_v33 = vadd.f32 %v1986_v21, %v1974_v12 }
 0x986   :  { %v2058_v36 = vadd.f32 %v2050_v50, %v2034_v16 }
 0x987   :  { %v1998_v48 = vadd.f32 %v3538_v14, %v1994_v33 }
 0x989   :  { %3541 = vrcp.f32 %v1998_v48 }
 0x98b   :  { %v2072_v47 = vpop.permute.xlu0 %2071 }
 0x98c   :  { %v2081_v40 = vadd.f32 %v2072_v47, %v2057_v51  ;;  %v2074_v23 = vpop.permute.xlu1 %2073 }
 0x98d   :  { %v2082_v41 = vadd.f32 %v2074_v23, %v2058_v36 }
 0x98e   :  { %v2093_v30 = vadd.f32 %v2089_v19, %v2081_v40 }
 0x98f   :  { %v3542_v20 = vpop.eup %3541  ;;  %v2094_v31 = vadd.f32 %v2090_v26, %v2082_v41 }
 0x990   :  { %v4770_v53 = vmul.f32 %v3540_v27, %v2093_v30 }
 0x991   :  { %v4772_v54 = vmul.f32 %v3542_v20, %v2094_v31 }
 0x993   :  { %v2108_v55 = vpack.c.bf16 %v4772_v54, %v4770_v53 }
 0x995   :  { %3211 = vmatmul.msk.bf16.gmra.mxu1 %vm493_vm2, %v2108_v55 }
 0x9ed   :  { %v2144_v57 = vpop.f32.mrf.mxu1 }
 0x9ee   :  { %v2145_v32 = vadd.f32 %v3482_v56, %v2144_v57 }
 0x9f0   :  { %2155 = vst.msk [vmem:[#allocation4] sm:$0xff] %vm2154_vm13, %v2145_v32 }
 0x9f5   :  { %v2146_v60 = vpop.f32.mrf.mxu1 }
 0x9f6   :  { %v2147_v25 = vadd.f32 %v3482_v56, %v2146_v60 }
 0x9f7   :  { %v2159_v58 = vld [vmem:[#allocation4] sm:$0xff] }
 0x9f8   :  { %2156 = vst.msk [vmem:[#allocation4 + $0x8] sm:$0xff] %vm2154_vm13, %v2147_v25 }
 0x9ff   :  { %v2160_v34 = vld [vmem:[#allocation4 + $0x8] sm:$0xff] }
 0xa00   :  { %v4780_v38 = vpack.c.bf16 %v2160_v34, %v2159_v58 }
 0xa02   :  { %2167 = vrot.lane.b32.xlu0 %v4780_v38, %s4163_s28 }
 0xa12   :  { %v2149_v42 = vpop.f32.mrf.mxu1 }
 0xa13   :  { %v2150_v49 = vadd.f32 %v3482_v56, %v2149_v42 }
 0xa15   :  { %2157 = vst.msk [vmem:[#allocation4 + $0x10] sm:$0xff] %vm2154_vm13, %v2150_v49 }
 0xa1a   :  { %v2151_v39 = vpop.f32.mrf.mxu1 }
 0xa1b   :  { %v2152_v35 = vadd.f32 %v3482_v56, %v2151_v39 }
 0xa1c   :  { %v2161_v45 = vld [vmem:[#allocation4 + $0x10] sm:$0xff] }
 0xa1d   :  { %2158 = vst.msk [vmem:[#allocation4 + $0x18] sm:$0xff] %vm2154_vm13, %v2152_v35 }
 0xa24   :  { %v2162_v46 = vld [vmem:[#allocation4 + $0x18] sm:$0xff] }
 0xa25   :  { %v2164_v63 = vpack.c.bf16 %v2162_v46, %v2161_v45 }
 0xa27   :  { %2169 = vrot.lane.b32.xlu2 %v2164_v63, %s4163_s28 }
 0xa74   :  { %v2168_v2 = vpop.permute.xlu0 %2167 }
 0xa75   :  { %v2178_v3 = vsel %vm493_vm2, %v2168_v2, 0  ;;  %v3386_v2 = vld [vmem:[#allocation35 + $0x8] sm:$0xff] }
 0xa76   :  { %2317 = vmatpush.bf16.msrb.mxu3 %v3386_v2 }
 0xa81   :  { %v2170_v17 = vpop.permute.xlu2 %2169 }
 0xa82   :  { %v2181_v1 = vsel %vm493_vm2, %v2170_v17, 0 }
 0xa83   :  { %2189 = vmatpush.bf16.xpose.msrb.mxu0 %v2181_v1 }
 0xa8b   :  { %2190 = vmatpush.bf16.xpose.msrb.mxu0 %v2178_v3 }
 0xa92   :  { %3212 = vmatmul.msk.bf16.vlgmr.msrb.gmra.mxu0 %vm493_vm2, %v4780_v38 }
 0xa93   :  { %2404 = vmatpush.bf16.msra.mxu0 %v3382_v62  ;;  %v3385_v62 = vld [vmem:[#allocation35] sm:$0xff] }
 0xa94   :  { %2318 = vmatpush.bf16.msrb.mxu3 %v3385_v62 }
 0xa97   :  { %2405 = vmatpush.bf16.msra.mxu0 %v3381_v4 }
 0xaa2   :  { %3213 = vmatmul.msk.bf16.gmra.mxu0 %vm493_vm2, %v2164_v63 }
 0xab2   :  { %3248 = vmatmul.msk.bf16.vlgmr.msra.gmra.mxu0 %vm493_vm2, %v4759_v43 }
 0xac2   :  { %3249 = vmatmul.msk.bf16.gmra.mxu0 %vm493_vm2, %v2108_v55 }
 0xb0f   :  { %v2192_v5 = vpop.f32.mrf.mxu0 }
 0xb10   :  { %v2202_v37 = vmul.f32 0.17677669, %v2192_v5 }
 0xb12   :  { %v2206_v28 = vadd.f32 %v2202_v37, %v4797_v6 }
 0xb14   :  { %v2210_v59 = vsel %vm493_vm2, %v2206_v28, -inf }
 0xb15   :  { %2211 = vmax.xlane.f32.xlu1 %v2210_v59 }
 0xb17   :  { %v2194_v29 = vpop.f32.mrf.mxu0 }
 0xb18   :  { %v2203_v8 = vmul.f32 0.17677669, %v2194_v29  ;;  %v3388_v29 = vld [vmem:[%s4309_s12 + $0x18] sm:$0xff] }
 0xb19   :  { %2373 = vmatpush.bf16.msra.mxu1 %v3388_v29 }
 0xb1a   :  { %v2207_v44 = vadd.f32 %v2203_v8, %v4801_v7  ;;  %v3390_v8 = vld [vmem:[#allocation34 + $0x18] sm:$0xff] }
 0xb1c   :  { %v2213_v10 = vsel %vm493_vm2, %v2207_v44, -inf }
 0xb1d   :  { %2214 = vmax.xlane.f32.xlu2 %v2213_v10  ;;  %v3389_v10 = vld [vmem:[#allocation34 + $0x10] sm:$0xff] }
 0xb1f   :  { %v2197_v43 = vpop.f32.mrf.mxu0 }
 0xb20   :  { %v2204_v61 = vmul.f32 0.17677669, %v2197_v43 }
 0xb22   :  { %v2208_v11 = vadd.f32 %v2204_v61, %v4805_v9 }
 0xb24   :  { %v2216_v12 = vsel %vm493_vm2, %v2208_v11, -inf }
 0xb25   :  { %2217 = vmax.xlane.f32.xlu0 %v2216_v12 }
 0xb27   :  { %v2199_v21 = vpop.f32.mrf.mxu0 }
 0xb28   :  { %v2205_v33 = vmul.f32 0.17677669, %v2199_v21 }
 0xb2a   :  { %v2209_v14 = vadd.f32 %v2205_v33, %v4809_v22 }
 0xb2c   :  { %v2219_v15 = vsel %vm493_vm2, %v2209_v14, -inf }
 0xb2d   :  { %2220 = vmax.xlane.f32.xlu2 %v2219_v15 }
 0xb39   :  { %2258 = vrot.lane.b32.xlu0 %v2164_v63, %s4142_s21 }
 0xb88   :  { %v2212_v16 = vpop.xlane.xlu1 %2211 }
 0xb89   :  { %v2222_v48 = vsub.f32 %v2206_v28, %v2212_v16 }
 0xb8b   :  { %v2226_v18 = vmul.f32 1.442695, %v2222_v48 }
 0xb8d   :  { %3543 = vpow2.f32 %v2226_v18 }
 0xb90   :  { %v2215_v50 = vpop.xlane.xlu2 %2214 }
 0xb91   :  { %v2223_v51 = vsub.f32 %v2207_v44, %v2215_v50  ;;  %v3387_v44 = vld [vmem:[%s4309_s12 + $0x10] sm:$0xff] }
 0xb92   :  { %2374 = vmatpush.bf16.msra.mxu1 %v3387_v44 }
 0xb93   :  { %v3544_v52 = vpop.eup %3543  ;;  %v2228_v47 = vmul.f32 1.442695, %v2223_v51 }
 0xb94   :  { %v2234_v36 = vsel %vm493_vm2, %v3544_v52, 0.0 }
 0xb95   :  { %3545 = vpow2.f32 %v2228_v47  ;;  %2235 = vadd.xlane.f32.xlu1 %v2234_v36 }
 0xb98   :  { %v2218_v19 = vpop.xlane.xlu0 %2217 }
 0xb99   :  { %v2224_v40 = vsub.f32 %v2208_v11, %v2218_v19  ;;  %v3483_v11 = vld [vmem:[%s4304_s8] ss:$0 sm:$0xff] }
 0xb9b   :  { %v3546_v23 = vpop.eup %3545  ;;  %v2230_v24 = vmul.f32 1.442695, %v2224_v40 }
 0xb9c   :  { %v2237_v41 = vsel %vm493_vm2, %v3546_v23, 0.0 }
 0xb9d   :  { %3547 = vpow2.f32 %v2230_v24  ;;  %2238 = vadd.xlane.f32.xlu2 %v2237_v41 }
 0xba0   :  { %v2221_v26 = vpop.xlane.xlu2 %2220 }
 0xba1   :  { %v2225_v27 = vsub.f32 %v2209_v14, %v2221_v26 }
 0xba3   :  { %v3548_v30 = vpop.eup %3547  ;;  %v2232_v20 = vmul.f32 1.442695, %v2225_v27 }
 0xba4   :  { %v2240_v31 = vsel %vm493_vm2, %v3548_v30, 0.0 }
 0xba5   :  { %3549 = vpow2.f32 %v2232_v20  ;;  %2241 = vadd.xlane.f32.xlu2 %v2240_v31 }
 0xbab   :  { %v3550_v55 = vpop.eup %3549  ;;  %v2259_v56 = vpop.permute.xlu0 %2258 }
 0xbac   :  { %2274 = vmatpush.bf16.msrb.mxu2 %v2259_v56  ;;  %v2243_v57 = vsel %vm493_vm2, %v3550_v55, 0.0 }
 0xbad   :  { %2244 = vadd.xlane.f32.xlu2 %v2243_v57 }
 0xbae   :  { %2256 = vrot.lane.b32.xlu1 %v4780_v38, %s4142_s21 }
 0xc08   :  { %v2236_v60 = vpop.xlane.xlu1 %2235 }
 0xc10   :  { %v2239_v32 = vpop.xlane.xlu2 %2238 }
 0xc11   :  { %3551 = vrcp.f32 %v2239_v32 }
 0xc12   :  { %3553 = vrcp.f32 %v2236_v60 }
 0xc17   :  { %v3552_v58 = vpop.eup %3551 }
 0xc18   :  { %v2242_v25 = vpop.xlane.xlu2 %2241  ;;  %v3554_v34 = vpop.eup %3553  ;;  %v2251_v42 = vmul.f32 %v3552_v58, %v3546_v23 }
 0xc19   :  { %v2250_v49 = vmul.f32 %v3554_v34, %v3544_v52  ;;  %v3484_v52 = vld [vmem:[%s4928_s27 + $0x1] ss:$0 sm:$0xff] }
 0xc1b   :  { %v2254_v35 = vpack.c.bf16 %v2251_v42, %v2250_v49 }
 0xc20   :  { %v2257_v39 = vpop.permute.xlu1 %2256  ;;  %v2245_v45 = vpop.xlane.xlu2 %2244 }
 0xc21   :  { %2275 = vmatpush.bf16.msrb.mxu2 %v2257_v39  ;;  %3555 = vrcp.f32 %v2245_v45 }
 0xc22   :  { %3557 = vrcp.f32 %v2242_v25 }
 0xc24   :  { %3214 = vmatmul.msk.bf16.vlgmr.msrb.gmra.mxu2 %vm493_vm2, %v2254_v35 }
 0xc25   :  { %2445 = vmatpush.bf16.msra.mxu2 %v3390_v8 }
 0xc27   :  { %v3556_v46 = vpop.eup %3555 }
 0xc28   :  { %v3558_v63 = vpop.eup %3557  ;;  %v2253_v38 = vmul.f32 %v3556_v46, %v3550_v55 }
 0xc29   :  { %v2252_v17 = vmul.f32 %v3558_v63, %v3548_v30  ;;  %2446 = vmatpush.bf16.msra.mxu2 %v3389_v10 }
 0xc2b   :  { %v2255_v1 = vpack.c.bf16 %v2253_v38, %v2252_v17 }
 0xc34   :  { %3215 = vmatmul.msk.bf16.gmra.mxu2 %vm493_vm2, %v2255_v1 }
 0xca7   :  { %v2277_v3 = vpop.f32.mrf.mxu2 }
 0xcaf   :  { %v2279_v4 = vpop.f32.mrf.mxu2 }
 0xcb0   :  { %v2291_v5 = vpack.c.bf16 %v2279_v4, %v2277_v3 }
 0xcb2   :  { %3224 = vmatmul.msk.bf16.vlgmr.msrb.gmra.mxu3 %vm493_vm2, %v2291_v5 }
 0xcb7   :  { %v2282_v37 = vpop.f32.mrf.mxu2 }
 0xcbf   :  { %v2284_v28 = vpop.f32.mrf.mxu2 }
 0xcc0   :  { %v2292_v59 = vpack.c.bf16 %v2284_v28, %v2282_v37 }
 0xcc2   :  { %3225 = vmatmul.msk.bf16.gmra.mxu3 %vm493_vm2, %v2292_v59 }
 0xd35   :  { %v2320_v43 = vpop.f32.mrf.mxu3 }
 0xd36   :  { %v2330_v61 = vadd.f32 %v2320_v43, %v4747_v13 }
 0xd38   :  { %v4829_v33 = vadd.f32 %v3483_v11, %v2330_v61 }
 0xd3d   :  { %v2322_v12 = vpop.f32.mrf.mxu3 }
 0xd3e   :  { %v2331_v21 = vadd.f32 %v2322_v12, %v4752_v0 }
 0xd40   :  { %v4831_v14 = vadd.f32 %v3483_v11, %v2331_v21 }
 0xd42   :  { %v2347_v15 = vpack.c.bf16 %v4831_v14, %v4829_v33 }
 0xd44   :  { %3238 = vmatmul.msk.bf16.vlgmr.msra.gmra.mxu1 %vm493_vm2, %v2347_v15  ;;  %3259 = vmatmul.msk.bf16.vlgmr.msra.gmra.mxu2 %vm493_vm2, %v2347_v15 }
 0xd45   :  { %v2325_v16 = vpop.f32.mrf.mxu3 }
 0xd46   :  { %v2332_v48 = vadd.f32 %v2325_v16, %v4770_v53 }
 0xd48   :  { %v4839_v50 = vadd.f32 %v3483_v11, %v2332_v48 }
 0xd4d   :  { %v2327_v13 = vpop.f32.mrf.mxu3 }
 0xd4e   :  { %v2333_v18 = vadd.f32 %v2327_v13, %v4772_v54 }
 0xd50   :  { %v4841_v0 = vadd.f32 %v3483_v11, %v2333_v18 }
 0xd52   :  { %v2348_v51 = vpack.c.bf16 %v4841_v0, %v4839_v50 }
 0xd54   :  { %3239 = vmatmul.msk.bf16.gmra.mxu1 %vm493_vm2, %v2348_v51  ;;  %3260 = vmatmul.msk.bf16.gmra.mxu2 %vm493_vm2, %v2348_v51 }
 0xdc7   :  { %v2448_v47 = vpop.f32.mrf.mxu2 }
 0xdc8   :  { %v2449_v36 = vadd.f32 %v3484_v52, %v2448_v47 }
 0xdca   :  { %2458 = vst.msk [vmem:[#allocation4] sm:$0xff] %vm2154_vm13, %v2449_v36 }
 0xdcf   :  { %v2450_v53 = vpop.f32.mrf.mxu2 }
 0xdd0   :  { %v2451_v19 = vadd.f32 %v3484_v52, %v2450_v53 }
 0xdd1   :  { %v2462_v23 = vld [vmem:[#allocation4] sm:$0xff] }
 0xdd2   :  { %2459 = vst.msk [vmem:[#allocation4 + $0x8] sm:$0xff] %vm2154_vm13, %v2451_v19 }
 0xdd7   :  { %v2453_v54 = vpop.f32.mrf.mxu2 }
 0xdd8   :  { %v2454_v40 = vadd.f32 %v3484_v52, %v2453_v54 }
 0xdd9   :  { %v2463_v24 = vld [vmem:[#allocation4 + $0x8] sm:$0xff] }
 0xdda   :  { %2460 = vst.msk [vmem:[#allocation4 + $0x10] sm:$0xff] %vm2154_vm13, %v2454_v40  ;;  %v4851_v41 = vpack.c.bf16 %v2463_v24, %v2462_v23 }
 0xddc   :  { %2470 = vrot.lane.b32.xlu2 %v4851_v41, %s4163_s28 }
 0xddf   :  { %v2455_v26 = vpop.f32.mrf.mxu2 }
 0xde0   :  { %v2456_v27 = vadd.f32 %v3484_v52, %v2455_v26 }
 0xde1   :  { %v2464_v30 = vld [vmem:[#allocation4 + $0x10] sm:$0xff] }
 0xde2   :  { %2461 = vst.msk [vmem:[#allocation4 + $0x18] sm:$0xff] %vm2154_vm13, %v2456_v27  ;;  %v2376_v27 = vpop.f32.mrf.mxu1 }
 0xde9   :  { %v2465_v20 = vld [vmem:[#allocation4 + $0x18] sm:$0xff] }
 0xdea   :  { %v2467_v31 = vpack.c.bf16 %v2465_v20, %v2464_v30  ;;  %v3392_v30 = vld [vmem:[#allocation35 + $0x18] sm:$0xff]  ;;  %v2378_v20 = vpop.f32.mrf.mxu1 }
 0xdeb   :  { %2621 = vmatpush.bf16.msrb.mxu0 %v3392_v30 }
 0xdec   :  { %2472 = vrot.lane.b32.xlu0 %v2467_v31, %s4163_s28 }
 0xe36   :  { %v2471_v57 = vpop.permute.xlu2 %2470 }
 0xe37   :  { %v2481_v32 = vsel %vm493_vm2, %v2471_v57, 0 }
 0xe5e   :  { %v2473_v55 = vpop.permute.xlu0 %2472 }
 0xe5f   :  { %v2484_v56 = vsel %vm493_vm2, %v2473_v55, 0  ;;  %v2381_v55 = vpop.f32.mrf.mxu1 }
 0xe60   :  { %2492 = vmatpush.bf16.xpose.msra.mxu3 %v2484_v56 }
 0xe67   :  { %v2383_v56 = vpop.f32.mrf.mxu1 }
 0xe68   :  { %2493 = vmatpush.bf16.xpose.msra.mxu3 %v2481_v32 }
 0xe6f   :  { %3261 = vmatmul.msk.bf16.vlgmr.msra.gmra.mxu3 %vm493_vm2, %v4851_v41 }
 0xe7f   :  { %3262 = vmatmul.msk.bf16.gmra.mxu3 %vm493_vm2, %v2467_v31 }
 0xef2   :  { %v2495_v60 = vpop.f32.mrf.mxu3 }
 0xef3   :  { %v2505_v25 = vmul.f32 0.17677669, %v2495_v60 }
 0xef5   :  { %v2509_v58 = vadd.f32 %v2505_v25, %v4797_v6 }
 0xef7   :  { %v2513_v34 = vsel %vm493_vm2, %v2509_v58, -inf }
 0xef8   :  { %2514 = vmax.xlane.f32.xlu1 %v2513_v34 }
 0xefa   :  { %v2497_v42 = vpop.f32.mrf.mxu3 }
 0xefb   :  { %v2506_v49 = vmul.f32 0.17677669, %v2497_v42  ;;  %v2407_v42 = vpop.f32.mrf.mxu0 }
 0xefd   :  { %v2510_v39 = vadd.f32 %v2506_v49, %v4801_v7 }
 0xeff   :  { %v2516_v35 = vsel %vm493_vm2, %v2510_v39, -inf }
 0xf00   :  { %2517 = vmax.xlane.f32.xlu0 %v2516_v35  ;;  %v3393_v35 = vld [vmem:[%s4309_s12 + $0x20] sm:$0xff] }
 0xf02   :  { %v2500_v45 = vpop.f32.mrf.mxu3 }
 0xf03   :  { %v2507_v46 = vmul.f32 0.17677669, %v2500_v45  ;;  %v2409_v49 = vpop.f32.mrf.mxu0 }
 0xf05   :  { %v2511_v63 = vadd.f32 %v2507_v46, %v4805_v9 }
 0xf07   :  { %v2519_v38 = vsel %vm493_vm2, %v2511_v63, -inf }
 0xf08   :  { %2520 = vmax.xlane.f32.xlu2 %v2519_v38 }
 0xf0a   :  { %v2502_v17 = vpop.f32.mrf.mxu3 }
 0xf0b   :  { %v2508_v1 = vmul.f32 0.17677669, %v2502_v17  ;;  %v2412_v45 = vpop.f32.mrf.mxu0  ;;  %v3485_v17 = vld [vmem:[%s4304_s8 + $0x1] ss:$0 sm:$0xff] }
 0xf0d   :  { %v2512_v6 = vadd.f32 %v2508_v1, %v4809_v22 }
 0xf0f   :  { %v2522_v2 = vsel %vm493_vm2, %v2512_v6, -inf }
 0xf10   :  { %2523 = vmax.xlane.f32.xlu1 %v2522_v2 }
 0xf13   :  { %v2414_v46 = vpop.f32.mrf.mxu0 }
 0xf6b   :  { %v2515_v62 = vpop.xlane.xlu1 %2514 }
 0xf6c   :  { %v2525_v3 = vsub.f32 %v2509_v58, %v2515_v62 }
 0xf6e   :  { %v2529_v7 = vmul.f32 1.442695, %v2525_v3 }
 0xf70   :  { %3559 = vpow2.f32 %v2529_v7 }
 0xf73   :  { %v2518_v4 = vpop.xlane.xlu0 %2517 }
 0xf74   :  { %v2526_v5 = vsub.f32 %v2510_v39, %v2518_v4  ;;  %v3394_v39 = vld [vmem:[%s4309_s12 + $0x28] sm:$0xff]  ;;  %s2749_s12 = sshll.u32 %s4319_s30, 4  ;;  %s2750_s12 = int_to_ptr.hbm [resolvable:$true] %s2749_s12 }
 0xf75   :  { %2678 = vmatpush.bf16.msrb.mxu2 %v3394_v39 }
 0xf76   :  { %v3560_v37 = vpop.eup %3559  ;;  %v2531_v28 = vmul.f32 1.442695, %v2526_v5 }
 0xf77   :  { %v2537_v9 = vsel %vm493_vm2, %v3560_v37, 0.0 }
 0xf78   :  { %3561 = vpow2.f32 %v2531_v28  ;;  %2538 = vadd.xlane.f32.xlu0 %v2537_v9 }
 0xf79   :  { %2679 = vmatpush.bf16.msrb.mxu2 %v3393_v35 }
 0xf7b   :  { %v2521_v59 = vpop.xlane.xlu2 %2520 }
 0xf7c   :  { %v2527_v29 = vsub.f32 %v2511_v63, %v2521_v59 }
 0xf7e   :  { %v3562_v8 = vpop.eup %3561  ;;  %v2533_v44 = vmul.f32 1.442695, %v2527_v29 }
 0xf7f   :  { %v2540_v22 = vsel %vm493_vm2, %v3562_v8, 0.0 }
 0xf80   :  { %3563 = vpow2.f32 %v2533_v44  ;;  %2541 = vadd.xlane.f32.xlu1 %v2540_v22  ;;  %v2410_v44 = vadd.f32 %v2409_v49, %v2378_v20  ;;  %v3579_v20 = vld [vmem:[#allocation5] sm:$0x3] }
 0xf83   :  { %v2524_v10 = vpop.xlane.xlu1 %2523 }
 0xf84   :  { %v2528_v43 = vsub.f32 %v2512_v6, %v2524_v10  ;;  %v2408_v10 = vadd.f32 %v2407_v42, %v2376_v27 }
 0xf86   :  { %v3564_v61 = vpop.eup %3563  ;;  %v2535_v11 = vmul.f32 1.442695, %v2528_v43  ;;  %v3486_v43 = vld [vmem:[%s4314_s5] ss:$0 sm:$0xff]  ;;  %s4165_s5 = smov [#allocation37]  }
 0xf87   :  { %v2543_v12 = vsel %vm493_vm2, %v3564_v61, 0.0  ;;  %s2747_s8 = sshll.u32 %s4165_s5, 4  ;;  %s2748_s8 = int_to_ptr.vmem [resolvable:$true] %s2747_s8 }
 0xf88   :  { %3565 = vpow2.f32 %v2535_v11  ;;  %2544 = vadd.xlane.f32.xlu2 %v2543_v12 }
 0xf8c   :  { %2561 = vrot.lane.b32.xlu0 %v2467_v31, %s4142_s21  ;;  %v3391_v31 = vld [vmem:[#allocation35 + $0x10] sm:$0xff] }
 0xf8d   :  { %2622 = vmatpush.bf16.msrb.mxu0 %v3391_v31 }
 0xf8e   :  { %v3566_v21 = vpop.eup %3565 }
 0xf8f   :  { %v2546_v15 = vsel %vm493_vm2, %v3566_v21, 0.0 }
 0xf90   :  { %2547 = vadd.xlane.f32.xlu2 %v2546_v15 }
 0xf99   :  { %2559 = vrot.lane.b32.xlu1 %v4851_v41, %s4142_s21  ;;  %s4072_s21 = sshra.s32 %s2750_s12, 4  ;;  %s4073_s21 = int_to_ptr.hbm [resolvable:$true] %s4072_s21 }
 0xf9a   :  { %s4074_s14 = scalar_lea.hbm %s4073_s21, 2  ;;  %p4077_p3 = scmp.lt.s32.totalorder %s4073_s21, %s4319_s30 }
 0xf9b   :  { %p4075_p2 = scmp.ne.s32.totalorder %s4073_s21, %s4074_s14  ;;  %p4078_p4 = scmp.lt.s32.totalorder %s4076_s15, %s4074_s14 }
 0xf9d   :  { %p4079_p5 = por %p4078_p4, %p4077_p3 }
 0xf9f   :  { %p4080_p6 = pnand %p4079_p5, %p4075_p2 }
 0xfeb   :  { %v2539_v16 = vpop.xlane.xlu0 %2538 }
 0xff3   :  { %v2542_v48 = vpop.xlane.xlu1 %2541 }
 0xff4   :  { %3567 = vrcp.f32 %v2542_v48 }
 0xff5   :  { %3569 = vrcp.f32 %v2539_v16 }
 0xffa   :  { %v3568_v51 = vpop.eup %3567 }
 0xffb   :  { %v2545_v18 = vpop.xlane.xlu2 %2544  ;;  %v3570_v52 = vpop.eup %3569  ;;  %v2554_v47 = vmul.f32 %v3568_v51, %v3562_v8 }
 0xffc   :  { %v2553_v36 = vmul.f32 %v3570_v52, %v3560_v37 }
 0xffe   :  { %v2562_v13 = vpop.permute.xlu0 %2561  ;;  %v2557_v19 = vpack.c.bf16 %v2554_v47, %v2553_v36 }
 0xfff   :  { %2577 = vmatpush.bf16.msrb.mxu1 %v2562_v13 }
0x1003   :  { %v2548_v54 = vpop.xlane.xlu2 %2547 }
0x1004   :  { %3571 = vrcp.f32 %v2548_v54 }
0x1005   :  { %3573 = vrcp.f32 %v2545_v18 }
0x100a   :  { %v3572_v40 = vpop.eup %3571 }
0x100b   :  { %v2560_v53 = vpop.permute.xlu1 %2559  ;;  %v3574_v23 = vpop.eup %3573  ;;  %v2556_v24 = vmul.f32 %v3572_v40, %v3566_v21 }
0x100c   :  { %2578 = vmatpush.bf16.msrb.mxu1 %v2560_v53  ;;  %v2555_v41 = vmul.f32 %v3574_v23, %v3564_v61 }
0x100e   :  { %v2558_v26 = vpack.c.bf16 %v2556_v24, %v2555_v41 }
0x100f   :  { %3263 = vmatmul.msk.bf16.vlgmr.msrb.gmra.mxu1 %vm493_vm2, %v2557_v19 }
0x101f   :  { %3264 = vmatmul.msk.bf16.gmra.mxu1 %vm493_vm2, %v2558_v26 }
0x108c   :  { %v2580_v57 = vpop.f32.mrf.mxu1 }
0x1094   :  { %v2582_v32 = vpop.f32.mrf.mxu1 }
0x1095   :  { %v2595_v60 = vpack.c.bf16 %v2582_v32, %v2580_v57 }
0x1097   :  { %3273 = vmatmul.msk.bf16.vlgmr.msrb.gmra.mxu0 %vm493_vm2, %v2595_v60 }
0x109c   :  { %v2585_v25 = vpop.f32.mrf.mxu1 }
0x10a4   :  { %v2587_v58 = vpop.f32.mrf.mxu1 }
0x10a5   :  { %v2596_v34 = vpack.c.bf16 %v2587_v58, %v2585_v25 }
0x10a7   :  { %3274 = vmatmul.msk.bf16.gmra.mxu0 %vm493_vm2, %v2596_v34 }
0x1114   :  { %v2624_v63 = vpop.f32.mrf.mxu0 }
0x1115   :  { %v2634_v38 = vadd.f32 %v2624_v63, %v4829_v33 }
0x1117   :  { %v2643_v2 = vadd.f32 %v3485_v17, %v2634_v38 }
0x111c   :  { %v2626_v1 = vpop.f32.mrf.mxu0 }
0x111d   :  { %v2635_v6 = vadd.f32 %v2626_v1, %v4831_v14  ;;  %v2413_v14 = vadd.f32 %v2412_v45, %v2381_v55 }
0x111f   :  { %v2644_v62 = vadd.f32 %v3485_v17, %v2635_v6 }
0x1121   :  { %v2652_v3 = vpack.c.bf16 %v2644_v62, %v2643_v2 }
0x1123   :  { %3288 = vmatmul.msk.bf16.vlgmr.msrb.gmra.mxu2 %vm493_vm2, %v2652_v3 }
0x1124   :  { %v2629_v7 = vpop.f32.mrf.mxu0 }
0x1125   :  { %v2636_v4 = vadd.f32 %v2629_v7, %v4839_v50  ;;  %v2415_v50 = vadd.f32 %v2414_v46, %v2383_v56 }
0x1127   :  { %v2645_v28 = vadd.f32 %v3485_v17, %v2636_v4 }
0x112c   :  { %v2631_v5 = vpop.f32.mrf.mxu0 }
0x112d   :  { %v2637_v37 = vadd.f32 %v2631_v5, %v4841_v0 }
0x112f   :  { %v2646_v9 = vadd.f32 %v3485_v17, %v2637_v37 }
0x1131   :  { %v2653_v59 = vpack.c.bf16 %v2646_v9, %v2645_v28 }
0x1133   :  { %3289 = vmatmul.msk.bf16.gmra.mxu2 %vm493_vm2, %v2653_v59 }
0x11a6   :  { %v2681_v33 = vpop.f32.mrf.mxu2 }
0x11a7   :  { %v2691_v11 = vadd.f32 %v2681_v33, %v2408_v10 }
0x11a9   :  { %v2699_v0 = vadd.f32 %v3486_v43, %v2691_v11 }
0x11ab   :  { %v2703_v51 = vmax.f32 %v2699_v0, 0.0 }
0x11ad   :  { %v2707_v19 = vmax.f32 %v2703_v51, 1e-06 }
0x11ae   :  { %v2683_v29 = vpop.f32.mrf.mxu2 }
0x11af   :  { %v2692_v61 = vadd.f32 %v2683_v29, %v2410_v44  ;;  %v2711_v41 = vmul.f32 %v2707_v19, %v2707_v19 }
0x11b1   :  { %v2700_v21 = vadd.f32 %v3486_v43, %v2692_v61  ;;  %v2715_v30 = vmul.f32 %v2711_v41, %v2707_v19 }
0x11b3   :  { %v2704_v13 = vmax.f32 %v2700_v21, 0.0 }
0x11b5   :  { %v2708_v36 = vmax.f32 %v2704_v13, 1e-06 }
0x11b6   :  { %v2686_v8 = vpop.f32.mrf.mxu2 }
0x11b7   :  { %v2693_v22 = vadd.f32 %v2686_v8, %v2413_v14  ;;  %v2712_v23 = vmul.f32 %v2708_v36, %v2708_v36 }
0x11b9   :  { %v2701_v12 = vadd.f32 %v3486_v43, %v2693_v22  ;;  %v2716_v27 = vmul.f32 %v2712_v23, %v2708_v36 }
0x11bb   :  { %v2705_v16 = vmax.f32 %v2701_v12, 0.0 }
0x11bd   :  { %v2709_v52 = vmax.f32 %v2705_v16, 1e-06 }
0x11be   :  { %v2688_v15 = vpop.f32.mrf.mxu2 }
0x11bf   :  { %v2694_v48 = vadd.f32 %v2688_v15, %v2415_v50  ;;  %v2713_v54 = vmul.f32 %v2709_v52, %v2709_v52 }
0x11c1   :  { %v2702_v18 = vadd.f32 %v3486_v43, %v2694_v48  ;;  %v2717_v26 = vmul.f32 %v2713_v54, %v2709_v52 }
0x11c3   :  { %v2706_v47 = vmax.f32 %v2702_v18, 0.0 }
0x11c5   :  { %v2710_v53 = vmax.f32 %v2706_v47, 1e-06 }
0x11c7   :  { %v2714_v40 = vmul.f32 %v2710_v53, %v2710_v53 }
0x11c9   :  { %v2718_v24 = vmul.f32 %v2714_v40, %v2710_v53 }
0x11cb   :  { %2731 = vmatpush.msrb.mxu3 %v2718_v24 }
0x11cd   :  { %2732 = vmatpush.msrb.mxu3 %v2717_v26 }
0x11cf   :  { %2733 = vmatpush.msrb.mxu3 %v2716_v27 }
0x11d1   :  { %2734 = vmatpush.msrb.mxu3 %v2715_v30 }
0x11d2   :  { %3290 = vmatmul.msk.f32.vlgmr.msrb.gmra.mxu3 %vm493_vm2, %v3579_v20  ;;  %vm2740_vm2 = vcmask 254976  }
0x1255   :  { %v2736_v31 = vpop.f32.mrf.mxu3 }
0x1256   :  { %v3397_v55 = vand.u32 2147483647, %v2736_v31  ;;  %v3414_v45 = vand.u32 2147483648, %v2736_v31  ;;  %vm3396_vm0 = vcmp.lt.f32.partialorder %v2736_v31, 0.0  ;;  %vm3395_vm1 = vcmp.eq.f32.partialorder %v2736_v31, 0.0 }
0x1258   :  { %3575 = vlog2.f32 %v3397_v55  ;;  %vm3411_vm14 = vweird.f32 %v3397_v55  ;;  %vm3413_vm15 = vcmp.eq.f32.partialorder %v3397_v55, 0.0  ;;  %vm3398_vm3 = vcmp.eq.f32.partialorder %v3397_v55, inf }
0x125e   :  { %v3576_v56 = vpop.eup %3575 }
0x125f   :  { %v3401_v57 = vmul.f32 -0.33333334, %v3576_v56 }
0x1261   :  { %3577 = vpow2.f32 %v3401_v57 }
0x1267   :  { %v3578_v32 = vpop.eup %3577 }
0x1268   :  { %v3403_v60 = vmul.f32 %v3578_v32, %v3578_v32 }
0x126a   :  { %v3404_v25 = vmul.f32 %v3403_v60, %v3397_v55 }
0x126c   :  { %v3405_v58 = vmul.f32 %v3404_v25, %v3403_v60 }
0x126e   :  { %v3406_v34 = vsub.f32 %v3405_v58, %v3578_v32 }
0x1270   :  { %v3407_v42 = vmul.f32 -0.33333334, %v3406_v34 }
0x1272   :  { %v3408_v49 = vadd.f32 %v3578_v32, %v3407_v42 }
0x1274   :  { %v3409_v39 = vmul.f32 %v3408_v49, %v2736_v31 }
0x1276   :  { %v3410_v35 = vmul.f32 %v3409_v39, %v3408_v49 }
0x1278   :  { %v3412_v46 = vsel %vm3411_vm14, %v2736_v31, %v3410_v35 }
0x1279   :  { %v3415_v63 = vsel %vm3413_vm15, %v3414_v45, %v3412_v46 }
0x127a   :  { %v3416_v38 = vsel %vm3396_vm0, nan, %v3415_v63 }
0x127b   :  { %v3417_v17 = vsel %vm3395_vm1, 0.0, %v3416_v38 }
0x127c   :  { %v3418_v1 = vsel %vm3398_vm3, inf, %v3417_v17 }
0x127d   :  { %2741 = vst.msk [vmem:[#allocation37] sm:$0x3] %vm2740_vm2, %v3418_v1 }
0x127e   :  { %4083 = shalt.err (!%p4080_p6)
}
0x127f   :  { %2752 = dma.vmem_to_hbm [thread:$0]  %s2748_s8, 32, %s2750_s12, [#allocation7]  }
0x1280   :  { %4106 = dma.done.wait [#allocation7], 32  }
0x1281   :  { %4107 = vsyncadd [#allocation7], 4294967264 }
0x1282   :  { %2757 = vsyncpa [#allocation6], 1 }
0x1283   :  { %2758 = vsyncpa [#allocation9], 1 }
0x1284   :  { %2759 = vsyncpa [#allocation12], 1 }
0x1285   :  { %2760 = vsyncpa [#allocation15], 1 }
0x1286   :  { %2761 = vsyncpa [#allocation18], 1 }
0x1287   :  { %2762 = vsyncpa [#allocation21], 1 }
0x1288   :  { %2763 = vsyncpa [#allocation24], 1 }
0x1289   :  { %2764 = vsyncpa [#allocation27], 1 }
0x128a   :  { %2765 = vsyncpa [#allocation30], 1 }
0x128b   :  { %2766 = vsyncpa [#allocation33], 1 }
0x128c   :  { %2767 = vsyncpa [#allocation36], 1 }
0x128d   :  { %2768 = vsyncpa [#allocation7], 1 }

</bundles_post_ra>
